<compile_context>
chip_gen: v5e
topology: v5e:2x2
jax: 0.10.0
libtpu: 0.0.40
codegen_flags: <defaults>
</compile_context>

<pallas_src>
import functools
import math

import jax
import jax.numpy as jnp
import numpy as np
from jax.experimental import pallas as pl
from jax.experimental.pallas import tpu as pltpu


def _round_up(x, m):
    return ((x + m - 1) // m) * m


_LANE = 128
# v7x has 64 MiB physical VMEM per core (v5e/v6e: 128 MiB); keep the scoped
# limit v7x-safe.  Today's tiles use < 2 MiB.
_VMEM_LIMIT = 32 * 1024 * 1024


# ----------------------------------------------------------------------------
# Fused 3x3 conv kernel: for each tap t the (statically unrolled) body does
#   acc += x[off_t : off_t + Lp, :] @ w[t]
# on a phase-decomposed, spatially-flattened, channel-padded bf16 input held
# in VMEM (one image per grid step), with an f32 VMEM accumulator.
# ----------------------------------------------------------------------------
def _conv_tap_kernel(x_ref, w_ref, b_ref, o_ref, acc_ref, *, taps, lp, act):
    for t, off in enumerate(taps):
        prod = jnp.dot(x_ref[pl.ds(off, lp), :], w_ref[t],
                       preferred_element_type=jnp.float32)
        if t == 0:
            acc_ref[...] = prod
        else:
            acc_ref[...] += prod
    out = acc_ref[...] + b_ref[...]
    if act == "relu":
        out = jnp.maximum(out, 0.0)
    o_ref[...] = out.astype(o_ref.dtype)


def conv2d_nhwc(x, op, act="relu"):
    """3x3 conv on channel-padded bf16 NHWC input, taps fused into one kernel.

    x: (B, H, W, Cp) bf16 (Cp = 128-padded channels, pad lanes are zero).
    Returns (B, Ho, Wo, Np) bf16 with Np = 128-padded output channels
    (pad lanes exactly zero, so the next layer chains without re-padding).
    """
    B, H, W, Cp = x.shape
    kh, kw, cin, cout = op["kshape"]
    s, padding = op["stride"], op["padding"]
    Np = op["wp"].shape[-1]
    Ho = (H + 2 * padding - kh) // s + 1
    Wo = (W + 2 * padding - kw) // s + 1

    # spatial pad (+ round to a multiple of the stride for phase decomposition)
    Hp = _round_up(H + 2 * padding, s)
    Wp = _round_up(W + 2 * padding, s)
    xp = jnp.pad(x, ((0, 0), (padding, Hp - H - padding),
                     (padding, Wp - W - padding), (0, 0)))
    Hph, Wph = Hp // s, Wp // s
    P = s * s
    # phase decomposition: one reshape/transpose, no kh*kw data duplication
    xph = xp.reshape(B, Hph, s, Wph, s, Cp).transpose(0, 2, 4, 1, 3, 5)
    xph = xph.reshape(B, P, Hph * Wph, Cp)

    L = Ho * Wph                      # flat output rows (Wph-Wo garbage cols/row)
    Lp = _round_up(L, 8)
    max_off = ((kh - 1) // s) * Wph + (kw - 1) // s
    Sph = _round_up(max(Hph * Wph, max_off + Lp), 8)
    xph = jnp.pad(xph, ((0, 0), (0, 0), (0, Sph - Hph * Wph), (0, 0)))
    xflat = xph.reshape(B, P * Sph, Cp)

    taps = []
    for i in range(kh):
        for j in range(kw):
            ph = (i % s) * s + (j % s)
            taps.append(ph * Sph + (i // s) * Wph + (j // s))
    T = kh * kw

    out = pl.pallas_call(
        functools.partial(_conv_tap_kernel, taps=tuple(taps), lp=Lp, act=act),
        out_shape=jax.ShapeDtypeStruct((B, Lp, Np), jnp.bfloat16),
        grid=(B,),
        in_specs=[
            pl.BlockSpec((pl.Squeezed(), P * Sph, Cp), lambda b: (b, 0, 0)),
            pl.BlockSpec((T, Cp, Np), lambda b: (0, 0, 0)),
            pl.BlockSpec((1, Np), lambda b: (0, 0)),
        ],
        out_specs=pl.BlockSpec((pl.Squeezed(), Lp, Np), lambda b: (b, 0, 0)),
        scratch_shapes=[pltpu.VMEM((Lp, Np), jnp.float32)],
        compiler_params=pltpu.CompilerParams(
            dimension_semantics=("parallel",),
            vmem_limit_bytes=_VMEM_LIMIT),
    )(xflat, op["wp"], op["bp"])

    out = out[:, :L, :].reshape(B, Ho, Wph, Np)[:, :, :Wo, :]
    return out


# ----------------------------------------------------------------------------
# Linear: act(x @ w + b).  Full-K single dot (all K here <= 512 after padding),
# f32 output written directly (no scratch accumulator), M split into 2
# "parallel" blocks when there are enough rows (v7x has 2 TensorCores).
# ----------------------------------------------------------------------------
def _linear_kernel(x_ref, w_ref, b_ref, o_ref, *, act):
    out = jnp.dot(x_ref[...], w_ref[...],
                  preferred_element_type=jnp.float32) + b_ref[...]
    if act == "relu":
        out = jnp.maximum(out, 0.0)
    o_ref[...] = out.astype(o_ref.dtype)


def pallas_linear(x_bf16, wp, bp, n_out, act="none"):
    M, Kp = x_bf16.shape
    Kp2, Np = wp.shape
    assert Kp == Kp2 and Kp <= 1024   # single full-K dot (model K <= 512)
    if M >= 128:
        TM = _round_up((M + 1) // 2, 8)   # 2 parallel M blocks for v7x megacore
    else:
        TM = _round_up(max(M, 8), 8)      # single block: least overhead on 1-TC
    Mp = _round_up(M, TM)
    xb = jnp.pad(x_bf16, ((0, Mp - M), (0, 0)))
    out = pl.pallas_call(
        functools.partial(_linear_kernel, act=act),
        out_shape=jax.ShapeDtypeStruct((Mp, Np), jnp.float32),
        grid=(Mp // TM,),
        in_specs=[
            pl.BlockSpec((TM, Kp), lambda i: (i, 0)),
            pl.BlockSpec((Kp, Np), lambda i: (0, 0)),
            pl.BlockSpec((1, Np), lambda i: (0, 0)),
        ],
        out_specs=pl.BlockSpec((TM, Np), lambda i: (i, 0)),
        compiler_params=pltpu.CompilerParams(
            dimension_semantics=("parallel",),
            vmem_limit_bytes=_VMEM_LIMIT),
    )(xb, wp, bp)
    return out[:M, :n_out]


# ----------------------------------------------------------------------------
# Fused ROI heads: mask-average pooling + TwoMLPHead + FastRCNNPredictor in
# one pallas_call, grid over images only ("parallel" -> both v7x cores).
# ----------------------------------------------------------------------------
def _roi_head_kernel(m_ref, f_ref, w6_ref, b6_ref, w7_ref, b7_ref,
                     wp_ref, bp_ref, o_ref):
    pooled = jnp.dot(m_ref[...], f_ref[...], preferred_element_type=jnp.float32)
    h = jnp.dot(pooled.astype(jnp.bfloat16), w6_ref[...],
                preferred_element_type=jnp.float32) + b6_ref[...]
    h = jnp.maximum(h, 0.0)
    h = jnp.dot(h.astype(jnp.bfloat16), w7_ref[...],
                preferred_element_type=jnp.float32) + b7_ref[...]
    h = jnp.maximum(h, 0.0)
    o_ref[...] = jnp.dot(h.astype(jnp.bfloat16), wp_ref[...],
                         preferred_element_type=jnp.float32) + bp_ref[...]


def pallas_roi_heads(mask, feat, p6, p7, ppred, n_out):
    """mask (B, R, HW) f32, feat (B, HW, Cp) bf16 -> (B, R, n_out) f32."""
    B, R, HW = mask.shape
    _, HW2, Cp = feat.shape
    Rp = _round_up(R, 8)
    HWp = _round_up(HW, _LANE)
    mb = jnp.pad(mask.astype(jnp.bfloat16), ((0, 0), (0, Rp - R), (0, HWp - HW)))
    fb = jnp.pad(feat, ((0, 0), (0, HWp - HW2), (0, 0)))
    Np = ppred["wp"].shape[-1]
    out = pl.pallas_call(
        _roi_head_kernel,
        out_shape=jax.ShapeDtypeStruct((B, Rp, Np), jnp.float32),
        grid=(B,),
        in_specs=[
            pl.BlockSpec((pl.Squeezed(), Rp, HWp), lambda b: (b, 0, 0)),
            pl.BlockSpec((pl.Squeezed(), HWp, Cp), lambda b: (b, 0, 0)),
            pl.BlockSpec(p6["wp"].shape, lambda b: (0, 0)),
            pl.BlockSpec(p6["bp"].shape, lambda b: (0, 0)),
            pl.BlockSpec(p7["wp"].shape, lambda b: (0, 0)),
            pl.BlockSpec(p7["bp"].shape, lambda b: (0, 0)),
            pl.BlockSpec(ppred["wp"].shape, lambda b: (0, 0)),
            pl.BlockSpec(ppred["bp"].shape, lambda b: (0, 0)),
        ],
        out_specs=pl.BlockSpec((pl.Squeezed(), Rp, Np), lambda b: (b, 0, 0)),
        compiler_params=pltpu.CompilerParams(
            dimension_semantics=("parallel",),
            vmem_limit_bytes=_VMEM_LIMIT),
    )(mb, fb, p6["wp"], p6["bp"], p7["wp"], p7["bp"], ppred["wp"], ppred["bp"])
    return out[:, :R, :n_out]


# ----------------------------------------------------------------------------
# torchvision-style box coder (decode) — plain JAX glue.
# ----------------------------------------------------------------------------
_BBOX_XFORM_CLIP = math.log(1000.0 / 16.0)


def decode_boxes(ref_boxes, deltas, img_w, img_h, weights=(1.0, 1.0, 1.0, 1.0)):
    wx, wy, ww, wh = weights
    x1, y1, x2, y2 = [ref_boxes[:, k] for k in range(4)]
    w = jnp.maximum(x2 - x1, 1e-3)
    h = jnp.maximum(y2 - y1, 1e-3)
    cx = x1 + 0.5 * w
    cy = y1 + 0.5 * h
    dx = deltas[:, 0] / wx
    dy = deltas[:, 1] / wy
    dw = jnp.minimum(deltas[:, 2] / ww, _BBOX_XFORM_CLIP)
    dh = jnp.minimum(deltas[:, 3] / wh, _BBOX_XFORM_CLIP)
    ncx = cx + dx * w
    ncy = cy + dy * h
    nw = w * jnp.exp(dw)
    nh = h * jnp.exp(dh)
    bx1 = jnp.clip(ncx - 0.5 * nw, 0.0, img_w)
    by1 = jnp.clip(ncy - 0.5 * nh, 0.0, img_h)
    bx2 = jnp.clip(ncx + 0.5 * nw, 0.0, img_w)
    by2 = jnp.clip(ncy + 0.5 * nh, 0.0, img_h)
    return jnp.stack([bx1, by1, bx2, by2], axis=-1)


# ----------------------------------------------------------------------------
# Parameter pre-padding (done ONCE at __init__, bf16 weights / f32 biases).
# ----------------------------------------------------------------------------
def _pad_linear(w, b):
    K, N = w.shape
    Kp, Np = _round_up(K, _LANE), _round_up(N, _LANE)
    wp = jnp.pad(w.astype(jnp.bfloat16), ((0, Kp - K), (0, Np - N)))
    bp = jnp.pad(b.astype(jnp.float32), (0, Np - N)).reshape(1, Np)
    return {"wp": wp, "bp": bp}


def _pad_conv(w_hwio, b, stride, padding):
    kh, kw, cin, cout = w_hwio.shape
    Cp, Np = _round_up(cin, _LANE), _round_up(cout, _LANE)
    wp = jnp.pad(w_hwio.astype(jnp.bfloat16),
                 ((0, 0), (0, 0), (0, Cp - cin), (0, Np - cout)))
    wp = wp.reshape(kh * kw, Cp, Np)
    bp = jnp.pad(b.astype(jnp.float32), (0, Np - cout)).reshape(1, Np)
    return {"wp": wp, "bp": bp, "kshape": (kh, kw, cin, cout),
            "stride": stride, "padding": padding}


class FasterRCNNPallas:
    """Small, synthetic-weight Faster R-CNN forward pass on Pallas kernels.

    Mirrors Faster_RCNN.forward in eval mode: backbone conv features ->
    RPN head -> proposals -> ROI pooling -> TwoMLPHead ->
    FastRCNNPredictor(in_features, n_classes) -> per-image dicts of
    boxes / labels / scores with box_score_thresh filtering.
    """

    def __init__(self, n_classes=4, nms_threshold=0.5, score_thresh=0.05,
                 num_anchors=3, topk=8, feat_channels=32, rep_size=64, seed=1):
        self.n_classes = n_classes
        self.nms_threshold = nms_threshold
        self.score_thresh = score_thresh
        self.A = num_anchors
        self.topk = topk
        self.rep_size = rep_size
        self.apply_nms = False

        keys = jax.random.split(jax.random.PRNGKey(seed), 16)

        def init(k, shape, scale=0.05):
            return scale * jax.random.normal(k, shape, jnp.float32)

        C = feat_channels
        R = rep_size

        # --- backbone (synthetic stand-in for resnet50+FPN) ---
        c1_w = init(keys[0], (3, 3, 3, 16)); c1_b = jnp.zeros((16,))
        c2_w = init(keys[1], (3, 3, 16, C)); c2_b = jnp.zeros((C,))
        # --- RPN head (objectness + box deltas fused into one matmul) ---
        rpn_w = init(keys[2], (3, 3, C, C)); rpn_b = jnp.zeros((C,))
        rpn_cls_w = init(keys[3], (C, self.A)); rpn_cls_b = jnp.zeros((self.A,))
        rpn_box_w = init(keys[4], (C, self.A * 4)); rpn_box_b = jnp.zeros((self.A * 4,))
        rpn_head_w = jnp.concatenate([rpn_cls_w, rpn_box_w], axis=1)
        rpn_head_b = jnp.concatenate([rpn_cls_b, rpn_box_b], axis=0)
        # --- TwoMLPHead (box head) ---
        fc6_w = init(keys[5], (C, R)); fc6_b = jnp.zeros((R,))
        fc7_w = init(keys[6], (R, R)); fc7_b = jnp.zeros((R,))
        # --- FastRCNNPredictor(in_features=R, n_classes), cls||bbox fused ---
        cls_w = init(keys[7], (R, n_classes)); cls_b = jnp.zeros((n_classes,))
        box_w = init(keys[8], (R, n_classes * 4)); box_b = jnp.zeros((n_classes * 4,))
        pred_w = jnp.concatenate([cls_w, box_w], axis=1)
        pred_b = jnp.concatenate([cls_b, box_b], axis=0)

        self.p = {
            "c1": _pad_conv(c1_w, c1_b, stride=2, padding=1),
            "c2": _pad_conv(c2_w, c2_b, stride=2, padding=1),
            "rpn_conv": _pad_conv(rpn_w, rpn_b, stride=1, padding=1),
            "rpn_head": _pad_linear(rpn_head_w, rpn_head_b),
            "fc6": _pad_linear(fc6_w, fc6_b),
            "fc7": _pad_linear(fc7_w, fc7_b),
            "pred": _pad_linear(pred_w, pred_b),
        }
        self.anchor_sizes = jnp.array([8.0, 16.0, 24.0], jnp.float32)

        # One jitted forward for the whole device-side graph.
        self._forward = jax.jit(self._forward_core)

    def inference_mode(self, value):
        self.apply_nms = value

    # ------------------------------------------------------------------
    # Jitted device-side forward: returns (boxes, scores, labels).
    # ------------------------------------------------------------------
    def _forward_core(self, x_nchw):
        p = self.p
        A = self.A
        x = jnp.transpose(x_nchw, (0, 2, 3, 1))                 # NHWC
        B, H, W, Cin = x.shape
        Cp0 = p["c1"]["wp"].shape[1]
        x = jnp.pad(x.astype(jnp.bfloat16),
                    ((0, 0), (0, 0), (0, 0), (0, Cp0 - Cin)))

        # ---------------- backbone (tap-fused convs, bf16 padded acts) -----
        f = conv2d_nhwc(x, p["c1"], act="relu")
        f = conv2d_nhwc(f, p["c2"], act="relu")
        _, Hf, Wf, Cp = f.shape
        stride_total = H // Hf

        # ---------------- RPN head ----------------
        r = conv2d_nhwc(f, p["rpn_conv"], act="relu")
        rpn_out = pallas_linear(r.reshape(B * Hf * Wf, Cp),
                                p["rpn_head"]["wp"], p["rpn_head"]["bp"], 5 * A)
        obj = rpn_out[:, :A].reshape(B, Hf * Wf * A)
        rpn_deltas = rpn_out[:, A:].reshape(B, Hf * Wf * A, 4)

        # anchors (Hf*Wf*A, 4) in x1,y1,x2,y2 image coords
        ys = (jnp.arange(Hf, dtype=jnp.float32) + 0.5) * stride_total
        xs = (jnp.arange(Wf, dtype=jnp.float32) + 0.5) * stride_total
        cy = jnp.broadcast_to(ys[:, None, None], (Hf, Wf, A))
        cx = jnp.broadcast_to(xs[None, :, None], (Hf, Wf, A))
        sz = jnp.broadcast_to(self.anchor_sizes[None, None, :], (Hf, Wf, A))
        anchors = jnp.stack([cx - sz / 2, cy - sz / 2,
                             cx + sz / 2, cy + sz / 2], axis=-1).reshape(-1, 4)

        # top-k proposals per image
        _, topi = jax.lax.top_k(obj, self.topk)
        prop_anchors = anchors[topi]
        idx = jnp.broadcast_to(topi[..., None], (B, self.topk, 4))
        prop_deltas = jnp.take_along_axis(rpn_deltas, idx, axis=1)
        proposals = decode_boxes(prop_anchors.reshape(-1, 4),
                                 prop_deltas.reshape(-1, 4),
                                 float(W), float(H),
                                 weights=(1.0, 1.0, 1.0, 1.0)
                                 ).reshape(B, self.topk, 4)

        # ---------------- ROI heads (single fused pallas_call) -------------
        # TODO(synk): torchvision MultiScaleRoIAlign does 7x7 bilinear
        # sampling; here each ROI is pooled with a box-membership mask average.
        gy = (jnp.arange(Hf, dtype=jnp.float32) + 0.5) * stride_total
        gx = (jnp.arange(Wf, dtype=jnp.float32) + 0.5) * stride_total
        x1 = proposals[..., 0:1]; y1 = proposals[..., 1:2]
        x2 = proposals[..., 2:3]; y2 = proposals[..., 3:4]
        my = (gy[None, None, :] >= y1) & (gy[None, None, :] <= y2)
        mx = (gx[None, None, :] >= x1) & (gx[None, None, :] <= x2)
        mask = (my[..., :, None] & mx[..., None, :]).astype(jnp.float32)
        mask = mask.reshape(B, self.topk, Hf * Wf)
        mask = mask / jnp.maximum(mask.sum(-1, keepdims=True), 1.0)

        pred = pallas_roi_heads(mask, f.reshape(B, Hf * Wf, Cp),
                                p["fc6"], p["fc7"], p["pred"],
                                5 * self.n_classes)
        pred = pred.reshape(B * self.topk, 5 * self.n_classes)
        cls_logits = pred[:, :self.n_classes]
        box_regs = pred[:, self.n_classes:]

        probs = jax.nn.softmax(cls_logits, axis=-1)
        fg = probs[:, 1:]                                      # drop background
        labels = jnp.argmax(fg, axis=-1) + 1
        scores = jnp.max(fg, axis=-1)
        regs = box_regs.reshape(-1, self.n_classes, 4)
        lidx = jnp.broadcast_to(labels[:, None, None], (labels.shape[0], 1, 4))
        sel = jnp.take_along_axis(regs, lidx, axis=1)[:, 0, :]
        boxes = decode_boxes(proposals.reshape(-1, 4), sel, float(W), float(H),
                             weights=(10.0, 10.0, 5.0, 5.0))

        return (boxes.reshape(B, self.topk, 4),
                scores.reshape(B, self.topk),
                labels.reshape(B, self.topk))

    def __call__(self, x_nchw):
        boxes, scores, labels = self._forward(x_nchw)
        # Single device->host transfer; keep-gather done in numpy.
        boxes, scores, labels = map(np.asarray,
                                    jax.device_get((boxes, scores, labels)))
        results = []
        for b in range(boxes.shape[0]):
            keep = np.nonzero(scores[b] > self.score_thresh)[0]
            results.append({
                "boxes": boxes[b][keep],
                "labels": labels[b][keep],
                "scores": scores[b][keep],
            })
        if self.apply_nms:
            # TODO(synk): torchvision.ops.nms (data-dependent suppression
            # loop) has no clean Pallas equivalent; left unimplemented.
            pass
        return results


if __name__ == "__main__":
    key = jax.random.PRNGKey(0)
    # NCHW input, like the PyTorch module (small synthetic images).
    x = jax.random.normal(key, (2, 3, 32, 32), jnp.float32)

    model = FasterRCNNPallas(n_classes=4, nms_threshold=0.5, score_thresh=0.05)
    dev_out = model._forward(x)
    jax.block_until_ready(dev_out)
    results = model(x)
    assert len(results) == 2 and all("boxes" in d for d in results)
    print("KERNEL_OK")
</pallas_src>

<mosaic_0001>
module attributes {stable_mosaic.version = 11 : i64} {
  func.func @_conv_tap_kernel(%arg0: i32, %arg1: memref<1x1184x128xbf16, #tpu.memory_space<vmem>>, %arg2: memref<9x128x128xbf16, #tpu.memory_space<vmem>>, %arg3: memref<1x128xf32, #tpu.memory_space<vmem>>, %arg4: memref<1x272x128xbf16, #tpu.memory_space<vmem>>, %arg5: memref<272x128xf32, #tpu.memory_space<vmem>>) attributes {dimension_semantics = [#tpu.dimension_semantics<parallel>], iteration_bounds = array<i64: 2>, scalar_prefetch = 0 : i64, scratch_operands = 1 : i64, tpu.core_type = #tpu.core_type<tc>, window_params = [{transform_indices = @transform_0, window_bounds = array<i64: 1, 1184, 128>}, {pipeline_mode = #tpu.pipeline_mode<synchronous>, transform_indices = @transform_1, window_bounds = array<i64: 9, 128, 128>}, {pipeline_mode = #tpu.pipeline_mode<synchronous>, transform_indices = @transform_2, window_bounds = array<i64: 1, 128>}, {transform_indices = @transform_3, window_bounds = array<i64: 1, 272, 128>}]} {
    %c0 = arith.constant 0 : index
    %c0_0 = arith.constant 0 : index
    %c0_1 = arith.constant 0 : index
    %0 = vector.load %arg1[%c0, %c0_0, %c0_1] : memref<1x1184x128xbf16, #tpu.memory_space<vmem>>, vector<1x272x128xbf16>
    %1 = vector.shape_cast %0 : vector<1x272x128xbf16> to vector<272x128xbf16>
    %c0_2 = arith.constant 0 : index
    %c0_3 = arith.constant 0 : index
    %c0_4 = arith.constant 0 : index
    %2 = vector.load %arg2[%c0_2, %c0_3, %c0_4] : memref<9x128x128xbf16, #tpu.memory_space<vmem>>, vector<1x128x128xbf16>
    %3 = vector.shape_cast %2 : vector<1x128x128xbf16> to vector<128x128xbf16>
    %cst = arith.constant dense<0.000000e+00> : vector<272x128xf32>
    %4 = tpu.matmul %1, %3, %cst {dimension_numbers = #tpu.dot_dimension_numbers<[1], [0], [0], [1], [0, 0, 1, 1], [], []>} : vector<272x128xbf16>, vector<128x128xbf16>, vector<272x128xf32> -> vector<272x128xf32>
    %c0_5 = arith.constant 0 : index
    %c0_6 = arith.constant 0 : index
    %5 = vector.load %arg5[%c0_5, %c0_6] : memref<272x128xf32, #tpu.memory_space<vmem>>, vector<272x128xf32>
    tpu.vector_store %arg5[%c0_5, %c0_6], %4 {strides = array<i32>} : memref<272x128xf32, #tpu.memory_space<vmem>>, vector<272x128xf32>,
    %c0_7 = arith.constant 0 : index
    %c296 = arith.constant 296 : index
    %c0_8 = arith.constant 0 : index
    %6 = vector.load %arg1[%c0_7, %c296, %c0_8] : memref<1x1184x128xbf16, #tpu.memory_space<vmem>>, vector<1x272x128xbf16>
    %7 = vector.shape_cast %6 : vector<1x272x128xbf16> to vector<272x128xbf16>
    %c1 = arith.constant 1 : index
    %c0_9 = arith.constant 0 : index
    %c0_10 = arith.constant 0 : index
    %8 = vector.load %arg2[%c1, %c0_9, %c0_10] : memref<9x128x128xbf16, #tpu.memory_space<vmem>>, vector<1x128x128xbf16>
    %9 = vector.shape_cast %8 : vector<1x128x128xbf16> to vector<128x128xbf16>
    %cst_11 = arith.constant dense<0.000000e+00> : vector<272x128xf32>
    %10 = tpu.matmul %7, %9, %cst_11 {dimension_numbers = #tpu.dot_dimension_numbers<[1], [0], [0], [1], [0, 0, 1, 1], [], []>} : vector<272x128xbf16>, vector<128x128xbf16>, vector<272x128xf32> -> vector<272x128xf32>
    %c0_12 = arith.constant 0 : index
    %c0_13 = arith.constant 0 : index
    %11 = vector.load %arg5[%c0_12, %c0_13] : memref<272x128xf32, #tpu.memory_space<vmem>>, vector<272x128xf32>
    %12 = arith.addf %11, %10 : vector<272x128xf32>
    %c0_14 = arith.constant 0 : index
    %c0_15 = arith.constant 0 : index
    %13 = vector.load %arg5[%c0_14, %c0_15] : memref<272x128xf32, #tpu.memory_space<vmem>>, vector<272x128xf32>
    tpu.vector_store %arg5[%c0_14, %c0_15], %12 {strides = array<i32>} : memref<272x128xf32, #tpu.memory_space<vmem>>, vector<272x128xf32>,
    %c0_16 = arith.constant 0 : index
    %c1_17 = arith.constant 1 : index
    %c0_18 = arith.constant 0 : index
    %14 = vector.load %arg1[%c0_16, %c1_17, %c0_18] : memref<1x1184x128xbf16, #tpu.memory_space<vmem>>, vector<1x272x128xbf16>
    %15 = vector.shape_cast %14 : vector<1x272x128xbf16> to vector<272x128xbf16>
    %c2 = arith.constant 2 : index
    %c0_19 = arith.constant 0 : index
    %c0_20 = arith.constant 0 : index
    %16 = vector.load %arg2[%c2, %c0_19, %c0_20] : memref<9x128x128xbf16, #tpu.memory_space<vmem>>, vector<1x128x128xbf16>
    %17 = vector.shape_cast %16 : vector<1x128x128xbf16> to vector<128x128xbf16>
    %cst_21 = arith.constant dense<0.000000e+00> : vector<272x128xf32>
    %18 = tpu.matmul %15, %17, %cst_21 {dimension_numbers = #tpu.dot_dimension_numbers<[1], [0], [0], [1], [0, 0, 1, 1], [], []>} : vector<272x128xbf16>, vector<128x128xbf16>, vector<272x128xf32> -> vector<272x128xf32>
    %c0_22 = arith.constant 0 : index
    %c0_23 = arith.constant 0 : index
    %19 = vector.load %arg5[%c0_22, %c0_23] : memref<272x128xf32, #tpu.memory_space<vmem>>, vector<272x128xf32>
    %20 = arith.addf %19, %18 : vector<272x128xf32>
    %c0_24 = arith.constant 0 : index
    %c0_25 = arith.constant 0 : index
    %21 = vector.load %arg5[%c0_24, %c0_25] : memref<272x128xf32, #tpu.memory_space<vmem>>, vector<272x128xf32>
    tpu.vector_store %arg5[%c0_24, %c0_25], %20 {strides = array<i32>} : memref<272x128xf32, #tpu.memory_space<vmem>>, vector<272x128xf32>,
    %c0_26 = arith.constant 0 : index
    %c592 = arith.constant 592 : index
    %c0_27 = arith.constant 0 : index
    %22 = vector.load %arg1[%c0_26, %c592, %c0_27] : memref<1x1184x128xbf16, #tpu.memory_space<vmem>>, vector<1x272x128xbf16>
    %23 = vector.shape_cast %22 : vector<1x272x128xbf16> to vector<272x128xbf16>
    %c3 = arith.constant 3 : index
    %c0_28 = arith.constant 0 : index
    %c0_29 = arith.constant 0 : index
    %24 = vector.load %arg2[%c3, %c0_28, %c0_29] : memref<9x128x128xbf16, #tpu.memory_space<vmem>>, vector<1x128x128xbf16>
    %25 = vector.shape_cast %24 : vector<1x128x128xbf16> to vector<128x128xbf16>
    %cst_30 = arith.constant dense<0.000000e+00> : vector<272x128xf32>
    %26 = tpu.matmul %23, %25, %cst_30 {dimension_numbers = #tpu.dot_dimension_numbers<[1], [0], [0], [1], [0, 0, 1, 1], [], []>} : vector<272x128xbf16>, vector<128x128xbf16>, vector<272x128xf32> -> vector<272x128xf32>
    %c0_31 = arith.constant 0 : index
    %c0_32 = arith.constant 0 : index
    %27 = vector.load %arg5[%c0_31, %c0_32] : memref<272x128xf32, #tpu.memory_space<vmem>>, vector<272x128xf32>
    %28 = arith.addf %27, %26 : vector<272x128xf32>
    %c0_33 = arith.constant 0 : index
    %c0_34 = arith.constant 0 : index
    %29 = vector.load %arg5[%c0_33, %c0_34] : memref<272x128xf32, #tpu.memory_space<vmem>>, vector<272x128xf32>
    tpu.vector_store %arg5[%c0_33, %c0_34], %28 {strides = array<i32>} : memref<272x128xf32, #tpu.memory_space<vmem>>, vector<272x128xf32>,
    %c0_35 = arith.constant 0 : index
    %c888 = arith.constant 888 : index
    %c0_36 = arith.constant 0 : index
    %30 = vector.load %arg1[%c0_35, %c888, %c0_36] : memref<1x1184x128xbf16, #tpu.memory_space<vmem>>, vector<1x272x128xbf16>
    %31 = vector.shape_cast %30 : vector<1x272x128xbf16> to vector<272x128xbf16>
    %c4 = arith.constant 4 : index
    %c0_37 = arith.constant 0 : index
    %c0_38 = arith.constant 0 : index
    %32 = vector.load %arg2[%c4, %c0_37, %c0_38] : memref<9x128x128xbf16, #tpu.memory_space<vmem>>, vector<1x128x128xbf16>
    %33 = vector.shape_cast %32 : vector<1x128x128xbf16> to vector<128x128xbf16>
    %cst_39 = arith.constant dense<0.000000e+00> : vector<272x128xf32>
    %34 = tpu.matmul %31, %33, %cst_39 {dimension_numbers = #tpu.dot_dimension_numbers<[1], [0], [0], [1], [0, 0, 1, 1], [], []>} : vector<272x128xbf16>, vector<128x128xbf16>, vector<272x128xf32> -> vector<272x128xf32>
    %c0_40 = arith.constant 0 : index
    %c0_41 = arith.constant 0 : index
    %35 = vector.load %arg5[%c0_40, %c0_41] : memref<272x128xf32, #tpu.memory_space<vmem>>, vector<272x128xf32>
    %36 = arith.addf %35, %34 : vector<272x128xf32>
    %c0_42 = arith.constant 0 : index
    %c0_43 = arith.constant 0 : index
    %37 = vector.load %arg5[%c0_42, %c0_43] : memref<272x128xf32, #tpu.memory_space<vmem>>, vector<272x128xf32>
    tpu.vector_store %arg5[%c0_42, %c0_43], %36 {strides = array<i32>} : memref<272x128xf32, #tpu.memory_space<vmem>>, vector<272x128xf32>,
    %c0_44 = arith.constant 0 : index
    %c593 = arith.constant 593 : index
    %c0_45 = arith.constant 0 : index
    %38 = vector.load %arg1[%c0_44, %c593, %c0_45] : memref<1x1184x128xbf16, #tpu.memory_space<vmem>>, vector<1x272x128xbf16>
    %39 = vector.shape_cast %38 : vector<1x272x128xbf16> to vector<272x128xbf16>
    %c5 = arith.constant 5 : index
    %c0_46 = arith.constant 0 : index
    %c0_47 = arith.constant 0 : index
    %40 = vector.load %arg2[%c5, %c0_46, %c0_47] : memref<9x128x128xbf16, #tpu.memory_space<vmem>>, vector<1x128x128xbf16>
    %41 = vector.shape_cast %40 : vector<1x128x128xbf16> to vector<128x128xbf16>
    %cst_48 = arith.constant dense<0.000000e+00> : vector<272x128xf32>
    %42 = tpu.matmul %39, %41, %cst_48 {dimension_numbers = #tpu.dot_dimension_numbers<[1], [0], [0], [1], [0, 0, 1, 1], [], []>} : vector<272x128xbf16>, vector<128x128xbf16>, vector<272x128xf32> -> vector<272x128xf32>
    %c0_49 = arith.constant 0 : index
    %c0_50 = arith.constant 0 : index
    %43 = vector.load %arg5[%c0_49, %c0_50] : memref<272x128xf32, #tpu.memory_space<vmem>>, vector<272x128xf32>
    %44 = arith.addf %43, %42 : vector<272x128xf32>
    %c0_51 = arith.constant 0 : index
    %c0_52 = arith.constant 0 : index
    %45 = vector.load %arg5[%c0_51, %c0_52] : memref<272x128xf32, #tpu.memory_space<vmem>>, vector<272x128xf32>
    tpu.vector_store %arg5[%c0_51, %c0_52], %44 {strides = array<i32>} : memref<272x128xf32, #tpu.memory_space<vmem>>, vector<272x128xf32>,
    %c0_53 = arith.constant 0 : index
    %c17 = arith.constant 17 : index
    %c0_54 = arith.constant 0 : index
    %46 = vector.load %arg1[%c0_53, %c17, %c0_54] : memref<1x1184x128xbf16, #tpu.memory_space<vmem>>, vector<1x272x128xbf16>
    %47 = vector.shape_cast %46 : vector<1x272x128xbf16> to vector<272x128xbf16>
    %c6 = arith.constant 6 : index
    %c0_55 = arith.constant 0 : index
    %c0_56 = arith.constant 0 : index
    %48 = vector.load %arg2[%c6, %c0_55, %c0_56] : memref<9x128x128xbf16, #tpu.memory_space<vmem>>, vector<1x128x128xbf16>
    %49 = vector.shape_cast %48 : vector<1x128x128xbf16> to vector<128x128xbf16>
    %cst_57 = arith.constant dense<0.000000e+00> : vector<272x128xf32>
    %50 = tpu.matmul %47, %49, %cst_57 {dimension_numbers = #tpu.dot_dimension_numbers<[1], [0], [0], [1], [0, 0, 1, 1], [], []>} : vector<272x128xbf16>, vector<128x128xbf16>, vector<272x128xf32> -> vector<272x128xf32>
    %c0_58 = arith.constant 0 : index
    %c0_59 = arith.constant 0 : index
    %51 = vector.load %arg5[%c0_58, %c0_59] : memref<272x128xf32, #tpu.memory_space<vmem>>, vector<272x128xf32>
    %52 = arith.addf %51, %50 : vector<272x128xf32>
    %c0_60 = arith.constant 0 : index
    %c0_61 = arith.constant 0 : index
    %53 = vector.load %arg5[%c0_60, %c0_61] : memref<272x128xf32, #tpu.memory_space<vmem>>, vector<272x128xf32>
    tpu.vector_store %arg5[%c0_60, %c0_61], %52 {strides = array<i32>} : memref<272x128xf32, #tpu.memory_space<vmem>>, vector<272x128xf32>,
    %c0_62 = arith.constant 0 : index
    %c313 = arith.constant 313 : index
    %c0_63 = arith.constant 0 : index
    %54 = vector.load %arg1[%c0_62, %c313, %c0_63] : memref<1x1184x128xbf16, #tpu.memory_space<vmem>>, vector<1x272x128xbf16>
    %55 = vector.shape_cast %54 : vector<1x272x128xbf16> to vector<272x128xbf16>
    %c7 = arith.constant 7 : index
    %c0_64 = arith.constant 0 : index
    %c0_65 = arith.constant 0 : index
    %56 = vector.load %arg2[%c7, %c0_64, %c0_65] : memref<9x128x128xbf16, #tpu.memory_space<vmem>>, vector<1x128x128xbf16>
    %57 = vector.shape_cast %56 : vector<1x128x128xbf16> to vector<128x128xbf16>
    %cst_66 = arith.constant dense<0.000000e+00> : vector<272x128xf32>
    %58 = tpu.matmul %55, %57, %cst_66 {dimension_numbers = #tpu.dot_dimension_numbers<[1], [0], [0], [1], [0, 0, 1, 1], [], []>} : vector<272x128xbf16>, vector<128x128xbf16>, vector<272x128xf32> -> vector<272x128xf32>
    %c0_67 = arith.constant 0 : index
    %c0_68 = arith.constant 0 : index
    %59 = vector.load %arg5[%c0_67, %c0_68] : memref<272x128xf32, #tpu.memory_space<vmem>>, vector<272x128xf32>
    %60 = arith.addf %59, %58 : vector<272x128xf32>
    %c0_69 = arith.constant 0 : index
    %c0_70 = arith.constant 0 : index
    %61 = vector.load %arg5[%c0_69, %c0_70] : memref<272x128xf32, #tpu.memory_space<vmem>>, vector<272x128xf32>
    tpu.vector_store %arg5[%c0_69, %c0_70], %60 {strides = array<i32>} : memref<272x128xf32, #tpu.memory_space<vmem>>, vector<272x128xf32>,
    %c0_71 = arith.constant 0 : index
    %c18 = arith.constant 18 : index
    %c0_72 = arith.constant 0 : index
    %62 = vector.load %arg1[%c0_71, %c18, %c0_72] : memref<1x1184x128xbf16, #tpu.memory_space<vmem>>, vector<1x272x128xbf16>
    %63 = vector.shape_cast %62 : vector<1x272x128xbf16> to vector<272x128xbf16>
    %c8 = arith.constant 8 : index
    %c0_73 = arith.constant 0 : index
    %c0_74 = arith.constant 0 : index
    %64 = vector.load %arg2[%c8, %c0_73, %c0_74] : memref<9x128x128xbf16, #tpu.memory_space<vmem>>, vector<1x128x128xbf16>
    %65 = vector.shape_cast %64 : vector<1x128x128xbf16> to vector<128x128xbf16>
    %cst_75 = arith.constant dense<0.000000e+00> : vector<272x128xf32>
    %66 = tpu.matmul %63, %65, %cst_75 {dimension_numbers = #tpu.dot_dimension_numbers<[1], [0], [0], [1], [0, 0, 1, 1], [], []>} : vector<272x128xbf16>, vector<128x128xbf16>, vector<272x128xf32> -> vector<272x128xf32>
    %c0_76 = arith.constant 0 : index
    %c0_77 = arith.constant 0 : index
    %67 = vector.load %arg5[%c0_76, %c0_77] : memref<272x128xf32, #tpu.memory_space<vmem>>, vector<272x128xf32>
    %68 = arith.addf %67, %66 : vector<272x128xf32>
    %c0_78 = arith.constant 0 : index
    %c0_79 = arith.constant 0 : index
    %69 = vector.load %arg5[%c0_78, %c0_79] : memref<272x128xf32, #tpu.memory_space<vmem>>, vector<272x128xf32>
    tpu.vector_store %arg5[%c0_78, %c0_79], %68 {strides = array<i32>} : memref<272x128xf32, #tpu.memory_space<vmem>>, vector<272x128xf32>,
    %c0_80 = arith.constant 0 : index
    %c0_81 = arith.constant 0 : index
    %70 = vector.load %arg5[%c0_80, %c0_81] : memref<272x128xf32, #tpu.memory_space<vmem>>, vector<272x128xf32>
    %c0_82 = arith.constant 0 : index
    %c0_83 = arith.constant 0 : index
    %71 = vector.load %arg3[%c0_82, %c0_83] : memref<1x128xf32, #tpu.memory_space<vmem>>, vector<1x128xf32>
    %72 = vector.broadcast %71 : vector<1x128xf32> to vector<272x128xf32>
    %73 = arith.addf %70, %72 : vector<272x128xf32>
    %cst_84 = arith.constant 0.000000e+00 : f32
    %74 = vector.broadcast %cst_84 : f32 to vector<272x128xf32>
    %75 = arith.maximumf %73, %74 : vector<272x128xf32>
    %76 = arith.truncf %75 : vector<272x128xf32> to vector<272x128xbf16>
    %c0_85 = arith.constant 0 : index
    %c0_86 = arith.constant 0 : index
    %c0_87 = arith.constant 0 : index
    %77 = vector.load %arg4[%c0_85, %c0_86, %c0_87] : memref<1x272x128xbf16, #tpu.memory_space<vmem>>, vector<1x272x128xbf16>
    %78 = vector.shape_cast %77 : vector<1x272x128xbf16> to vector<272x128xbf16>
    %79 = vector.shape_cast %76 : vector<272x128xbf16> to vector<1x272x128xbf16>
    tpu.vector_store %arg4[%c0_85, %c0_86, %c0_87], %79 {strides = array<i32>} : memref<1x272x128xbf16, #tpu.memory_space<vmem>>, vector<1x272x128xbf16>,
    return
  }
  func.func @transform_0(%arg0: i32) -> (i32, i32, i32) {
    %c0_i32 = arith.constant 0 : i32
    %c0_i32_0 = arith.constant 0 : i32
    %c0_i32_1 = arith.constant 0 : i32
    return %arg0, %c0_i32, %c0_i32_0 : i32, i32, i32
  }
  func.func @transform_1(%arg0: i32) -> (i32, i32, i32) {
    %c0_i32 = arith.constant 0 : i32
    %c0_i32_0 = arith.constant 0 : i32
    %c0_i32_1 = arith.constant 0 : i32
    %c0_i32_2 = arith.constant 0 : i32
    return %c0_i32, %c0_i32_0, %c0_i32_1 : i32, i32, i32
  }
  func.func @transform_2(%arg0: i32) -> (i32, i32) {
    %c0_i32 = arith.constant 0 : i32
    %c0_i32_0 = arith.constant 0 : i32
    %c0_i32_1 = arith.constant 0 : i32
    return %c0_i32, %c0_i32_0 : i32, i32
  }
  func.func @transform_3(%arg0: i32) -> (i32, i32, i32) {
    %c0_i32 = arith.constant 0 : i32
    %c0_i32_0 = arith.constant 0 : i32
    %c0_i32_1 = arith.constant 0 : i32
    return %arg0, %c0_i32, %c0_i32_0 : i32, i32, i32
  }
}

module attributes {stable_mosaic.version = 11 : i64} {
  func.func @_conv_tap_kernel(%arg0: i32, %arg1: memref<1x352x128xbf16, #tpu.memory_space<vmem>>, %arg2: memref<9x128x128xbf16, #tpu.memory_space<vmem>>, %arg3: memref<1x128xf32, #tpu.memory_space<vmem>>, %arg4: memref<1x72x128xbf16, #tpu.memory_space<vmem>>, %arg5: memref<72x128xf32, #tpu.memory_space<vmem>>) attributes {dimension_semantics = [#tpu.dimension_semantics<parallel>], iteration_bounds = array<i64: 2>, scalar_prefetch = 0 : i64, scratch_operands = 1 : i64, tpu.core_type = #tpu.core_type<tc>, window_params = [{transform_indices = @transform_0, window_bounds = array<i64: 1, 352, 128>}, {pipeline_mode = #tpu.pipeline_mode<synchronous>, transform_indices = @transform_1, window_bounds = array<i64: 9, 128, 128>}, {pipeline_mode = #tpu.pipeline_mode<synchronous>, transform_indices = @transform_2, window_bounds = array<i64: 1, 128>}, {transform_indices = @transform_3, window_bounds = array<i64: 1, 72, 128>}]} {
    %c0 = arith.constant 0 : index
    %c0_0 = arith.constant 0 : index
    %c0_1 = arith.constant 0 : index
    %0 = vector.load %arg1[%c0, %c0_0, %c0_1] : memref<1x352x128xbf16, #tpu.memory_space<vmem>>, vector<1x72x128xbf16>
    %1 = vector.shape_cast %0 : vector<1x72x128xbf16> to vector<72x128xbf16>
    %c0_2 = arith.constant 0 : index
    %c0_3 = arith.constant 0 : index
    %c0_4 = arith.constant 0 : index
    %2 = vector.load %arg2[%c0_2, %c0_3, %c0_4] : memref<9x128x128xbf16, #tpu.memory_space<vmem>>, vector<1x128x128xbf16>
    %3 = vector.shape_cast %2 : vector<1x128x128xbf16> to vector<128x128xbf16>
    %cst = arith.constant dense<0.000000e+00> : vector<72x128xf32>
    %4 = tpu.matmul %1, %3, %cst {dimension_numbers = #tpu.dot_dimension_numbers<[1], [0], [0], [1], [0, 0, 1, 1], [], []>} : vector<72x128xbf16>, vector<128x128xbf16>, vector<72x128xf32> -> vector<72x128xf32>
    %c0_5 = arith.constant 0 : index
    %c0_6 = arith.constant 0 : index
    %5 = vector.load %arg5[%c0_5, %c0_6] : memref<72x128xf32, #tpu.memory_space<vmem>>, vector<72x128xf32>
    tpu.vector_store %arg5[%c0_5, %c0_6], %4 {strides = array<i32>} : memref<72x128xf32, #tpu.memory_space<vmem>>, vector<72x128xf32>,
    %c0_7 = arith.constant 0 : index
    %c88 = arith.constant 88 : index
    %c0_8 = arith.constant 0 : index
    %6 = vector.load %arg1[%c0_7, %c88, %c0_8] : memref<1x352x128xbf16, #tpu.memory_space<vmem>>, vector<1x72x128xbf16>
    %7 = vector.shape_cast %6 : vector<1x72x128xbf16> to vector<72x128xbf16>
    %c1 = arith.constant 1 : index
    %c0_9 = arith.constant 0 : index
    %c0_10 = arith.constant 0 : index
    %8 = vector.load %arg2[%c1, %c0_9, %c0_10] : memref<9x128x128xbf16, #tpu.memory_space<vmem>>, vector<1x128x128xbf16>
    %9 = vector.shape_cast %8 : vector<1x128x128xbf16> to vector<128x128xbf16>
    %cst_11 = arith.constant dense<0.000000e+00> : vector<72x128xf32>
    %10 = tpu.matmul %7, %9, %cst_11 {dimension_numbers = #tpu.dot_dimension_numbers<[1], [0], [0], [1], [0, 0, 1, 1], [], []>} : vector<72x128xbf16>, vector<128x128xbf16>, vector<72x128xf32> -> vector<72x128xf32>
    %c0_12 = arith.constant 0 : index
    %c0_13 = arith.constant 0 : index
    %11 = vector.load %arg5[%c0_12, %c0_13] : memref<72x128xf32, #tpu.memory_space<vmem>>, vector<72x128xf32>
    %12 = arith.addf %11, %10 : vector<72x128xf32>
    %c0_14 = arith.constant 0 : index
    %c0_15 = arith.constant 0 : index
    %13 = vector.load %arg5[%c0_14, %c0_15] : memref<72x128xf32, #tpu.memory_space<vmem>>, vector<72x128xf32>
    tpu.vector_store %arg5[%c0_14, %c0_15], %12 {strides = array<i32>} : memref<72x128xf32, #tpu.memory_space<vmem>>, vector<72x128xf32>,
    %c0_16 = arith.constant 0 : index
    %c1_17 = arith.constant 1 : index
    %c0_18 = arith.constant 0 : index
    %14 = vector.load %arg1[%c0_16, %c1_17, %c0_18] : memref<1x352x128xbf16, #tpu.memory_space<vmem>>, vector<1x72x128xbf16>
    %15 = vector.shape_cast %14 : vector<1x72x128xbf16> to vector<72x128xbf16>
    %c2 = arith.constant 2 : index
    %c0_19 = arith.constant 0 : index
    %c0_20 = arith.constant 0 : index
    %16 = vector.load %arg2[%c2, %c0_19, %c0_20] : memref<9x128x128xbf16, #tpu.memory_space<vmem>>, vector<1x128x128xbf16>
    %17 = vector.shape_cast %16 : vector<1x128x128xbf16> to vector<128x128xbf16>
    %cst_21 = arith.constant dense<0.000000e+00> : vector<72x128xf32>
    %18 = tpu.matmul %15, %17, %cst_21 {dimension_numbers = #tpu.dot_dimension_numbers<[1], [0], [0], [1], [0, 0, 1, 1], [], []>} : vector<72x128xbf16>, vector<128x128xbf16>, vector<72x128xf32> -> vector<72x128xf32>
    %c0_22 = arith.constant 0 : index
    %c0_23 = arith.constant 0 : index
    %19 = vector.load %arg5[%c0_22, %c0_23] : memref<72x128xf32, #tpu.memory_space<vmem>>, vector<72x128xf32>
    %20 = arith.addf %19, %18 : vector<72x128xf32>
    %c0_24 = arith.constant 0 : index
    %c0_25 = arith.constant 0 : index
    %21 = vector.load %arg5[%c0_24, %c0_25] : memref<72x128xf32, #tpu.memory_space<vmem>>, vector<72x128xf32>
    tpu.vector_store %arg5[%c0_24, %c0_25], %20 {strides = array<i32>} : memref<72x128xf32, #tpu.memory_space<vmem>>, vector<72x128xf32>,
    %c0_26 = arith.constant 0 : index
    %c176 = arith.constant 176 : index
    %c0_27 = arith.constant 0 : index
    %22 = vector.load %arg1[%c0_26, %c176, %c0_27] : memref<1x352x128xbf16, #tpu.memory_space<vmem>>, vector<1x72x128xbf16>
    %23 = vector.shape_cast %22 : vector<1x72x128xbf16> to vector<72x128xbf16>
    %c3 = arith.constant 3 : index
    %c0_28 = arith.constant 0 : index
    %c0_29 = arith.constant 0 : index
    %24 = vector.load %arg2[%c3, %c0_28, %c0_29] : memref<9x128x128xbf16, #tpu.memory_space<vmem>>, vector<1x128x128xbf16>
    %25 = vector.shape_cast %24 : vector<1x128x128xbf16> to vector<128x128xbf16>
    %cst_30 = arith.constant dense<0.000000e+00> : vector<72x128xf32>
    %26 = tpu.matmul %23, %25, %cst_30 {dimension_numbers = #tpu.dot_dimension_numbers<[1], [0], [0], [1], [0, 0, 1, 1], [], []>} : vector<72x128xbf16>, vector<128x128xbf16>, vector<72x128xf32> -> vector<72x128xf32>
    %c0_31 = arith.constant 0 : index
    %c0_32 = arith.constant 0 : index
    %27 = vector.load %arg5[%c0_31, %c0_32] : memref<72x128xf32, #tpu.memory_space<vmem>>, vector<72x128xf32>
    %28 = arith.addf %27, %26 : vector<72x128xf32>
    %c0_33 = arith.constant 0 : index
    %c0_34 = arith.constant 0 : index
    %29 = vector.load %arg5[%c0_33, %c0_34] : memref<72x128xf32, #tpu.memory_space<vmem>>, vector<72x128xf32>
    tpu.vector_store %arg5[%c0_33, %c0_34], %28 {strides = array<i32>} : memref<72x128xf32, #tpu.memory_space<vmem>>, vector<72x128xf32>,
    %c0_35 = arith.constant 0 : index
    %c264 = arith.constant 264 : index
    %c0_36 = arith.constant 0 : index
    %30 = vector.load %arg1[%c0_35, %c264, %c0_36] : memref<1x352x128xbf16, #tpu.memory_space<vmem>>, vector<1x72x128xbf16>
    %31 = vector.shape_cast %30 : vector<1x72x128xbf16> to vector<72x128xbf16>
    %c4 = arith.constant 4 : index
    %c0_37 = arith.constant 0 : index
    %c0_38 = arith.constant 0 : index
    %32 = vector.load %arg2[%c4, %c0_37, %c0_38] : memref<9x128x128xbf16, #tpu.memory_space<vmem>>, vector<1x128x128xbf16>
    %33 = vector.shape_cast %32 : vector<1x128x128xbf16> to vector<128x128xbf16>
    %cst_39 = arith.constant dense<0.000000e+00> : vector<72x128xf32>
    %34 = tpu.matmul %31, %33, %cst_39 {dimension_numbers = #tpu.dot_dimension_numbers<[1], [0], [0], [1], [0, 0, 1, 1], [], []>} : vector<72x128xbf16>, vector<128x128xbf16>, vector<72x128xf32> -> vector<72x128xf32>
    %c0_40 = arith.constant 0 : index
    %c0_41 = arith.constant 0 : index
    %35 = vector.load %arg5[%c0_40, %c0_41] : memref<72x128xf32, #tpu.memory_space<vmem>>, vector<72x128xf32>
    %36 = arith.addf %35, %34 : vector<72x128xf32>
    %c0_42 = arith.constant 0 : index
    %c0_43 = arith.constant 0 : index
    %37 = vector.load %arg5[%c0_42, %c0_43] : memref<72x128xf32, #tpu.memory_space<vmem>>, vector<72x128xf32>
    tpu.vector_store %arg5[%c0_42, %c0_43], %36 {strides = array<i32>} : memref<72x128xf32, #tpu.memory_space<vmem>>, vector<72x128xf32>,
    %c0_44 = arith.constant 0 : index
    %c177 = arith.constant 177 : index
    %c0_45 = arith.constant 0 : index
    %38 = vector.load %arg1[%c0_44, %c177, %c0_45] : memref<1x352x128xbf16, #tpu.memory_space<vmem>>, vector<1x72x128xbf16>
    %39 = vector.shape_cast %38 : vector<1x72x128xbf16> to vector<72x128xbf16>
    %c5 = arith.constant 5 : index
    %c0_46 = arith.constant 0 : index
    %c0_47 = arith.constant 0 : index
    %40 = vector.load %arg2[%c5, %c0_46, %c0_47] : memref<9x128x128xbf16, #tpu.memory_space<vmem>>, vector<1x128x128xbf16>
    %41 = vector.shape_cast %40 : vector<1x128x128xbf16> to vector<128x128xbf16>
    %cst_48 = arith.constant dense<0.000000e+00> : vector<72x128xf32>
    %42 = tpu.matmul %39, %41, %cst_48 {dimension_numbers = #tpu.dot_dimension_numbers<[1], [0], [0], [1], [0, 0, 1, 1], [], []>} : vector<72x128xbf16>, vector<128x128xbf16>, vector<72x128xf32> -> vector<72x128xf32>
    %c0_49 = arith.constant 0 : index
    %c0_50 = arith.constant 0 : index
    %43 = vector.load %arg5[%c0_49, %c0_50] : memref<72x128xf32, #tpu.memory_space<vmem>>, vector<72x128xf32>
    %44 = arith.addf %43, %42 : vector<72x128xf32>
    %c0_51 = arith.constant 0 : index
    %c0_52 = arith.constant 0 : index
    %45 = vector.load %arg5[%c0_51, %c0_52] : memref<72x128xf32, #tpu.memory_space<vmem>>, vector<72x128xf32>
    tpu.vector_store %arg5[%c0_51, %c0_52], %44 {strides = array<i32>} : memref<72x128xf32, #tpu.memory_space<vmem>>, vector<72x128xf32>,
    %c0_53 = arith.constant 0 : index
    %c9 = arith.constant 9 : index
    %c0_54 = arith.constant 0 : index
    %46 = vector.load %arg1[%c0_53, %c9, %c0_54] : memref<1x352x128xbf16, #tpu.memory_space<vmem>>, vector<1x72x128xbf16>
    %47 = vector.shape_cast %46 : vector<1x72x128xbf16> to vector<72x128xbf16>
    %c6 = arith.constant 6 : index
    %c0_55 = arith.constant 0 : index
    %c0_56 = arith.constant 0 : index
    %48 = vector.load %arg2[%c6, %c0_55, %c0_56] : memref<9x128x128xbf16, #tpu.memory_space<vmem>>, vector<1x128x128xbf16>
    %49 = vector.shape_cast %48 : vector<1x128x128xbf16> to vector<128x128xbf16>
    %cst_57 = arith.constant dense<0.000000e+00> : vector<72x128xf32>
    %50 = tpu.matmul %47, %49, %cst_57 {dimension_numbers = #tpu.dot_dimension_numbers<[1], [0], [0], [1], [0, 0, 1, 1], [], []>} : vector<72x128xbf16>, vector<128x128xbf16>, vector<72x128xf32> -> vector<72x128xf32>
    %c0_58 = arith.constant 0 : index
    %c0_59 = arith.constant 0 : index
    %51 = vector.load %arg5[%c0_58, %c0_59] : memref<72x128xf32, #tpu.memory_space<vmem>>, vector<72x128xf32>
    %52 = arith.addf %51, %50 : vector<72x128xf32>
    %c0_60 = arith.constant 0 : index
    %c0_61 = arith.constant 0 : index
    %53 = vector.load %arg5[%c0_60, %c0_61] : memref<72x128xf32, #tpu.memory_space<vmem>>, vector<72x128xf32>
    tpu.vector_store %arg5[%c0_60, %c0_61], %52 {strides = array<i32>} : memref<72x128xf32, #tpu.memory_space<vmem>>, vector<72x128xf32>,
    %c0_62 = arith.constant 0 : index
    %c97 = arith.constant 97 : index
    %c0_63 = arith.constant 0 : index
    %54 = vector.load %arg1[%c0_62, %c97, %c0_63] : memref<1x352x128xbf16, #tpu.memory_space<vmem>>, vector<1x72x128xbf16>
    %55 = vector.shape_cast %54 : vector<1x72x128xbf16> to vector<72x128xbf16>
    %c7 = arith.constant 7 : index
    %c0_64 = arith.constant 0 : index
    %c0_65 = arith.constant 0 : index
    %56 = vector.load %arg2[%c7, %c0_64, %c0_65] : memref<9x128x128xbf16, #tpu.memory_space<vmem>>, vector<1x128x128xbf16>
    %57 = vector.shape_cast %56 : vector<1x128x128xbf16> to vector<128x128xbf16>
    %cst_66 = arith.constant dense<0.000000e+00> : vector<72x128xf32>
    %58 = tpu.matmul %55, %57, %cst_66 {dimension_numbers = #tpu.dot_dimension_numbers<[1], [0], [0], [1], [0, 0, 1, 1], [], []>} : vector<72x128xbf16>, vector<128x128xbf16>, vector<72x128xf32> -> vector<72x128xf32>
    %c0_67 = arith.constant 0 : index
    %c0_68 = arith.constant 0 : index
    %59 = vector.load %arg5[%c0_67, %c0_68] : memref<72x128xf32, #tpu.memory_space<vmem>>, vector<72x128xf32>
    %60 = arith.addf %59, %58 : vector<72x128xf32>
    %c0_69 = arith.constant 0 : index
    %c0_70 = arith.constant 0 : index
    %61 = vector.load %arg5[%c0_69, %c0_70] : memref<72x128xf32, #tpu.memory_space<vmem>>, vector<72x128xf32>
    tpu.vector_store %arg5[%c0_69, %c0_70], %60 {strides = array<i32>} : memref<72x128xf32, #tpu.memory_space<vmem>>, vector<72x128xf32>,
    %c0_71 = arith.constant 0 : index
    %c10 = arith.constant 10 : index
    %c0_72 = arith.constant 0 : index
    %62 = vector.load %arg1[%c0_71, %c10, %c0_72] : memref<1x352x128xbf16, #tpu.memory_space<vmem>>, vector<1x72x128xbf16>
    %63 = vector.shape_cast %62 : vector<1x72x128xbf16> to vector<72x128xbf16>
    %c8 = arith.constant 8 : index
    %c0_73 = arith.constant 0 : index
    %c0_74 = arith.constant 0 : index
    %64 = vector.load %arg2[%c8, %c0_73, %c0_74] : memref<9x128x128xbf16, #tpu.memory_space<vmem>>, vector<1x128x128xbf16>
    %65 = vector.shape_cast %64 : vector<1x128x128xbf16> to vector<128x128xbf16>
    %cst_75 = arith.constant dense<0.000000e+00> : vector<72x128xf32>
    %66 = tpu.matmul %63, %65, %cst_75 {dimension_numbers = #tpu.dot_dimension_numbers<[1], [0], [0], [1], [0, 0, 1, 1], [], []>} : vector<72x128xbf16>, vector<128x128xbf16>, vector<72x128xf32> -> vector<72x128xf32>
    %c0_76 = arith.constant 0 : index
    %c0_77 = arith.constant 0 : index
    %67 = vector.load %arg5[%c0_76, %c0_77] : memref<72x128xf32, #tpu.memory_space<vmem>>, vector<72x128xf32>
    %68 = arith.addf %67, %66 : vector<72x128xf32>
    %c0_78 = arith.constant 0 : index
    %c0_79 = arith.constant 0 : index
    %69 = vector.load %arg5[%c0_78, %c0_79] : memref<72x128xf32, #tpu.memory_space<vmem>>, vector<72x128xf32>
    tpu.vector_store %arg5[%c0_78, %c0_79], %68 {strides = array<i32>} : memref<72x128xf32, #tpu.memory_space<vmem>>, vector<72x128xf32>,
    %c0_80 = arith.constant 0 : index
    %c0_81 = arith.constant 0 : index
    %70 = vector.load %arg5[%c0_80, %c0_81] : memref<72x128xf32, #tpu.memory_space<vmem>>, vector<72x128xf32>
    %c0_82 = arith.constant 0 : index
    %c0_83 = arith.constant 0 : index
    %71 = vector.load %arg3[%c0_82, %c0_83] : memref<1x128xf32, #tpu.memory_space<vmem>>, vector<1x128xf32>
    %72 = vector.broadcast %71 : vector<1x128xf32> to vector<72x128xf32>
    %73 = arith.addf %70, %72 : vector<72x128xf32>
    %cst_84 = arith.constant 0.000000e+00 : f32
    %74 = vector.broadcast %cst_84 : f32 to vector<72x128xf32>
    %75 = arith.maximumf %73, %74 : vector<72x128xf32>
    %76 = arith.truncf %75 : vector<72x128xf32> to vector<72x128xbf16>
    %c0_85 = arith.constant 0 : index
    %c0_86 = arith.constant 0 : index
    %c0_87 = arith.constant 0 : index
    %77 = vector.load %arg4[%c0_85, %c0_86, %c0_87] : memref<1x72x128xbf16, #tpu.memory_space<vmem>>, vector<1x72x128xbf16>
    %78 = vector.shape_cast %77 : vector<1x72x128xbf16> to vector<72x128xbf16>
    %79 = vector.shape_cast %76 : vector<72x128xbf16> to vector<1x72x128xbf16>
    tpu.vector_store %arg4[%c0_85, %c0_86, %c0_87], %79 {strides = array<i32>} : memref<1x72x128xbf16, #tpu.memory_space<vmem>>, vector<1x72x128xbf16>,
    return
  }
  func.func @transform_0(%arg0: i32) -> (i32, i32, i32) {
    %c0_i32 = arith.constant 0 : i32
    %c0_i32_0 = arith.constant 0 : i32
    %c0_i32_1 = arith.constant 0 : i32
    return %arg0, %c0_i32, %c0_i32_0 : i32, i32, i32
  }
  func.func @transform_1(%arg0: i32) -> (i32, i32, i32) {
    %c0_i32 = arith.constant 0 : i32
    %c0_i32_0 = arith.constant 0 : i32
    %c0_i32_1 = arith.constant 0 : i32
    %c0_i32_2 = arith.constant 0 : i32
    return %c0_i32, %c0_i32_0, %c0_i32_1 : i32, i32, i32
  }
  func.func @transform_2(%arg0: i32) -> (i32, i32) {
    %c0_i32 = arith.constant 0 : i32
    %c0_i32_0 = arith.constant 0 : i32
    %c0_i32_1 = arith.constant 0 : i32
    return %c0_i32, %c0_i32_0 : i32, i32
  }
  func.func @transform_3(%arg0: i32) -> (i32, i32, i32) {
    %c0_i32 = arith.constant 0 : i32
    %c0_i32_0 = arith.constant 0 : i32
    %c0_i32_1 = arith.constant 0 : i32
    return %arg0, %c0_i32, %c0_i32_0 : i32, i32, i32
  }
}

module attributes {stable_mosaic.version = 11 : i64} {
  func.func @_conv_tap_kernel(%arg0: i32, %arg1: memref<1x104x128xbf16, #tpu.memory_space<vmem>>, %arg2: memref<9x128x128xbf16, #tpu.memory_space<vmem>>, %arg3: memref<1x128xf32, #tpu.memory_space<vmem>>, %arg4: memref<1x80x128xbf16, #tpu.memory_space<vmem>>, %arg5: memref<80x128xf32, #tpu.memory_space<vmem>>) attributes {dimension_semantics = [#tpu.dimension_semantics<parallel>], iteration_bounds = array<i64: 2>, scalar_prefetch = 0 : i64, scratch_operands = 1 : i64, tpu.core_type = #tpu.core_type<tc>, window_params = [{transform_indices = @transform_0, window_bounds = array<i64: 1, 104, 128>}, {pipeline_mode = #tpu.pipeline_mode<synchronous>, transform_indices = @transform_1, window_bounds = array<i64: 9, 128, 128>}, {pipeline_mode = #tpu.pipeline_mode<synchronous>, transform_indices = @transform_2, window_bounds = array<i64: 1, 128>}, {transform_indices = @transform_3, window_bounds = array<i64: 1, 80, 128>}]} {
    %c0 = arith.constant 0 : index
    %c0_0 = arith.constant 0 : index
    %c0_1 = arith.constant 0 : index
    %0 = vector.load %arg1[%c0, %c0_0, %c0_1] : memref<1x104x128xbf16, #tpu.memory_space<vmem>>, vector<1x80x128xbf16>
    %1 = vector.shape_cast %0 : vector<1x80x128xbf16> to vector<80x128xbf16>
    %c0_2 = arith.constant 0 : index
    %c0_3 = arith.constant 0 : index
    %c0_4 = arith.constant 0 : index
    %2 = vector.load %arg2[%c0_2, %c0_3, %c0_4] : memref<9x128x128xbf16, #tpu.memory_space<vmem>>, vector<1x128x128xbf16>
    %3 = vector.shape_cast %2 : vector<1x128x128xbf16> to vector<128x128xbf16>
    %cst = arith.constant dense<0.000000e+00> : vector<80x128xf32>
    %4 = tpu.matmul %1, %3, %cst {dimension_numbers = #tpu.dot_dimension_numbers<[1], [0], [0], [1], [0, 0, 1, 1], [], []>} : vector<80x128xbf16>, vector<128x128xbf16>, vector<80x128xf32> -> vector<80x128xf32>
    %c0_5 = arith.constant 0 : index
    %c0_6 = arith.constant 0 : index
    %5 = vector.load %arg5[%c0_5, %c0_6] : memref<80x128xf32, #tpu.memory_space<vmem>>, vector<80x128xf32>
    tpu.vector_store %arg5[%c0_5, %c0_6], %4 {strides = array<i32>} : memref<80x128xf32, #tpu.memory_space<vmem>>, vector<80x128xf32>,
    %c0_7 = arith.constant 0 : index
    %c1 = arith.constant 1 : index
    %c0_8 = arith.constant 0 : index
    %6 = vector.load %arg1[%c0_7, %c1, %c0_8] : memref<1x104x128xbf16, #tpu.memory_space<vmem>>, vector<1x80x128xbf16>
    %7 = vector.shape_cast %6 : vector<1x80x128xbf16> to vector<80x128xbf16>
    %c1_9 = arith.constant 1 : index
    %c0_10 = arith.constant 0 : index
    %c0_11 = arith.constant 0 : index
    %8 = vector.load %arg2[%c1_9, %c0_10, %c0_11] : memref<9x128x128xbf16, #tpu.memory_space<vmem>>, vector<1x128x128xbf16>
    %9 = vector.shape_cast %8 : vector<1x128x128xbf16> to vector<128x128xbf16>
    %cst_12 = arith.constant dense<0.000000e+00> : vector<80x128xf32>
    %10 = tpu.matmul %7, %9, %cst_12 {dimension_numbers = #tpu.dot_dimension_numbers<[1], [0], [0], [1], [0, 0, 1, 1], [], []>} : vector<80x128xbf16>, vector<128x128xbf16>, vector<80x128xf32> -> vector<80x128xf32>
    %c0_13 = arith.constant 0 : index
    %c0_14 = arith.constant 0 : index
    %11 = vector.load %arg5[%c0_13, %c0_14] : memref<80x128xf32, #tpu.memory_space<vmem>>, vector<80x128xf32>
    %12 = arith.addf %11, %10 : vector<80x128xf32>
    %c0_15 = arith.constant 0 : index
    %c0_16 = arith.constant 0 : index
    %13 = vector.load %arg5[%c0_15, %c0_16] : memref<80x128xf32, #tpu.memory_space<vmem>>, vector<80x128xf32>
    tpu.vector_store %arg5[%c0_15, %c0_16], %12 {strides = array<i32>} : memref<80x128xf32, #tpu.memory_space<vmem>>, vector<80x128xf32>,
    %c0_17 = arith.constant 0 : index
    %c2 = arith.constant 2 : index
    %c0_18 = arith.constant 0 : index
    %14 = vector.load %arg1[%c0_17, %c2, %c0_18] : memref<1x104x128xbf16, #tpu.memory_space<vmem>>, vector<1x80x128xbf16>
    %15 = vector.shape_cast %14 : vector<1x80x128xbf16> to vector<80x128xbf16>
    %c2_19 = arith.constant 2 : index
    %c0_20 = arith.constant 0 : index
    %c0_21 = arith.constant 0 : index
    %16 = vector.load %arg2[%c2_19, %c0_20, %c0_21] : memref<9x128x128xbf16, #tpu.memory_space<vmem>>, vector<1x128x128xbf16>
    %17 = vector.shape_cast %16 : vector<1x128x128xbf16> to vector<128x128xbf16>
    %cst_22 = arith.constant dense<0.000000e+00> : vector<80x128xf32>
    %18 = tpu.matmul %15, %17, %cst_22 {dimension_numbers = #tpu.dot_dimension_numbers<[1], [0], [0], [1], [0, 0, 1, 1], [], []>} : vector<80x128xbf16>, vector<128x128xbf16>, vector<80x128xf32> -> vector<80x128xf32>
    %c0_23 = arith.constant 0 : index
    %c0_24 = arith.constant 0 : index
    %19 = vector.load %arg5[%c0_23, %c0_24] : memref<80x128xf32, #tpu.memory_space<vmem>>, vector<80x128xf32>
    %20 = arith.addf %19, %18 : vector<80x128xf32>
    %c0_25 = arith.constant 0 : index
    %c0_26 = arith.constant 0 : index
    %21 = vector.load %arg5[%c0_25, %c0_26] : memref<80x128xf32, #tpu.memory_space<vmem>>, vector<80x128xf32>
    tpu.vector_store %arg5[%c0_25, %c0_26], %20 {strides = array<i32>} : memref<80x128xf32, #tpu.memory_space<vmem>>, vector<80x128xf32>,
    %c0_27 = arith.constant 0 : index
    %c10 = arith.constant 10 : index
    %c0_28 = arith.constant 0 : index
    %22 = vector.load %arg1[%c0_27, %c10, %c0_28] : memref<1x104x128xbf16, #tpu.memory_space<vmem>>, vector<1x80x128xbf16>
    %23 = vector.shape_cast %22 : vector<1x80x128xbf16> to vector<80x128xbf16>
    %c3 = arith.constant 3 : index
    %c0_29 = arith.constant 0 : index
    %c0_30 = arith.constant 0 : index
    %24 = vector.load %arg2[%c3, %c0_29, %c0_30] : memref<9x128x128xbf16, #tpu.memory_space<vmem>>, vector<1x128x128xbf16>
    %25 = vector.shape_cast %24 : vector<1x128x128xbf16> to vector<128x128xbf16>
    %cst_31 = arith.constant dense<0.000000e+00> : vector<80x128xf32>
    %26 = tpu.matmul %23, %25, %cst_31 {dimension_numbers = #tpu.dot_dimension_numbers<[1], [0], [0], [1], [0, 0, 1, 1], [], []>} : vector<80x128xbf16>, vector<128x128xbf16>, vector<80x128xf32> -> vector<80x128xf32>
    %c0_32 = arith.constant 0 : index
    %c0_33 = arith.constant 0 : index
    %27 = vector.load %arg5[%c0_32, %c0_33] : memref<80x128xf32, #tpu.memory_space<vmem>>, vector<80x128xf32>
    %28 = arith.addf %27, %26 : vector<80x128xf32>
    %c0_34 = arith.constant 0 : index
    %c0_35 = arith.constant 0 : index
    %29 = vector.load %arg5[%c0_34, %c0_35] : memref<80x128xf32, #tpu.memory_space<vmem>>, vector<80x128xf32>
    tpu.vector_store %arg5[%c0_34, %c0_35], %28 {strides = array<i32>} : memref<80x128xf32, #tpu.memory_space<vmem>>, vector<80x128xf32>,
    %c0_36 = arith.constant 0 : index
    %c11 = arith.constant 11 : index
    %c0_37 = arith.constant 0 : index
    %30 = vector.load %arg1[%c0_36, %c11, %c0_37] : memref<1x104x128xbf16, #tpu.memory_space<vmem>>, vector<1x80x128xbf16>
    %31 = vector.shape_cast %30 : vector<1x80x128xbf16> to vector<80x128xbf16>
    %c4 = arith.constant 4 : index
    %c0_38 = arith.constant 0 : index
    %c0_39 = arith.constant 0 : index
    %32 = vector.load %arg2[%c4, %c0_38, %c0_39] : memref<9x128x128xbf16, #tpu.memory_space<vmem>>, vector<1x128x128xbf16>
    %33 = vector.shape_cast %32 : vector<1x128x128xbf16> to vector<128x128xbf16>
    %cst_40 = arith.constant dense<0.000000e+00> : vector<80x128xf32>
    %34 = tpu.matmul %31, %33, %cst_40 {dimension_numbers = #tpu.dot_dimension_numbers<[1], [0], [0], [1], [0, 0, 1, 1], [], []>} : vector<80x128xbf16>, vector<128x128xbf16>, vector<80x128xf32> -> vector<80x128xf32>
    %c0_41 = arith.constant 0 : index
    %c0_42 = arith.constant 0 : index
    %35 = vector.load %arg5[%c0_41, %c0_42] : memref<80x128xf32, #tpu.memory_space<vmem>>, vector<80x128xf32>
    %36 = arith.addf %35, %34 : vector<80x128xf32>
    %c0_43 = arith.constant 0 : index
    %c0_44 = arith.constant 0 : index
    %37 = vector.load %arg5[%c0_43, %c0_44] : memref<80x128xf32, #tpu.memory_space<vmem>>, vector<80x128xf32>
    tpu.vector_store %arg5[%c0_43, %c0_44], %36 {strides = array<i32>} : memref<80x128xf32, #tpu.memory_space<vmem>>, vector<80x128xf32>,
    %c0_45 = arith.constant 0 : index
    %c12 = arith.constant 12 : index
    %c0_46 = arith.constant 0 : index
    %38 = vector.load %arg1[%c0_45, %c12, %c0_46] : memref<1x104x128xbf16, #tpu.memory_space<vmem>>, vector<1x80x128xbf16>
    %39 = vector.shape_cast %38 : vector<1x80x128xbf16> to vector<80x128xbf16>
    %c5 = arith.constant 5 : index
    %c0_47 = arith.constant 0 : index
    %c0_48 = arith.constant 0 : index
    %40 = vector.load %arg2[%c5, %c0_47, %c0_48] : memref<9x128x128xbf16, #tpu.memory_space<vmem>>, vector<1x128x128xbf16>
    %41 = vector.shape_cast %40 : vector<1x128x128xbf16> to vector<128x128xbf16>
    %cst_49 = arith.constant dense<0.000000e+00> : vector<80x128xf32>
    %42 = tpu.matmul %39, %41, %cst_49 {dimension_numbers = #tpu.dot_dimension_numbers<[1], [0], [0], [1], [0, 0, 1, 1], [], []>} : vector<80x128xbf16>, vector<128x128xbf16>, vector<80x128xf32> -> vector<80x128xf32>
    %c0_50 = arith.constant 0 : index
    %c0_51 = arith.constant 0 : index
    %43 = vector.load %arg5[%c0_50, %c0_51] : memref<80x128xf32, #tpu.memory_space<vmem>>, vector<80x128xf32>
    %44 = arith.addf %43, %42 : vector<80x128xf32>
    %c0_52 = arith.constant 0 : index
    %c0_53 = arith.constant 0 : index
    %45 = vector.load %arg5[%c0_52, %c0_53] : memref<80x128xf32, #tpu.memory_space<vmem>>, vector<80x128xf32>
    tpu.vector_store %arg5[%c0_52, %c0_53], %44 {strides = array<i32>} : memref<80x128xf32, #tpu.memory_space<vmem>>, vector<80x128xf32>,
    %c0_54 = arith.constant 0 : index
    %c20 = arith.constant 20 : index
    %c0_55 = arith.constant 0 : index
    %46 = vector.load %arg1[%c0_54, %c20, %c0_55] : memref<1x104x128xbf16, #tpu.memory_space<vmem>>, vector<1x80x128xbf16>
    %47 = vector.shape_cast %46 : vector<1x80x128xbf16> to vector<80x128xbf16>
    %c6 = arith.constant 6 : index
    %c0_56 = arith.constant 0 : index
    %c0_57 = arith.constant 0 : index
    %48 = vector.load %arg2[%c6, %c0_56, %c0_57] : memref<9x128x128xbf16, #tpu.memory_space<vmem>>, vector<1x128x128xbf16>
    %49 = vector.shape_cast %48 : vector<1x128x128xbf16> to vector<128x128xbf16>
    %cst_58 = arith.constant dense<0.000000e+00> : vector<80x128xf32>
    %50 = tpu.matmul %47, %49, %cst_58 {dimension_numbers = #tpu.dot_dimension_numbers<[1], [0], [0], [1], [0, 0, 1, 1], [], []>} : vector<80x128xbf16>, vector<128x128xbf16>, vector<80x128xf32> -> vector<80x128xf32>
    %c0_59 = arith.constant 0 : index
    %c0_60 = arith.constant 0 : index
    %51 = vector.load %arg5[%c0_59, %c0_60] : memref<80x128xf32, #tpu.memory_space<vmem>>, vector<80x128xf32>
    %52 = arith.addf %51, %50 : vector<80x128xf32>
    %c0_61 = arith.constant 0 : index
    %c0_62 = arith.constant 0 : index
    %53 = vector.load %arg5[%c0_61, %c0_62] : memref<80x128xf32, #tpu.memory_space<vmem>>, vector<80x128xf32>
    tpu.vector_store %arg5[%c0_61, %c0_62], %52 {strides = array<i32>} : memref<80x128xf32, #tpu.memory_space<vmem>>, vector<80x128xf32>,
    %c0_63 = arith.constant 0 : index
    %c21 = arith.constant 21 : index
    %c0_64 = arith.constant 0 : index
    %54 = vector.load %arg1[%c0_63, %c21, %c0_64] : memref<1x104x128xbf16, #tpu.memory_space<vmem>>, vector<1x80x128xbf16>
    %55 = vector.shape_cast %54 : vector<1x80x128xbf16> to vector<80x128xbf16>
    %c7 = arith.constant 7 : index
    %c0_65 = arith.constant 0 : index
    %c0_66 = arith.constant 0 : index
    %56 = vector.load %arg2[%c7, %c0_65, %c0_66] : memref<9x128x128xbf16, #tpu.memory_space<vmem>>, vector<1x128x128xbf16>
    %57 = vector.shape_cast %56 : vector<1x128x128xbf16> to vector<128x128xbf16>
    %cst_67 = arith.constant dense<0.000000e+00> : vector<80x128xf32>
    %58 = tpu.matmul %55, %57, %cst_67 {dimension_numbers = #tpu.dot_dimension_numbers<[1], [0], [0], [1], [0, 0, 1, 1], [], []>} : vector<80x128xbf16>, vector<128x128xbf16>, vector<80x128xf32> -> vector<80x128xf32>
    %c0_68 = arith.constant 0 : index
    %c0_69 = arith.constant 0 : index
    %59 = vector.load %arg5[%c0_68, %c0_69] : memref<80x128xf32, #tpu.memory_space<vmem>>, vector<80x128xf32>
    %60 = arith.addf %59, %58 : vector<80x128xf32>
    %c0_70 = arith.constant 0 : index
    %c0_71 = arith.constant 0 : index
    %61 = vector.load %arg5[%c0_70, %c0_71] : memref<80x128xf32, #tpu.memory_space<vmem>>, vector<80x128xf32>
    tpu.vector_store %arg5[%c0_70, %c0_71], %60 {strides = array<i32>} : memref<80x128xf32, #tpu.memory_space<vmem>>, vector<80x128xf32>,
    %c0_72 = arith.constant 0 : index
    %c22 = arith.constant 22 : index
    %c0_73 = arith.constant 0 : index
    %62 = vector.load %arg1[%c0_72, %c22, %c0_73] : memref<1x104x128xbf16, #tpu.memory_space<vmem>>, vector<1x80x128xbf16>
    %63 = vector.shape_cast %62 : vector<1x80x128xbf16> to vector<80x128xbf16>
    %c8 = arith.constant 8 : index
    %c0_74 = arith.constant 0 : index
    %c0_75 = arith.constant 0 : index
    %64 = vector.load %arg2[%c8, %c0_74, %c0_75] : memref<9x128x128xbf16, #tpu.memory_space<vmem>>, vector<1x128x128xbf16>
    %65 = vector.shape_cast %64 : vector<1x128x128xbf16> to vector<128x128xbf16>
    %cst_76 = arith.constant dense<0.000000e+00> : vector<80x128xf32>
    %66 = tpu.matmul %63, %65, %cst_76 {dimension_numbers = #tpu.dot_dimension_numbers<[1], [0], [0], [1], [0, 0, 1, 1], [], []>} : vector<80x128xbf16>, vector<128x128xbf16>, vector<80x128xf32> -> vector<80x128xf32>
    %c0_77 = arith.constant 0 : index
    %c0_78 = arith.constant 0 : index
    %67 = vector.load %arg5[%c0_77, %c0_78] : memref<80x128xf32, #tpu.memory_space<vmem>>, vector<80x128xf32>
    %68 = arith.addf %67, %66 : vector<80x128xf32>
    %c0_79 = arith.constant 0 : index
    %c0_80 = arith.constant 0 : index
    %69 = vector.load %arg5[%c0_79, %c0_80] : memref<80x128xf32, #tpu.memory_space<vmem>>, vector<80x128xf32>
    tpu.vector_store %arg5[%c0_79, %c0_80], %68 {strides = array<i32>} : memref<80x128xf32, #tpu.memory_space<vmem>>, vector<80x128xf32>,
    %c0_81 = arith.constant 0 : index
    %c0_82 = arith.constant 0 : index
    %70 = vector.load %arg5[%c0_81, %c0_82] : memref<80x128xf32, #tpu.memory_space<vmem>>, vector<80x128xf32>
    %c0_83 = arith.constant 0 : index
    %c0_84 = arith.constant 0 : index
    %71 = vector.load %arg3[%c0_83, %c0_84] : memref<1x128xf32, #tpu.memory_space<vmem>>, vector<1x128xf32>
    %72 = vector.broadcast %71 : vector<1x128xf32> to vector<80x128xf32>
    %73 = arith.addf %70, %72 : vector<80x128xf32>
    %cst_85 = arith.constant 0.000000e+00 : f32
    %74 = vector.broadcast %cst_85 : f32 to vector<80x128xf32>
    %75 = arith.maximumf %73, %74 : vector<80x128xf32>
    %76 = arith.truncf %75 : vector<80x128xf32> to vector<80x128xbf16>
    %c0_86 = arith.constant 0 : index
    %c0_87 = arith.constant 0 : index
    %c0_88 = arith.constant 0 : index
    %77 = vector.load %arg4[%c0_86, %c0_87, %c0_88] : memref<1x80x128xbf16, #tpu.memory_space<vmem>>, vector<1x80x128xbf16>
    %78 = vector.shape_cast %77 : vector<1x80x128xbf16> to vector<80x128xbf16>
    %79 = vector.shape_cast %76 : vector<80x128xbf16> to vector<1x80x128xbf16>
    tpu.vector_store %arg4[%c0_86, %c0_87, %c0_88], %79 {strides = array<i32>} : memref<1x80x128xbf16, #tpu.memory_space<vmem>>, vector<1x80x128xbf16>,
    return
  }
  func.func @transform_0(%arg0: i32) -> (i32, i32, i32) {
    %c0_i32 = arith.constant 0 : i32
    %c0_i32_0 = arith.constant 0 : i32
    %c0_i32_1 = arith.constant 0 : i32
    return %arg0, %c0_i32, %c0_i32_0 : i32, i32, i32
  }
  func.func @transform_1(%arg0: i32) -> (i32, i32, i32) {
    %c0_i32 = arith.constant 0 : i32
    %c0_i32_0 = arith.constant 0 : i32
    %c0_i32_1 = arith.constant 0 : i32
    %c0_i32_2 = arith.constant 0 : i32
    return %c0_i32, %c0_i32_0, %c0_i32_1 : i32, i32, i32
  }
  func.func @transform_2(%arg0: i32) -> (i32, i32) {
    %c0_i32 = arith.constant 0 : i32
    %c0_i32_0 = arith.constant 0 : i32
    %c0_i32_1 = arith.constant 0 : i32
    return %c0_i32, %c0_i32_0 : i32, i32
  }
  func.func @transform_3(%arg0: i32) -> (i32, i32, i32) {
    %c0_i32 = arith.constant 0 : i32
    %c0_i32_0 = arith.constant 0 : i32
    %c0_i32_1 = arith.constant 0 : i32
    return %arg0, %c0_i32, %c0_i32_0 : i32, i32, i32
  }
}

module attributes {stable_mosaic.version = 11 : i64} {
  func.func @_linear_kernel(%arg0: i32, %arg1: memref<64x128xbf16, #tpu.memory_space<vmem>>, %arg2: memref<128x128xbf16, #tpu.memory_space<vmem>>, %arg3: memref<1x128xf32, #tpu.memory_space<vmem>>, %arg4: memref<64x128xf32, #tpu.memory_space<vmem>>) attributes {dimension_semantics = [#tpu.dimension_semantics<parallel>], iteration_bounds = array<i64: 2>, scalar_prefetch = 0 : i64, scratch_operands = 0 : i64, tpu.core_type = #tpu.core_type<tc>, window_params = [{transform_indices = @transform_0, window_bounds = array<i64: 64, 128>}, {pipeline_mode = #tpu.pipeline_mode<synchronous>, transform_indices = @transform_1, window_bounds = array<i64: 128, 128>}, {pipeline_mode = #tpu.pipeline_mode<synchronous>, transform_indices = @transform_2, window_bounds = array<i64: 1, 128>}, {transform_indices = @transform_3, window_bounds = array<i64: 64, 128>}]} {
    %c0 = arith.constant 0 : index
    %c0_0 = arith.constant 0 : index
    %0 = vector.load %arg1[%c0, %c0_0] : memref<64x128xbf16, #tpu.memory_space<vmem>>, vector<64x128xbf16>
    %c0_1 = arith.constant 0 : index
    %c0_2 = arith.constant 0 : index
    %1 = vector.load %arg2[%c0_1, %c0_2] : memref<128x128xbf16, #tpu.memory_space<vmem>>, vector<128x128xbf16>
    %cst = arith.constant dense<0.000000e+00> : vector<64x128xf32>
    %2 = tpu.matmul %0, %1, %cst {dimension_numbers = #tpu.dot_dimension_numbers<[1], [0], [0], [1], [0, 0, 1, 1], [], []>} : vector<64x128xbf16>, vector<128x128xbf16>, vector<64x128xf32> -> vector<64x128xf32>
    %c0_3 = arith.constant 0 : index
    %c0_4 = arith.constant 0 : index
    %3 = vector.load %arg3[%c0_3, %c0_4] : memref<1x128xf32, #tpu.memory_space<vmem>>, vector<1x128xf32>
    %4 = vector.broadcast %3 : vector<1x128xf32> to vector<64x128xf32>
    %5 = arith.addf %2, %4 : vector<64x128xf32>
    %c0_5 = arith.constant 0 : index
    %c0_6 = arith.constant 0 : index
    %6 = vector.load %arg4[%c0_5, %c0_6] : memref<64x128xf32, #tpu.memory_space<vmem>>, vector<64x128xf32>
    tpu.vector_store %arg4[%c0_5, %c0_6], %5 {strides = array<i32>} : memref<64x128xf32, #tpu.memory_space<vmem>>, vector<64x128xf32>,
    return
  }
  func.func @transform_0(%arg0: i32) -> (i32, i32) {
    %c0_i32 = arith.constant 0 : i32
    %c0_i32_0 = arith.constant 0 : i32
    return %arg0, %c0_i32 : i32, i32
  }
  func.func @transform_1(%arg0: i32) -> (i32, i32) {
    %c0_i32 = arith.constant 0 : i32
    %c0_i32_0 = arith.constant 0 : i32
    %c0_i32_1 = arith.constant 0 : i32
    return %c0_i32, %c0_i32_0 : i32, i32
  }
  func.func @transform_2(%arg0: i32) -> (i32, i32) {
    %c0_i32 = arith.constant 0 : i32
    %c0_i32_0 = arith.constant 0 : i32
    %c0_i32_1 = arith.constant 0 : i32
    return %c0_i32, %c0_i32_0 : i32, i32
  }
  func.func @transform_3(%arg0: i32) -> (i32, i32) {
    %c0_i32 = arith.constant 0 : i32
    %c0_i32_0 = arith.constant 0 : i32
    return %arg0, %c0_i32 : i32, i32
  }
}

module attributes {stable_mosaic.version = 11 : i64} {
  func.func @_roi_head_kernel(%arg0: i32, %arg1: memref<1x8x128xbf16, #tpu.memory_space<vmem>>, %arg2: memref<1x128x128xbf16, #tpu.memory_space<vmem>>, %arg3: memref<128x128xbf16, #tpu.memory_space<vmem>>, %arg4: memref<1x128xf32, #tpu.memory_space<vmem>>, %arg5: memref<128x128xbf16, #tpu.memory_space<vmem>>, %arg6: memref<1x128xf32, #tpu.memory_space<vmem>>, %arg7: memref<128x128xbf16, #tpu.memory_space<vmem>>, %arg8: memref<1x128xf32, #tpu.memory_space<vmem>>, %arg9: memref<1x8x128xf32, #tpu.memory_space<vmem>>) attributes {dimension_semantics = [#tpu.dimension_semantics<parallel>], iteration_bounds = array<i64: 2>, scalar_prefetch = 0 : i64, scratch_operands = 0 : i64, tpu.core_type = #tpu.core_type<tc>, window_params = [{transform_indices = @transform_0, window_bounds = array<i64: 1, 8, 128>}, {transform_indices = @transform_1, window_bounds = array<i64: 1, 128, 128>}, {pipeline_mode = #tpu.pipeline_mode<synchronous>, transform_indices = @transform_2, window_bounds = array<i64: 128, 128>}, {pipeline_mode = #tpu.pipeline_mode<synchronous>, transform_indices = @transform_3, window_bounds = array<i64: 1, 128>}, {pipeline_mode = #tpu.pipeline_mode<synchronous>, transform_indices = @transform_4, window_bounds = array<i64: 128, 128>}, {pipeline_mode = #tpu.pipeline_mode<synchronous>, transform_indices = @transform_5, window_bounds = array<i64: 1, 128>}, {pipeline_mode = #tpu.pipeline_mode<synchronous>, transform_indices = @transform_6, window_bounds = array<i64: 128, 128>}, {pipeline_mode = #tpu.pipeline_mode<synchronous>, transform_indices = @transform_7, window_bounds = array<i64: 1, 128>}, {transform_indices = @transform_8, window_bounds = array<i64: 1, 8, 128>}]} {
    %c0 = arith.constant 0 : index
    %c0_0 = arith.constant 0 : index
    %c0_1 = arith.constant 0 : index
    %0 = vector.load %arg1[%c0, %c0_0, %c0_1] : memref<1x8x128xbf16, #tpu.memory_space<vmem>>, vector<1x8x128xbf16>
    %1 = vector.shape_cast %0 : vector<1x8x128xbf16> to vector<8x128xbf16>
    %c0_2 = arith.constant 0 : index
    %c0_3 = arith.constant 0 : index
    %c0_4 = arith.constant 0 : index
    %2 = vector.load %arg2[%c0_2, %c0_3, %c0_4] : memref<1x128x128xbf16, #tpu.memory_space<vmem>>, vector<1x128x128xbf16>
    %3 = vector.shape_cast %2 : vector<1x128x128xbf16> to vector<128x128xbf16>
    %cst = arith.constant dense<0.000000e+00> : vector<8x128xf32>
    %4 = tpu.matmul %1, %3, %cst {dimension_numbers = #tpu.dot_dimension_numbers<[1], [0], [0], [1], [0, 0, 1, 1], [], []>} : vector<8x128xbf16>, vector<128x128xbf16>, vector<8x128xf32> -> vector<8x128xf32>
    %5 = arith.truncf %4 : vector<8x128xf32> to vector<8x128xbf16>
    %c0_5 = arith.constant 0 : index
    %c0_6 = arith.constant 0 : index
    %6 = vector.load %arg3[%c0_5, %c0_6] : memref<128x128xbf16, #tpu.memory_space<vmem>>, vector<128x128xbf16>
    %cst_7 = arith.constant dense<0.000000e+00> : vector<8x128xf32>
    %7 = tpu.matmul %5, %6, %cst_7 {dimension_numbers = #tpu.dot_dimension_numbers<[1], [0], [0], [1], [0, 0, 1, 1], [], []>} : vector<8x128xbf16>, vector<128x128xbf16>, vector<8x128xf32> -> vector<8x128xf32>
    %c0_8 = arith.constant 0 : index
    %c0_9 = arith.constant 0 : index
    %8 = vector.load %arg4[%c0_8, %c0_9] : memref<1x128xf32, #tpu.memory_space<vmem>>, vector<1x128xf32>
    %9 = vector.broadcast %8 : vector<1x128xf32> to vector<8x128xf32>
    %10 = arith.addf %7, %9 : vector<8x128xf32>
    %cst_10 = arith.constant 0.000000e+00 : f32
    %11 = vector.broadcast %cst_10 : f32 to vector<8x128xf32>
    %12 = arith.maximumf %10, %11 : vector<8x128xf32>
    %13 = arith.truncf %12 : vector<8x128xf32> to vector<8x128xbf16>
    %c0_11 = arith.constant 0 : index
    %c0_12 = arith.constant 0 : index
    %14 = vector.load %arg5[%c0_11, %c0_12] : memref<128x128xbf16, #tpu.memory_space<vmem>>, vector<128x128xbf16>
    %cst_13 = arith.constant dense<0.000000e+00> : vector<8x128xf32>
    %15 = tpu.matmul %13, %14, %cst_13 {dimension_numbers = #tpu.dot_dimension_numbers<[1], [0], [0], [1], [0, 0, 1, 1], [], []>} : vector<8x128xbf16>, vector<128x128xbf16>, vector<8x128xf32> -> vector<8x128xf32>
    %c0_14 = arith.constant 0 : index
    %c0_15 = arith.constant 0 : index
    %16 = vector.load %arg6[%c0_14, %c0_15] : memref<1x128xf32, #tpu.memory_space<vmem>>, vector<1x128xf32>
    %17 = vector.broadcast %16 : vector<1x128xf32> to vector<8x128xf32>
    %18 = arith.addf %15, %17 : vector<8x128xf32>
    %cst_16 = arith.constant 0.000000e+00 : f32
    %19 = vector.broadcast %cst_16 : f32 to vector<8x128xf32>
    %20 = arith.maximumf %18, %19 : vector<8x128xf32>
    %21 = arith.truncf %20 : vector<8x128xf32> to vector<8x128xbf16>
    %c0_17 = arith.constant 0 : index
    %c0_18 = arith.constant 0 : index
    %22 = vector.load %arg7[%c0_17, %c0_18] : memref<128x128xbf16, #tpu.memory_space<vmem>>, vector<128x128xbf16>
    %cst_19 = arith.constant dense<0.000000e+00> : vector<8x128xf32>
    %23 = tpu.matmul %21, %22, %cst_19 {dimension_numbers = #tpu.dot_dimension_numbers<[1], [0], [0], [1], [0, 0, 1, 1], [], []>} : vector<8x128xbf16>, vector<128x128xbf16>, vector<8x128xf32> -> vector<8x128xf32>
    %c0_20 = arith.constant 0 : index
    %c0_21 = arith.constant 0 : index
    %24 = vector.load %arg8[%c0_20, %c0_21] : memref<1x128xf32, #tpu.memory_space<vmem>>, vector<1x128xf32>
    %25 = vector.broadcast %24 : vector<1x128xf32> to vector<8x128xf32>
    %26 = arith.addf %23, %25 : vector<8x128xf32>
    %c0_22 = arith.constant 0 : index
    %c0_23 = arith.constant 0 : index
    %c0_24 = arith.constant 0 : index
    %27 = vector.load %arg9[%c0_22, %c0_23, %c0_24] : memref<1x8x128xf32, #tpu.memory_space<vmem>>, vector<1x8x128xf32>
    %28 = vector.shape_cast %27 : vector<1x8x128xf32> to vector<8x128xf32>
    %29 = vector.shape_cast %26 : vector<8x128xf32> to vector<1x8x128xf32>
    tpu.vector_store %arg9[%c0_22, %c0_23, %c0_24], %29 {strides = array<i32>} : memref<1x8x128xf32, #tpu.memory_space<vmem>>, vector<1x8x128xf32>,
    return
  }
  func.func @transform_0(%arg0: i32) -> (i32, i32, i32) {
    %c0_i32 = arith.constant 0 : i32
    %c0_i32_0 = arith.constant 0 : i32
    %c0_i32_1 = arith.constant 0 : i32
    return %arg0, %c0_i32, %c0_i32_0 : i32, i32, i32
  }
  func.func @transform_1(%arg0: i32) -> (i32, i32, i32) {
    %c0_i32 = arith.constant 0 : i32
    %c0_i32_0 = arith.constant 0 : i32
    %c0_i32_1 = arith.constant 0 : i32
    return %arg0, %c0_i32, %c0_i32_0 : i32, i32, i32
  }
  func.func @transform_2(%arg0: i32) -> (i32, i32) {
    %c0_i32 = arith.constant 0 : i32
    %c0_i32_0 = arith.constant 0 : i32
    %c0_i32_1 = arith.constant 0 : i32
    return %c0_i32, %c0_i32_0 : i32, i32
  }
  func.func @transform_3(%arg0: i32) -> (i32, i32) {
    %c0_i32 = arith.constant 0 : i32
    %c0_i32_0 = arith.constant 0 : i32
    %c0_i32_1 = arith.constant 0 : i32
    return %c0_i32, %c0_i32_0 : i32, i32
  }
  func.func @transform_4(%arg0: i32) -> (i32, i32) {
    %c0_i32 = arith.constant 0 : i32
    %c0_i32_0 = arith.constant 0 : i32
    %c0_i32_1 = arith.constant 0 : i32
    return %c0_i32, %c0_i32_0 : i32, i32
  }
  func.func @transform_5(%arg0: i32) -> (i32, i32) {
    %c0_i32 = arith.constant 0 : i32
    %c0_i32_0 = arith.constant 0 : i32
    %c0_i32_1 = arith.constant 0 : i32
    return %c0_i32, %c0_i32_0 : i32, i32
  }
  func.func @transform_6(%arg0: i32) -> (i32, i32) {
    %c0_i32 = arith.constant 0 : i32
    %c0_i32_0 = arith.constant 0 : i32
    %c0_i32_1 = arith.constant 0 : i32
    return %c0_i32, %c0_i32_0 : i32, i32
  }
  func.func @transform_7(%arg0: i32) -> (i32, i32) {
    %c0_i32 = arith.constant 0 : i32
    %c0_i32_0 = arith.constant 0 : i32
    %c0_i32_1 = arith.constant 0 : i32
    return %c0_i32, %c0_i32_0 : i32, i32
  }
  func.func @transform_8(%arg0: i32) -> (i32, i32, i32) {
    %c0_i32 = arith.constant 0 : i32
    %c0_i32_0 = arith.constant 0 : i32
    %c0_i32_1 = arith.constant 0 : i32
    return %arg0, %c0_i32, %c0_i32_0 : i32, i32, i32
  }
}

</mosaic_0001>

<bundles_post_ra>
// kernel: _forward_core.5
= control target key start
LH: loop header
LB: loop body
LE: loop exit
PB: predicated region body
PF: predicated region fallthrough
CT: control target
= control target key end

     0   :  { %s5948_s12 = smov 0   ;;  %s7010_s0 = inlined_call_operand.vmem [shape: bf16[2,1184,128], index: 0, kind: input, shape index: {}]   ;;  %s7011_s1 = inlined_call_operand.vmem [shape: bf16[9,128,128], index: 1, kind: input, shape index: {}]   ;;  %s7012_s2 = inlined_call_operand.vmem [shape: f32[1,128], index: 2, kind: input, shape index: {}]   ;;  %s7013_s3 = inlined_call_operand.vmem [shape: bf16[2,272,128], index: 3, kind: output, shape index: {}]  }
   0x1 LB: > { %s4521_s13 = sadd.s32 4294967295, %s5926_s12   ;;  %p4525_p0 = scmp.ge.s32.totalorder %s5926_s12, 1  ;;  %s5926_s12 = sphi %s5948_s12, %s13_s12  }
   0x2   : > { %p137_p1 = scmp.lt.s32.totalorder %s5926_s12, 3 }
   0x4   : > { %p138_p2 = pnand %p4525_p0, %p137_p1 }
   0x6   : > { %141 = sbr.rel (%p138_p2) target bundleno = 805 (0x325), region = 32 }
   0xb   : > { %v5582_v0 = vld [vmem:[%s7011_s1 + $0x38] sm:$0xff]  ;;  %v5581_v1 = vld [vmem:[%s7011_s1 + $0x30] sm:$0xff]  ;;  %v5580_v2 = vld [vmem:[%s7011_s1 + $0x28] sm:$0xff]  ;;  %p161_p3 = scmp.lt.s32.totalorder %s4521_s13, 1  ;;  %vm1036_vm0 = vsmask.f32 7424 }
   0xc   : > { %371 = vmatpush.bf16.msra.mxu0 %v5582_v0  ;;  %5884 = vmatpush.bf16.msra.mxu1 %v5582_v0  ;;  %v5579_v3 = vld [vmem:[%s7011_s1 + $0x20] sm:$0xff]  ;;  %v5578_v4 = vld [vmem:[%s7011_s1 + $0x18] sm:$0xff]  ;;  %v5577_v5 = vld [vmem:[%s7011_s1 + $0x10] sm:$0xff]  ;;  %vm3995_vm1 = vcmask 1046528  }
   0xd   : > { %5886 = vmatpush.bf16.msra.mxu3 %v5582_v0  ;;  %5885 = vmatpush.bf16.msra.mxu2 %v5582_v0  ;;  %s7023_s13 = smov (!%p161_p3, %s4521_s13), 1  ;;  %v5576_v6 = vld [vmem:[%s7011_s1 + $0x8] sm:$0xff]  ;;  %v5575_v7 = vld [vmem:[%s7011_s1] sm:$0xff]  ;;  %v5607_v8 = vld [vmem:[%s7011_s1 + $0x78] sm:$0xff] }
   0xe   : > { %s5908_s28 = smul.u32 592, %s7023_s13  ;;  %v5657_v9 = vld [vmem:[%s7011_s1 + $0xf8] sm:$0xff]  ;;  %v5606_v14 = vld [vmem:[%s7011_s1 + $0x70] sm:$0xff]  ;;  %v5605_v18 = vld [vmem:[%s7011_s1 + $0x68] sm:$0xff] }
   0xf   : > { %v5682_v10 = vld [vmem:[%s7011_s1 + $0x138] sm:$0xff]  ;;  %v5656_v15 = vld [vmem:[%s7011_s1 + $0xf0] sm:$0xff]  ;;  %v5655_v20 = vld [vmem:[%s7011_s1 + $0xe8] sm:$0xff]  ;;  %s5909_s19 = smul.u32 136, %s7023_s13 }
  0x10   : > { %372 = vmatpush.bf16.msra.mxu0 %v5581_v1  ;;  %5887 = vmatpush.bf16.msra.mxu1 %v5581_v1  ;;  %s5990_s6 = scalar_lea.vmem %s7010_s0, %s5908_s28  ;;  %v5681_v16 = vld [vmem:[%s7011_s1 + $0x130] sm:$0xff]  ;;  %v5632_v19 = vld [vmem:[%s7011_s1 + $0xb8] sm:$0xff]  ;;  %v5680_v21 = vld [vmem:[%s7011_s1 + $0x128] sm:$0xff] }
  0x11   : > { %5889 = vmatpush.bf16.msra.mxu3 %v5581_v1  ;;  %5888 = vmatpush.bf16.msra.mxu2 %v5581_v1  ;;  %v5558_v11 = vld [vmem:[%s5990_s6] sm:$0xff]  ;;  %v5563_v12 = vld [vmem:[%s5990_s6 + $0x28] sm:$0xff]  ;;  %v5568_v17 = vld [vmem:[%s5990_s6 + $0x50] sm:$0xff]  ;;  %s6767_s21 = scalar_lea.vmem %s7013_s3, %s5909_s19 }
  0x12   : > { %v5570_v13 = vld [vmem:[%s5990_s6 + $0x60] sm:$0xff]  ;;  %v5631_v22 = vld [vmem:[%s7011_s1 + $0xb0] sm:$0xff]  ;;  %v5630_v26 = vld [vmem:[%s7011_s1 + $0xa8] sm:$0xff] }
  0x13   : > { %v5604_v23 = vld [vmem:[%s7011_s1 + $0x60] sm:$0xff]  ;;  %v5603_v27 = vld [vmem:[%s7011_s1 + $0x58] sm:$0xff]  ;;  %v5559_v29 = vld [vmem:[%s5990_s6 + $0x8] sm:$0xff] }
  0x14   : > { %373 = vmatpush.bf16.msra.mxu0 %v5580_v2  ;;  %5890 = vmatpush.bf16.msra.mxu1 %v5580_v2  ;;  %v5654_v24 = vld [vmem:[%s7011_s1 + $0xe0] sm:$0xff]  ;;  %v5653_v28 = vld [vmem:[%s7011_s1 + $0xd8] sm:$0xff]  ;;  %v5564_v30 = vld [vmem:[%s5990_s6 + $0x30] sm:$0xff] }
  0x15   : > { %5892 = vmatpush.bf16.msra.mxu3 %v5580_v2  ;;  %5891 = vmatpush.bf16.msra.mxu2 %v5580_v2  ;;  %v5679_v25 = vld [vmem:[%s7011_s1 + $0x120] sm:$0xff]  ;;  %v5571_v31 = vld [vmem:[%s5990_s6 + $0x68] sm:$0xff]  ;;  %v5678_v32 = vld [vmem:[%s7011_s1 + $0x118] sm:$0xff] }
  0x16   : > { %v5652_v33 = vld [vmem:[%s7011_s1 + $0xd0] sm:$0xff]  ;;  %v5629_v34 = vld [vmem:[%s7011_s1 + $0xa0] sm:$0xff]  ;;  %v5569_v36 = vld [vmem:[%s5990_s6 + $0x58] sm:$0xff] }
  0x17   : > { %v5602_v35 = vld [vmem:[%s7011_s1 + $0x50] sm:$0xff]  ;;  %v5651_v38 = vld [vmem:[%s7011_s1 + $0xc8] sm:$0xff]  ;;  %v5628_v39 = vld [vmem:[%s7011_s1 + $0x98] sm:$0xff] }
  0x18   : > { %374 = vmatpush.bf16.msra.mxu0 %v5579_v3  ;;  %5893 = vmatpush.bf16.msra.mxu1 %v5579_v3  ;;  %v5677_v37 = vld [vmem:[%s7011_s1 + $0x110] sm:$0xff]  ;;  %v5601_v40 = vld [vmem:[%s7011_s1 + $0x48] sm:$0xff]  ;;  %v5565_v43 = vld [vmem:[%s5990_s6 + $0x38] sm:$0xff] }
  0x19   : > { %5895 = vmatpush.bf16.msra.mxu3 %v5579_v3  ;;  %5894 = vmatpush.bf16.msra.mxu2 %v5579_v3  ;;  %v5627_v41 = vld [vmem:[%s7011_s1 + $0x90] sm:$0xff]  ;;  %v5626_v45 = vld [vmem:[%s7011_s1 + $0x88] sm:$0xff]  ;;  %v5608_v46 = vld [vmem:[%s5990_s6] sm:$0xff] }
  0x1a   : > { %v5560_v42 = vld [vmem:[%s5990_s6 + $0x10] sm:$0xff]  ;;  %v5609_v47 = vld [vmem:[%s5990_s6 + $0x8] sm:$0xff]  ;;  %v1040_v48 = vshll.u32 %v5608_v46, 16  ;;  %v5625_v49 = vld [vmem:[%s7011_s1 + $0x80] sm:$0xff]  ;;  %v1038_v51 = vshrl.u32 %v5608_v46, 16 }
  0x1b   : > { %v5572_v44 = vld [vmem:[%s5990_s6 + $0x70] sm:$0xff]  ;;  %v5676_v50 = vld [vmem:[%s7011_s1 + $0x108] sm:$0xff]  ;;  %v5650_v52 = vld [vmem:[%s7011_s1 + $0xc0] sm:$0xff]  ;;  %v1045_v54 = vshll.u32 %v5609_v47, 16  ;;  %v1049_v3 = vshrl.u32 %v5609_v47, 16 }
  0x1c   : > { %375 = vmatpush.bf16.msra.mxu0 %v5578_v4  ;;  %5896 = vmatpush.bf16.msra.mxu1 %v5578_v4  ;;  %v1042_v53 = vrot.slane %v1040_v48, 1  ;;  %v5600_v55 = vld [vmem:[%s7011_s1 + $0x40] sm:$0xff]  ;;  %v5732_v56 = vld [vmem:[%s7011_s1 + $0x1b8] sm:$0xff]  ;;  %v5610_v0 = vld [vmem:[%s5990_s6 + $0x10] sm:$0xff] }
  0x1d   : > { %5898 = vmatpush.bf16.msra.mxu3 %v5578_v4  ;;  %5897 = vmatpush.bf16.msra.mxu2 %v5578_v4  ;;  %v5675_v57 = vld [vmem:[%s7011_s1 + $0x100] sm:$0xff]  ;;  %v1047_v59 = vrot.slane %v1045_v54, 1  ;;  %v5561_v61 = vld [vmem:[%s5990_s6 + $0x18] sm:$0xff]  ;;  %v5755_v47 = vld [vmem:[%s7011_s1 + $0x1e8] sm:$0xff] }
  0x1e   : > { %v1043_v58 = vor.u32 %v1042_v53, %v1038_v51  ;;  %v5566_v62 = vld [vmem:[%s5990_s6 + $0x40] sm:$0xff]  ;;  %v5573_v63 = vld [vmem:[%s5990_s6 + $0x78] sm:$0xff]  ;;  %v5780_v54 = vld [vmem:[%s7011_s1 + $0x228] sm:$0xff] }
  0x1f   : > { %v5757_v1 = vld [vmem:[%s7011_s1 + $0x1f8] sm:$0xff] }
  0x20   : > { %376 = vmatpush.bf16.msra.mxu0 %v5577_v5  ;;  %5899 = vmatpush.bf16.msra.mxu1 %v5577_v5  ;;  %v1048_v60 = vsel %vm1036_vm0, %v1043_v58, %v1047_v59  ;;  %v5707_v2 = vld [vmem:[%s7011_s1 + $0x178] sm:$0xff] }
  0x21   : > { %5901 = vmatpush.bf16.msra.mxu3 %v5577_v5  ;;  %5900 = vmatpush.bf16.msra.mxu2 %v5577_v5  ;;  %v5782_v4 = vld [vmem:[%s7011_s1 + $0x238] sm:$0xff]  ;;  %v1053_v5 = vshll.u32 %v5610_v0, 16 }
  0x22   : > { %v5661_v53 = vld [vmem:[%s5990_s6 + $0x1d4] sm:$0xff] }
  0x23   : > { %v5615_v58 = vld [vmem:[%s5990_s6 + $0x38] sm:$0xff] }
  0x24   : > { %377 = vmatpush.bf16.msra.mxu0 %v5576_v6  ;;  %5902 = vmatpush.bf16.msra.mxu1 %v5576_v6 }
  0x25   : > { %5904 = vmatpush.bf16.msra.mxu3 %v5576_v6  ;;  %5903 = vmatpush.bf16.msra.mxu2 %v5576_v6  ;;  %v1051_v6 = vor.u32 %v1049_v3, %v1047_v59 }
  0x28   : > { %378 = vmatpush.bf16.msra.mxu0 %v5575_v7  ;;  %5905 = vmatpush.bf16.msra.mxu1 %v5575_v7 }
  0x29   : > { %5907 = vmatpush.bf16.msra.mxu3 %v5575_v7  ;;  %5906 = vmatpush.bf16.msra.mxu2 %v5575_v7  ;;  %v1055_v7 = vrot.slane %v1053_v5, 1  ;;  %v5587_v5 = vld [vmem:[%s5990_s6 + $0xb4] sm:$0xff] }
  0x2b   : > { %379 = vmatmul.bf16.vlgmr.msra.gmra.mxu0 %v5558_v11  ;;  %404 = vmatmul.bf16.vlgmr.msra.gmra.mxu1 %v5563_v12  ;;  %v5574_v11 = vld [vmem:[%s5990_s6 + $0x80] sm:$0xff]  ;;  %v5611_v12 = vld [vmem:[%s5990_s6 + $0x18] sm:$0xff] }
  0x2c   : > { %700 = vmatpush.bf16.msrb.mxu1 %v5607_v8  ;;  %2036 = vmatpush.bf16.msrb.mxu0 %v5682_v10  ;;  %v1056_v8 = vsel %vm1036_vm0, %v1051_v6, %v1055_v7  ;;  %v5567_v10 = vld [vmem:[%s5990_s6 + $0x48] sm:$0xff]  ;;  %v5662_v6 = vld [vmem:[%s5990_s6 + $0x1dc] sm:$0xff] }
  0x2d   : > { %1639 = vmatpush.bf16.msrb.mxu3 %v5657_v9  ;;  %429 = vmatmul.bf16.vlgmr.msra.gmra.mxu2 %v5568_v17  ;;  %v5562_v9 = vld [vmem:[%s5990_s6 + $0x20] sm:$0xff] }
  0x2e   : > { %439 = vmatmul.bf16.vlgmr.msra.gmra.mxu3 %v5570_v13  ;;  %1242 = vmatpush.bf16.msrb.mxu2 %v5632_v19  ;;  %v1057_v13 = vshrl.u32 %v5610_v0, 16  ;;  %v5658_v19 = vld [vmem:[%s5990_s6 + $0x1bc] sm:$0xff] }
  0x30   : > { %701 = vmatpush.bf16.msrb.mxu1 %v5606_v14  ;;  %2037 = vmatpush.bf16.msrb.mxu0 %v5681_v16  ;;  %v1061_v14 = vshll.u32 %v5611_v12, 16 }
  0x31   : > { %1640 = vmatpush.bf16.msrb.mxu3 %v5656_v15  ;;  %v1059_v15 = vor.u32 %v1057_v13, %v1055_v7 }
  0x32   : > { %1243 = vmatpush.bf16.msrb.mxu2 %v5631_v22  ;;  %v1063_v16 = vrot.slane %v1061_v14, 1  ;;  %v5731_v22 = vld [vmem:[%s7011_s1 + $0x1b0] sm:$0xff] }
  0x34   : > { %702 = vmatpush.bf16.msrb.mxu1 %v5605_v18  ;;  %2038 = vmatpush.bf16.msrb.mxu0 %v5680_v21  ;;  %v1064_v17 = vsel %vm1036_vm0, %v1059_v15, %v1063_v16  ;;  %v5583_v18 = vld [vmem:[%s5990_s6 + $0x94] sm:$0xff]  ;;  %v5612_v21 = vld [vmem:[%s5990_s6 + $0x20] sm:$0xff] }
  0x35   : > { %1641 = vmatpush.bf16.msrb.mxu3 %v5655_v20  ;;  %v5633_v20 = vld [vmem:[%s5990_s6 + $0x128] sm:$0xff]  ;;  %v5729_v15 = vld [vmem:[%s7011_s1 + $0x1a0] sm:$0xff] }
  0x36   : > { %1244 = vmatpush.bf16.msrb.mxu2 %v5630_v26  ;;  %v1069_v26 = vshll.u32 %v5612_v21, 16 }
  0x38   : > { %703 = vmatpush.bf16.msrb.mxu1 %v5604_v23  ;;  %2039 = vmatpush.bf16.msrb.mxu0 %v5679_v25  ;;  %v5756_v23 = vld [vmem:[%s7011_s1 + $0x1f0] sm:$0xff]  ;;  %v1065_v25 = vshrl.u32 %v5611_v12, 16  ;;  %v1097_v12 = vshrl.u32 %v5615_v58, 16 }
  0x39   : > { %1642 = vmatpush.bf16.msrb.mxu3 %v5654_v24  ;;  %v5706_v24 = vld [vmem:[%s7011_s1 + $0x170] sm:$0xff] }
  0x3a   : > { %1245 = vmatpush.bf16.msrb.mxu2 %v5629_v34  ;;  %v5613_v34 = vld [vmem:[%s5990_s6 + $0x28] sm:$0xff] }
  0x3b   : > { %384 = vmatmul.bf16.gmra.mxu0 %v5559_v29  ;;  %409 = vmatmul.bf16.gmra.mxu1 %v5564_v30  ;;  %v1071_v29 = vrot.slane %v1069_v26, 1  ;;  %v5663_v26 = vld [vmem:[%s5990_s6 + $0x1e4] sm:$0xff] }
  0x3c   : > { %704 = vmatpush.bf16.msrb.mxu1 %v5603_v27  ;;  %2040 = vmatpush.bf16.msrb.mxu0 %v5678_v32  ;;  %v5781_v27 = vld [vmem:[%s7011_s1 + $0x230] sm:$0xff]  ;;  %v5659_v32 = vld [vmem:[%s5990_s6 + $0x1c4] sm:$0xff] }
  0x3d   : > { %1643 = vmatpush.bf16.msrb.mxu3 %v5653_v28  ;;  %434 = vmatmul.bf16.gmra.mxu2 %v5569_v36  ;;  %v1067_v28 = vor.u32 %v1065_v25, %v1063_v16  ;;  %v1077_v36 = vshll.u32 %v5613_v34, 16  ;;  %v5588_v25 = vld [vmem:[%s5990_s6 + $0xbc] sm:$0xff] }
  0x3e   : > { %444 = vmatmul.bf16.gmra.mxu3 %v5571_v31  ;;  %1246 = vmatpush.bf16.msrb.mxu2 %v5628_v39  ;;  %v5584_v31 = vld [vmem:[%s5990_s6 + $0x9c] sm:$0xff] }
  0x3f   : > { %v1072_v30 = vsel %vm1036_vm0, %v1067_v28, %v1071_v29 }
  0x40   : > { %705 = vmatpush.bf16.msrb.mxu1 %v5602_v35  ;;  %2041 = vmatpush.bf16.msrb.mxu0 %v5677_v37  ;;  %v1073_v35 = vshrl.u32 %v5612_v21, 16  ;;  %v5704_v21 = vld [vmem:[%s7011_s1 + $0x160] sm:$0xff] }
  0x41   : > { %1644 = vmatpush.bf16.msrb.mxu3 %v5652_v33  ;;  %v5634_v33 = vld [vmem:[%s5990_s6 + $0x130] sm:$0xff] }
  0x42   : > { %1247 = vmatpush.bf16.msrb.mxu2 %v5627_v41  ;;  %v1075_v37 = vor.u32 %v1073_v35, %v1071_v29  ;;  %v5660_v41 = vld [vmem:[%s5990_s6 + $0x1cc] sm:$0xff] }
  0x43   : > { %v5638_v29 = vld [vmem:[%s5990_s6 + $0x150] sm:$0xff] }
  0x44   : > { %706 = vmatpush.bf16.msrb.mxu1 %v5601_v40  ;;  %2042 = vmatpush.bf16.msrb.mxu0 %v5676_v50  ;;  %v5585_v40 = vld [vmem:[%s5990_s6 + $0xa4] sm:$0xff] }
  0x45   : > { %1645 = vmatpush.bf16.msrb.mxu3 %v5651_v38  ;;  %v1079_v38 = vrot.slane %v1077_v36, 1  ;;  %v5705_v50 = vld [vmem:[%s7011_s1 + $0x168] sm:$0xff] }
  0x46   : > { %1248 = vmatpush.bf16.msrb.mxu2 %v5626_v45  ;;  %v1081_v45 = vshrl.u32 %v5613_v34, 16 }
  0x47   : > { %v1080_v39 = vsel %vm1036_vm0, %v1075_v37, %v1079_v38 }
  0x48   : > { %707 = vmatpush.bf16.msrb.mxu1 %v5600_v55  ;;  %2043 = vmatpush.bf16.msrb.mxu0 %v5675_v57  ;;  %v1083_v48 = vor.u32 %v1081_v45, %v1079_v38  ;;  %v5636_v57 = vld [vmem:[%s5990_s6 + $0x140] sm:$0xff] }
  0x49   : > { %1646 = vmatpush.bf16.msrb.mxu3 %v5650_v52  ;;  %v5586_v52 = vld [vmem:[%s5990_s6 + $0xac] sm:$0xff] }
  0x4a   : > { %1249 = vmatpush.bf16.msrb.mxu2 %v5625_v49 }
  0x4b   : > { %389 = vmatmul.bf16.gmra.mxu0 %v5560_v42  ;;  %414 = vmatmul.bf16.gmra.mxu1 %v5565_v43  ;;  %v5635_v42 = vld [vmem:[%s5990_s6 + $0x138] sm:$0xff]  ;;  %v5614_v43 = vld [vmem:[%s5990_s6 + $0x30] sm:$0xff] }
  0x4c   : > { %2577 = vmatpush.bf16.msra.mxu1 %v5707_v2  ;;  %4096 = vmatpush.bf16.msra.mxu0 %v5782_v4  ;;  %v1085_v46 = vshll.u32 %v5614_v43, 16  ;;  %v1089_v59 = vshrl.u32 %v5614_v43, 16  ;;  %v5589_v43 = vld [vmem:[%s5990_s6 + $0xc4] sm:$0xff] }
  0x4d   : > { %1250 = vmatmul.bf16.vlgmr.msrb.gmra.mxu2 %v1048_v60  ;;  %3659 = vmatpush.bf16.msra.mxu3 %v5757_v1  ;;  %v1093_v60 = vshll.u32 %v5615_v58, 16 }
  0x4e   : > { %449 = vmatmul.bf16.gmra.mxu3 %v5572_v44  ;;  %3118 = vmatpush.bf16.msra.mxu2 %v5732_v56  ;;  %v5730_v44 = vld [vmem:[%s7011_s1 + $0x1a8] sm:$0xff]  ;;  %v1087_v49 = vrot.slane %v1085_v46, 1 }
  0x50   : > { %2578 = vmatpush.bf16.msra.mxu1 %v5706_v24  ;;  %4097 = vmatpush.bf16.msra.mxu0 %v5781_v27  ;;  %v1088_v51 = vsel %vm1036_vm0, %v1083_v48, %v1087_v49  ;;  %v5618_v48 = vld [vmem:[%s5990_s6 + $0x50] sm:$0xff] }
  0x51   : > { %3660 = vmatpush.bf16.msra.mxu3 %v5756_v23 }
  0x52   : > { %3119 = vmatpush.bf16.msra.mxu2 %v5731_v22 }
  0x54   : > { %2579 = vmatpush.bf16.msra.mxu1 %v5705_v50  ;;  %4098 = vmatpush.bf16.msra.mxu0 %v5780_v54  ;;  %v1117_v50 = vshll.u32 %v5618_v48, 16 }
  0x55   : > { %3661 = vmatpush.bf16.msra.mxu3 %v5755_v47  ;;  %v5639_v47 = vld [vmem:[%s5990_s6 + $0x158] sm:$0xff] }
  0x56   : > { %3120 = vmatpush.bf16.msra.mxu2 %v5730_v44  ;;  %v5664_v44 = vld [vmem:[%s5990_s6 + $0x1ec] sm:$0xff]  ;;  %v1119_v54 = vrot.slane %v1117_v50, 1 }
  0x58   : > { %2580 = vmatpush.bf16.msra.mxu1 %v5704_v21 }
  0x5a   : > { %3121 = vmatpush.bf16.msra.mxu2 %v5729_v15  ;;  %v5619_v15 = vld [vmem:[%s5990_s6 + $0x58] sm:$0xff] }
  0x5b   : > { %394 = vmatmul.bf16.gmra.mxu0 %v5561_v61  ;;  %419 = vmatmul.bf16.gmra.mxu1 %v5566_v62  ;;  %v1091_v62 = vor.u32 %v1089_v59, %v1087_v49  ;;  %v1129_v50 = vshrl.u32 %v5619_v15, 16 }
  0x5d   : > { %1255 = vmatmul.bf16.gmra.mxu2 %v1056_v8 }
  0x5e   : > { %454 = vmatmul.bf16.gmra.mxu3 %v5573_v63  ;;  %v1095_v63 = vrot.slane %v1093_v60, 1  ;;  %v5728_v60 = vld [vmem:[%s7011_s1 + $0x198] sm:$0xff] }
  0x5f   : > { %3122 = vmatpush.bf16.msra.mxu2 %v5728_v60 }
  0x60   : > { %v1096_v2 = vsel %vm1036_vm0, %v1091_v62, %v1095_v63  ;;  %v1099_v16 = vor.u32 %v1097_v12, %v1095_v63  ;;  %v5753_v62 = vld [vmem:[%s7011_s1 + $0x1d8] sm:$0xff] }
  0x61   : > { %v5703_v63 = vld [vmem:[%s7011_s1 + $0x158] sm:$0xff] }
  0x62   : > { %2581 = vmatpush.bf16.msra.mxu1 %v5703_v63 }
  0x6b   : > { %399 = vmatmul.bf16.gmra.mxu0 %v5562_v9  ;;  %424 = vmatmul.bf16.gmra.mxu1 %v5567_v10  ;;  %v5637_v9 = vld [vmem:[%s5990_s6 + $0x148] sm:$0xff]  ;;  %v5616_v10 = vld [vmem:[%s5990_s6 + $0x40] sm:$0xff] }
  0x6c   : > { %v1101_v13 = vshll.u32 %v5616_v10, 16 }
  0x6d   : > { %1260 = vmatmul.bf16.gmra.mxu2 %v1064_v17 }
  0x6e   : > { %459 = vmatmul.bf16.gmra.mxu3 %v5574_v11  ;;  %v1103_v17 = vrot.slane %v1101_v13, 1  ;;  %v5640_v13 = vld [vmem:[%s5990_s6 + $0x160] sm:$0xff] }
  0x70   : > { %v1104_v22 = vsel %vm1036_vm0, %v1099_v16, %v1103_v17  ;;  %v5778_v16 = vld [vmem:[%s7011_s1 + $0x218] sm:$0xff] }
  0x7b   : > { %708 = vmatmul.bf16.vlgmr.msrb.gmra.mxu1 %v5583_v18  ;;  %2044 = vmatmul.bf16.vlgmr.msrb.gmra.mxu0 %v5658_v19 }
  0x7d   : > { %1265 = vmatmul.bf16.gmra.mxu2 %v1072_v30  ;;  %v5779_v30 = vld [vmem:[%s7011_s1 + $0x220] sm:$0xff] }
  0x7e   : > { %1647 = vmatmul.bf16.vlgmr.msrb.gmra.mxu3 %v5633_v20  ;;  %v5754_v20 = vld [vmem:[%s7011_s1 + $0x1e0] sm:$0xff]  ;;  %4099 = vmatpush.bf16.msra.mxu0 %v5779_v30 }
  0x7f   : > { %3662 = vmatpush.bf16.msra.mxu3 %v5754_v20  ;;  %v1125_v20 = vshll.u32 %v5619_v15, 16  ;;  %v5752_v15 = vld [vmem:[%s7011_s1 + $0x1d0] sm:$0xff] }
  0x82   : > { %4100 = vmatpush.bf16.msra.mxu0 %v5778_v16 }
  0x83   : > { %3663 = vmatpush.bf16.msra.mxu3 %v5753_v62 }
  0x87   : > { %3664 = vmatpush.bf16.msra.mxu3 %v5752_v15 }
  0x8b   : > { %713 = vmatmul.bf16.gmra.mxu1 %v5584_v31  ;;  %2049 = vmatmul.bf16.gmra.mxu0 %v5659_v32  ;;  %v5617_v31 = vld [vmem:[%s5990_s6 + $0x48] sm:$0xff] }
  0x8c   : > { %v1109_v34 = vshll.u32 %v5617_v31, 16  ;;  %v1113_v49 = vshrl.u32 %v5617_v31, 16 }
  0x8d   : > { %1270 = vmatmul.bf16.gmra.mxu2 %v1080_v39 }
  0x8e   : > { %1652 = vmatmul.bf16.gmra.mxu3 %v5634_v33  ;;  %v1105_v33 = vshrl.u32 %v5616_v10, 16  ;;  %v1111_v37 = vrot.slane %v1109_v34, 1 }
  0x90   : > { %v1107_v36 = vor.u32 %v1105_v33, %v1103_v17  ;;  %v1121_v17 = vshrl.u32 %v5618_v48, 16 }
  0x9b   : > { %718 = vmatmul.bf16.gmra.mxu1 %v5585_v40  ;;  %2054 = vmatmul.bf16.gmra.mxu0 %v5660_v41  ;;  %v1112_v40 = vsel %vm1036_vm0, %v1107_v36, %v1111_v37  ;;  %v5591_v36 = vld [vmem:[%s5990_s6 + $0xd4] sm:$0xff] }
  0x9d   : > { %1275 = vmatmul.bf16.gmra.mxu2 %v1088_v51 }
  0x9e   : > { %1657 = vmatmul.bf16.gmra.mxu3 %v5635_v42 }
  0xa8   : > { %v6165_v55 = vpop.f32.mrf.mxu0  ;;  %v6167_v56 = vpop.f32.mrf.mxu1 }
  0xab   : > { %723 = vmatmul.bf16.gmra.mxu1 %v5586_v52  ;;  %2059 = vmatmul.bf16.gmra.mxu0 %v5661_v53  ;;  %v1115_v53 = vor.u32 %v1113_v49, %v1111_v37  ;;  %v5666_v37 = vld [vmem:[%s5990_s6 + $0x1fc] sm:$0xff] }
  0xac   : > { %v5620_v49 = vld [vmem:[%s5990_s6 + $0x60] sm:$0xff] }
  0xad   : > { %1280 = vmatmul.bf16.gmra.mxu2 %v1096_v2  ;;  %v1120_v59 = vsel %vm1036_vm0, %v1115_v53, %v1119_v54  ;;  %v1133_v53 = vshll.u32 %v5620_v49, 16 }
  0xae   : > { %1662 = vmatmul.bf16.gmra.mxu3 %v5636_v57 }
  0xaf   : > { %v1135_v62 = vrot.slane %v1133_v53, 1  ;;  %v1137_v53 = vshrl.u32 %v5620_v49, 16 }
  0xb0   : > { %v6173_v0 = vpop.f32.mrf.mxu0  ;;  %v6175_v1 = vpop.f32.mrf.mxu1 }
  0xb1   : > { %v6171_v61 = vpop.f32.mrf.mxu3  ;;  %v6178_v3 = vpop.f32.mrf.mxu2 }
  0xb8   : > { %v6184_v7 = vpop.f32.mrf.mxu0  ;;  %v6186_v8 = vpop.f32.mrf.mxu1 }
  0xb9   : > { %v6180_v4 = vpop.f32.mrf.mxu3  ;;  %v6190_v11 = vpop.f32.mrf.mxu2 }
  0xbb   : > { %728 = vmatmul.bf16.gmra.mxu1 %v5587_v5  ;;  %2064 = vmatmul.bf16.gmra.mxu0 %v5662_v6  ;;  %v5590_v6 = vld [vmem:[%s5990_s6 + $0xcc] sm:$0xff] }
  0xbd   : > { %1285 = vmatmul.bf16.gmra.mxu2 %v1104_v22 }
  0xbe   : > { %1667 = vmatmul.bf16.gmra.mxu3 %v5637_v9  ;;  %v5665_v9 = vld [vmem:[%s5990_s6 + $0x1f4] sm:$0xff] }
  0xc0   : > { %v6197_v18 = vpop.f32.mrf.mxu0  ;;  %v6199_v19 = vpop.f32.mrf.mxu1 }
  0xc1   : > { %v6192_v14 = vpop.f32.mrf.mxu3  ;;  %v6208_v23 = vpop.f32.mrf.mxu2 }
  0xc8   : > { %v6214_v27 = vpop.f32.mrf.mxu0  ;;  %v6216_v28 = vpop.f32.mrf.mxu1 }
  0xc9   : > { %v6210_v24 = vpop.f32.mrf.mxu3  ;;  %v6223_v32 = vpop.f32.mrf.mxu2 }
  0xcb   : > { %733 = vmatmul.bf16.gmra.mxu1 %v5588_v25  ;;  %2069 = vmatmul.bf16.gmra.mxu0 %v5663_v26  ;;  %v1123_v25 = vor.u32 %v1121_v17, %v1119_v54  ;;  %v1127_v26 = vrot.slane %v1125_v20, 1 }
  0xcd   : > { %1290 = vmatmul.bf16.gmra.mxu2 %v1112_v40  ;;  %v1128_v31 = vsel %vm1036_vm0, %v1123_v25, %v1127_v26  ;;  %v1131_v60 = vor.u32 %v1129_v50, %v1127_v26  ;;  %v5592_v25 = vld [vmem:[%s5990_s6 + $0xdc] sm:$0xff]  ;;  %v5667_v26 = vld [vmem:[%s5990_s6 + $0x204] sm:$0xff]  ;;  %v5777_v50 = vld [vmem:[%s7011_s1 + $0x210] sm:$0xff] }
  0xce   : > { %1672 = vmatmul.bf16.gmra.mxu3 %v5638_v29  ;;  %4101 = vmatpush.bf16.msra.mxu0 %v5777_v50 }
  0xd0   : > { %v6227_v38 = vpop.f32.mrf.mxu0  ;;  %v6229_v39 = vpop.f32.mrf.mxu1 }
  0xd1   : > { %v6225_v35 = vpop.f32.mrf.mxu3  ;;  %v1251_v41 = vpop.f32.mrf.mxu2 }
  0xd8   : > { %v6236_v45 = vpop.f32.mrf.mxu0  ;;  %v6238_v46 = vpop.f32.mrf.mxu1 }
  0xd9   : > { %v6232_v42 = vpop.f32.mrf.mxu3  ;;  %v6242_v51 = vpop.f32.mrf.mxu2 }
  0xdb   : > { %738 = vmatmul.bf16.gmra.mxu1 %v5589_v43  ;;  %2074 = vmatmul.bf16.gmra.mxu0 %v5664_v44  ;;  %v5641_v44 = vld [vmem:[%s5990_s6 + $0x168] sm:$0xff] }
  0xdd   : > { %1295 = vmatmul.bf16.gmra.mxu2 %v1120_v59 }
  0xde   : > { %1677 = vmatmul.bf16.gmra.mxu3 %v5639_v47 }
  0xe0   : > { %v6246_v57 = vpop.f32.mrf.mxu0  ;;  %v6248_v58 = vpop.f32.mrf.mxu1 }
  0xe1   : > { %v6244_v52 = vpop.f32.mrf.mxu3  ;;  %v6260_v2 = vpop.f32.mrf.mxu2 }
  0xe8   : > { %v6266_v10 = vpop.f32.mrf.mxu0  ;;  %v6268_v12 = vpop.f32.mrf.mxu1 }
  0xe9   : > { %v6262_v5 = vpop.f32.mrf.mxu3  ;;  %v6275_v21 = vpop.f32.mrf.mxu2 }
  0xeb   : > { %743 = vmatmul.bf16.gmra.mxu1 %v5590_v6  ;;  %2079 = vmatmul.bf16.gmra.mxu0 %v5665_v9 }
  0xed   : > { %1300 = vmatmul.bf16.gmra.mxu2 %v1128_v31 }
  0xee   : > { %1682 = vmatmul.bf16.gmra.mxu3 %v5640_v13 }
  0xf0   : > { %v6279_v29 = vpop.f32.mrf.mxu0  ;;  %v6281_v30 = vpop.f32.mrf.mxu1 }
  0xf1   : > { %v6277_v22 = vpop.f32.mrf.mxu3  ;;  %v6284_v33 = vpop.f32.mrf.mxu2 }
  0xf8   : > { %v709_v40 = vpop.f32.mrf.mxu1  ;;  %v2045_v43 = vpop.f32.mrf.mxu0 }
  0xf9   : > { %v6286_v34 = vpop.f32.mrf.mxu3  ;;  %v828_v47 = vadd.f32 %v709_v40, %v6165_v55  ;;  %v6293_v54 = vpop.f32.mrf.mxu2  ;;  %v1136_v55 = vsel %vm1036_vm0, %v1131_v60, %v1135_v62  ;;  %v5642_v40 = vld [vmem:[%s5990_s6 + $0x170] sm:$0xff] }
  0xfb   : > { %748 = vmatmul.bf16.gmra.mxu1 %v5591_v36  ;;  %2084 = vmatmul.bf16.gmra.mxu0 %v5666_v37  ;;  %v1370_v48 = vadd.f32 %v1251_v41, %v828_v47  ;;  %v5727_v41 = vld [vmem:[%s7011_s1 + $0x190] sm:$0xff] }
  0xfc   : > { %3123 = vmatpush.bf16.msra.mxu2 %v5727_v41 }
  0xfd   : > { %1305 = vmatmul.bf16.gmra.mxu2 %v1136_v55 }
  0xfe   : > { %1687 = vmatmul.bf16.gmra.mxu3 %v5641_v44 }
 0x100   : > { %v711_v6 = vpop.f32.mrf.mxu1  ;;  %v2047_v9 = vpop.f32.mrf.mxu0 }
 0x101   : > { %v1648_v59 = vpop.f32.mrf.mxu3  ;;  %v829_v13 = vadd.f32 %v711_v6, %v6173_v0  ;;  %v6306_v0 = vpop.f32.mrf.mxu2 }
 0x102   : > { %v1767_v63 = vadd.f32 %v1648_v59, %v1370_v48  ;;  %v5621_v48 = vld [vmem:[%s5990_s6 + $0x68] sm:$0xff] }
 0x103   : > { %v1371_v17 = vadd.f32 %v6242_v51, %v829_v13  ;;  %v1141_v59 = vshll.u32 %v5621_v48, 16 }
 0x104   : > { %v6303_v16 = vadd.f32 %v2045_v43, %v1767_v63  ;;  %v5702_v43 = vld [vmem:[%s7011_s1 + $0x150] sm:$0xff]  ;;  %v1139_v63 = vor.u32 %v1137_v53, %v1135_v62 }
 0x105   : > { %2582 = vmatpush.bf16.msra.mxu1 %v5702_v43  ;;  %v1143_v6 = vrot.slane %v1141_v59, 1  ;;  %v5668_v62 = vld [vmem:[%s5990_s6 + $0x20c] sm:$0xff] }
 0x107   : > { %v1144_v41 = vsel %vm1036_vm0, %v1139_v63, %v1143_v6 }
 0x108   : > { %v714_v36 = vpop.f32.mrf.mxu1  ;;  %v2050_v37 = vpop.f32.mrf.mxu0 }
 0x109   : > { %v1650_v20 = vpop.f32.mrf.mxu3  ;;  %v830_v44 = vadd.f32 %v714_v36, %v6184_v7  ;;  %v6322_v60 = vpop.f32.mrf.mxu2 }
 0x10a   : > { %v1768_v31 = vadd.f32 %v1650_v20, %v1371_v17 }
 0x10b   : > { %753 = vmatmul.bf16.gmra.mxu1 %v5592_v25  ;;  %2089 = vmatmul.bf16.gmra.mxu0 %v5667_v26  ;;  %v1372_v47 = vadd.f32 %v6260_v2, %v830_v44  ;;  %v5593_v25 = vld [vmem:[%s5990_s6 + $0xe4] sm:$0xff]  ;;  %v5622_v44 = vld [vmem:[%s5990_s6 + $0x70] sm:$0xff] }
 0x10c   : > { %v6315_v51 = vadd.f32 %v2047_v9, %v1768_v31 }
 0x10d   : > { %1310 = vmatmul.bf16.gmra.mxu2 %v1144_v41 }
 0x10e   : > { %1692 = vmatmul.bf16.gmra.mxu3 %v5642_v40  ;;  %v5643_v40 = vld [vmem:[%s5990_s6 + $0x178] sm:$0xff] }
 0x110   : > { %v716_v13 = vpop.f32.mrf.mxu1  ;;  %v2052_v2 = vpop.f32.mrf.mxu0 }
 0x111   : > { %v1653_v7 = vpop.f32.mrf.mxu3  ;;  %v831_v55 = vadd.f32 %v716_v13, %v6197_v18  ;;  %v6329_v17 = vpop.f32.mrf.mxu2 }
 0x112   : > { %v1769_v9 = vadd.f32 %v1653_v7, %v1372_v47  ;;  %v1149_v47 = vshll.u32 %v5622_v44, 16 }
 0x113   : > { %v1373_v49 = vadd.f32 %v6275_v21, %v831_v55  ;;  %v1145_v21 = vshrl.u32 %v5621_v48, 16 }
 0x114   : > { %v6326_v15 = vadd.f32 %v2050_v37, %v1769_v9  ;;  %v1151_v7 = vrot.slane %v1149_v47, 1 }
 0x115   : > { %v1147_v59 = vor.u32 %v1145_v21, %v1143_v6  ;;  %v1153_v21 = vshrl.u32 %v5622_v44, 16 }
 0x118   : > { %v719_v31 = vpop.f32.mrf.mxu1  ;;  %v2055_v36 = vpop.f32.mrf.mxu0 }
 0x119   : > { %v1655_v20 = vpop.f32.mrf.mxu3  ;;  %v832_v43 = vadd.f32 %v719_v31, %v6214_v27  ;;  %v6339_v50 = vpop.f32.mrf.mxu2  ;;  %v5751_v31 = vld [vmem:[%s7011_s1 + $0x1c8] sm:$0xff] }
 0x11a   : > { %v1770_v26 = vadd.f32 %v1655_v20, %v1373_v49  ;;  %v5594_v49 = vld [vmem:[%s5990_s6 + $0xec] sm:$0xff]  ;;  %v5669_v20 = vld [vmem:[%s5990_s6 + $0x214] sm:$0xff]  ;;  %3665 = vmatpush.bf16.msra.mxu3 %v5751_v31 }
 0x11b   : > { %758 = vmatmul.bf16.gmra.mxu1 %v5593_v25  ;;  %2094 = vmatmul.bf16.gmra.mxu0 %v5668_v62  ;;  %v1374_v37 = vadd.f32 %v6284_v33, %v832_v43  ;;  %v5726_v33 = vld [vmem:[%s7011_s1 + $0x188] sm:$0xff] }
 0x11c   : > { %v6335_v18 = vadd.f32 %v2052_v2, %v1770_v26  ;;  %v1152_v2 = vsel %vm1036_vm0, %v1147_v59, %v1151_v7  ;;  %3124 = vmatpush.bf16.msra.mxu2 %v5726_v33  ;;  %v5644_v26 = vld [vmem:[%s5990_s6 + $0x180] sm:$0xff]  ;;  %v1155_v59 = vor.u32 %v1153_v21, %v1151_v7  ;;  %v5645_v31 = vld [vmem:[%s5990_s6 + $0x188] sm:$0xff] }
 0x11d   : > { %1315 = vmatmul.bf16.gmra.mxu2 %v1152_v2 }
 0x11e   : > { %1697 = vmatmul.bf16.gmra.mxu3 %v5643_v40 }
 0x120   : > { %v721_v9 = vpop.f32.mrf.mxu1  ;;  %v2057_v27 = vpop.f32.mrf.mxu0 }
 0x121   : > { %v1658_v53 = vpop.f32.mrf.mxu3  ;;  %v833_v13 = vadd.f32 %v721_v9, %v6227_v38  ;;  %v6349_v6 = vpop.f32.mrf.mxu2 }
 0x122   : > { %v1771_v63 = vadd.f32 %v1658_v53, %v1374_v37  ;;  %v5623_v37 = vld [vmem:[%s5990_s6 + $0x78] sm:$0xff] }
 0x123   : > { %v1375_v55 = vadd.f32 %v6293_v54, %v833_v13  ;;  %v5701_v54 = vld [vmem:[%s7011_s1 + $0x148] sm:$0xff]  ;;  %v1157_v47 = vshll.u32 %v5623_v37, 16 }
 0x124   : > { %v6346_v48 = vadd.f32 %v2055_v36, %v1771_v63  ;;  %2583 = vmatpush.bf16.msra.mxu1 %v5701_v54  ;;  %v5624_v54 = vld [vmem:[%s5990_s6 + $0x80] sm:$0xff] }
 0x125   : > { %v1159_v63 = vrot.slane %v1157_v47, 1 }
 0x127   : > { %v1160_v44 = vsel %vm1036_vm0, %v1155_v59, %v1159_v63 }
 0x128   : > { %v724_v38 = vpop.f32.mrf.mxu1  ;;  %v2060_v62 = vpop.f32.mrf.mxu0 }
 0x129   : > { %v1660_v41 = vpop.f32.mrf.mxu3  ;;  %v834_v36 = vadd.f32 %v724_v38, %v6236_v45  ;;  %v6365_v53 = vpop.f32.mrf.mxu2 }
 0x12a   : > { %v1772_v25 = vadd.f32 %v1660_v41, %v1375_v55 }
 0x12b   : > { %763 = vmatmul.bf16.gmra.mxu1 %v5594_v49  ;;  %2099 = vmatmul.bf16.gmra.mxu0 %v5669_v20  ;;  %v1376_v43 = vadd.f32 %v6306_v0, %v834_v36  ;;  %v5776_v0 = vld [vmem:[%s7011_s1 + $0x208] sm:$0xff]  ;;  %v5595_v49 = vld [vmem:[%s5990_s6 + $0xf4] sm:$0xff]  ;;  %v5670_v20 = vld [vmem:[%s5990_s6 + $0x21c] sm:$0xff] }
 0x12c   : > { %v6361_v40 = vadd.f32 %v2057_v27, %v1772_v25  ;;  %4102 = vmatpush.bf16.msra.mxu0 %v5776_v0 }
 0x12d   : > { %1320 = vmatmul.bf16.gmra.mxu2 %v1160_v44 }
 0x12e   : > { %1702 = vmatmul.bf16.gmra.mxu3 %v5644_v26 }
 0x130   : > { %v726_v13 = vpop.f32.mrf.mxu1  ;;  %v2062_v27 = vpop.f32.mrf.mxu0 }
 0x131   : > { %v1663_v45 = vpop.f32.mrf.mxu3  ;;  %v835_v2 = vadd.f32 %v726_v13, %v6246_v57  ;;  %v6375_v7 = vpop.f32.mrf.mxu2 }
 0x132   : > { %v1773_v9 = vadd.f32 %v1663_v45, %v1376_v43  ;;  %v1165_v43 = vshll.u32 %v5624_v54, 16 }
 0x133   : > { %v1377_v55 = vadd.f32 %v6322_v60, %v835_v2  ;;  %v1161_v60 = vshrl.u32 %v5623_v37, 16 }
 0x134   : > { %v6372_v33 = vadd.f32 %v2060_v62, %v1773_v9  ;;  %v1167_v59 = vrot.slane %v1165_v43, 1  ;;  %v5700_v43 = vld [vmem:[%s7011_s1 + $0x140] sm:$0xff] }
 0x135   : > { %v1163_v45 = vor.u32 %v1161_v60, %v1159_v63  ;;  %v5671_v63 = vld [vmem:[%s5990_s6 + $0x224] sm:$0xff]  ;;  %2584 = vmatpush.bf16.msra.mxu1 %v5700_v43 }
 0x138   : > { %v729_v38 = vpop.f32.mrf.mxu1  ;;  %v2065_v26 = vpop.f32.mrf.mxu0 }
 0x139   : > { %v1665_v41 = vpop.f32.mrf.mxu3  ;;  %v836_v57 = vadd.f32 %v729_v38, %v6266_v10  ;;  %v6385_v21 = vpop.f32.mrf.mxu2  ;;  %v930_v38 = vld [vmem:[%s5990_s6 + $0x88] sm:$0x1] }
 0x13a   : > { %v1774_v25 = vadd.f32 %v1665_v41, %v1377_v55  ;;  %v5596_v55 = vld [vmem:[%s5990_s6 + $0xfc] sm:$0xff] }
 0x13b   : > { %768 = vmatmul.bf16.gmra.mxu1 %v5595_v49  ;;  %2104 = vmatmul.bf16.gmra.mxu0 %v5670_v20  ;;  %v1378_v62 = vadd.f32 %v6329_v17, %v836_v57  ;;  %v1168_v17 = vsel %vm1036_vm0, %v1163_v45, %v1167_v59 }
 0x13c   : > { %v6381_v36 = vadd.f32 %v2062_v27, %v1774_v25  ;;  %v5646_v25 = vld [vmem:[%s5990_s6 + $0x190] sm:$0xff] }
 0x13d   : > { %1325 = vmatmul.bf16.gmra.mxu2 %v1168_v17 }
 0x13e   : > { %1707 = vmatmul.bf16.gmra.mxu3 %v5645_v31  ;;  %v1017_v31 = vunpack.c.l.b16 %v930_v38 }
 0x140   : > { %v731_v10 = vpop.f32.mrf.mxu1  ;;  %v2067_v13 = vpop.f32.mrf.mxu0  ;;  %v1035_v60 = vpack.c.b16 %v1017_v31, %v1017_v31  ;;  %v5708_v31 = vld [vmem:[%s5990_s6 + $0x8] sm:$0xff] }
 0x141   : > { %v1668_v47 = vpop.f32.mrf.mxu3  ;;  %v837_v27 = vadd.f32 %v731_v10, %v6279_v29  ;;  %v6392_v2 = vpop.f32.mrf.mxu2  ;;  %v5725_v29 = vld [vmem:[%s7011_s1 + $0x180] sm:$0xff]  ;;  %v2914_v43 = vshrl.u32 %v5708_v31, 16 }
 0x142   : > { %v1775_v9 = vadd.f32 %v1668_v47, %v1378_v62  ;;  %3125 = vmatpush.bf16.msra.mxu2 %v5725_v29  ;;  %v1173_v47 = vshll.u32 %v1035_v60, 16  ;;  %v2916_v60 = vshll.u32 %v5708_v31, 16 }
 0x143   : > { %v1379_v37 = vadd.f32 %v6339_v50, %v837_v27  ;;  %v5750_v50 = vld [vmem:[%s7011_s1 + $0x1c0] sm:$0xff] }
 0x144   : > { %v6389_v0 = vadd.f32 %v2065_v26, %v1775_v9  ;;  %3666 = vmatpush.bf16.msra.mxu3 %v5750_v50 }
 0x148   : > { %v734_v49 = vpop.f32.mrf.mxu1  ;;  %v2070_v20 = vpop.f32.mrf.mxu0 }
 0x149   : > { %v1670_v44 = vpop.f32.mrf.mxu3  ;;  %v838_v26 = vadd.f32 %v734_v49, %v6167_v56  ;;  %v1169_v56 = vshrl.u32 %v5624_v54, 16  ;;  %v6411_v45 = vpop.f32.mrf.mxu2  ;;  %v5775_v54 = vld [vmem:[%s7011_s1 + $0x200] sm:$0xff] }
 0x14a   : > { %v1776_v41 = vadd.f32 %v1670_v44, %v1379_v37  ;;  %4103 = vmatpush.bf16.msra.mxu0 %v5775_v54  ;;  %v5597_v49 = vld [vmem:[%s5990_s6 + $0x104] sm:$0xff] }
 0x14b   : > { %773 = vmatmul.bf16.gmra.mxu1 %v5596_v55  ;;  %2109 = vmatmul.bf16.gmra.mxu0 %v5671_v63  ;;  %v1380_v62 = vadd.f32 %v6349_v6, %v838_v26  ;;  %v1171_v10 = vor.u32 %v1169_v56, %v1167_v59  ;;  %v5647_v26 = vld [vmem:[%s5990_s6 + $0x198] sm:$0xff]  ;;  %v2918_v56 = vrot.slane %v2916_v60, 1 }
 0x14c   : > { %v6405_v57 = vadd.f32 %v2067_v13, %v1776_v41  ;;  %v1175_v13 = vrot.slane %v1173_v47, 1 }
 0x14e   : > { %1712 = vmatmul.bf16.gmra.mxu3 %v5646_v25  ;;  %v1176_v44 = vsel %vm1036_vm0, %v1171_v10, %v1175_v13  ;;  %v5672_v25 = vld [vmem:[%s5990_s6 + $0x22c] sm:$0xff]  ;;  %v2919_v13 = vor.u32 %v2918_v56, %v2914_v43 }
 0x14f   : > { %1330 = vmatmul.bf16.gmra.mxu2 %v1176_v44 }
 0x150   : > { %v736_v17 = vpop.f32.mrf.mxu1  ;;  %v2072_v6 = vpop.f32.mrf.mxu0 }
 0x151   : > { %v1673_v9 = vpop.f32.mrf.mxu3  ;;  %v839_v37 = vadd.f32 %v736_v17, %v6175_v1  ;;  %v6421_v59 = vpop.f32.mrf.mxu2 }
 0x152   : > { %v1777_v27 = vadd.f32 %v1673_v9, %v1380_v62 }
 0x153   : > { %v1381_v63 = vadd.f32 %v6365_v53, %v839_v37 }
 0x154   : > { %v6418_v55 = vadd.f32 %v2070_v20, %v1777_v27  ;;  %v5709_v20 = vld [vmem:[%s5990_s6 + $0x10] sm:$0xff] }
 0x155   : > { %v2921_v47 = vshll.u32 %v5709_v20, 16 }
 0x158   : > { %v739_v29 = vpop.f32.mrf.mxu1  ;;  %v2075_v38 = vpop.f32.mrf.mxu0 }
 0x159   : > { %v1675_v41 = vpop.f32.mrf.mxu3  ;;  %v840_v50 = vadd.f32 %v739_v29, %v6186_v8  ;;  %v6432_v9 = vpop.f32.mrf.mxu2  ;;  %v2923_v8 = vrot.slane %v2921_v47, 1 }
 0x15a   : > { %v1778_v1 = vadd.f32 %v1675_v41, %v1381_v63 }
 0x15b   : > { %778 = vmatmul.bf16.gmra.mxu1 %v5597_v49  ;;  %2114 = vmatmul.bf16.gmra.mxu0 %v5672_v25  ;;  %v1382_v53 = vadd.f32 %v6375_v7, %v840_v50  ;;  %v2924_v7 = vsel %vm1036_vm0, %v2919_v13, %v2923_v8  ;;  %v5598_v49 = vld [vmem:[%s5990_s6 + $0x10c] sm:$0xff]  ;;  %v5673_v25 = vld [vmem:[%s5990_s6 + $0x234] sm:$0xff]  ;;  %v5648_v50 = vld [vmem:[%s5990_s6 + $0x1a0] sm:$0xff] }
 0x15c   : > { %v6428_v62 = vadd.f32 %v2072_v6, %v1778_v1 }
 0x15e   : > { %1717 = vmatmul.bf16.gmra.mxu3 %v5647_v26 }
 0x15f   : > { %3126 = vmatmul.bf16.vlgmr.msra.gmra.mxu2 %v2924_v7 }
 0x160   : > { %v741_v17 = vpop.f32.mrf.mxu1  ;;  %v2077_v6 = vpop.f32.mrf.mxu0 }
 0x161   : > { %v1678_v10 = vpop.f32.mrf.mxu3  ;;  %v841_v37 = vadd.f32 %v741_v17, %v6199_v19  ;;  %v6439_v63 = vpop.f32.mrf.mxu2 }
 0x162   : > { %v1779_v27 = vadd.f32 %v1678_v10, %v1382_v53 }
 0x163   : > { %v1383_v54 = vadd.f32 %v6385_v21, %v841_v37  ;;  %v2925_v21 = vshrl.u32 %v5709_v20, 16 }
 0x164   : > { %v6436_v44 = vadd.f32 %v2075_v38, %v1779_v27  ;;  %v5710_v38 = vld [vmem:[%s5990_s6 + $0x18] sm:$0xff] }
 0x165   : > { %v2929_v60 = vshll.u32 %v5710_v38, 16  ;;  %v2927_v47 = vor.u32 %v2925_v21, %v2923_v8  ;;  %v5599_v8 = vld [vmem:[%s5990_s6 + $0x114] sm:$0xff] }
 0x166   : > { %7014 = vst [vmem:[#allocation3_spill] sm:$0xff] %v6436_v44  ;;  %v6469_v21 = vld [vmem:[%s5990_s6 + $0x130] sm:$0xff] }
 0x167   : > { %v2931_v10 = vrot.slane %v2929_v60, 1  ;;  %v6472_v60 = vld [vmem:[%s5990_s6 + $0xa4] sm:$0xff] }
 0x168   : > { %v744_v29 = vpop.f32.mrf.mxu1  ;;  %v2080_v26 = vpop.f32.mrf.mxu0 }
 0x169   : > { %v1680_v41 = vpop.f32.mrf.mxu3  ;;  %v842_v31 = vadd.f32 %v744_v29, %v6216_v28  ;;  %v6449_v43 = vpop.f32.mrf.mxu2  ;;  %v2932_v17 = vsel %vm1036_vm0, %v2927_v47, %v2931_v10  ;;  %v5733_v29 = vld [vmem:[%s5990_s6 + $0x9c] sm:$0xff]  ;;  %v5458_v47 = vld [vmem:[%s5990_s6 + $0x8] sm:$0xe] }
 0x16a   : > { %v1780_v1 = vadd.f32 %v1680_v41, %v1383_v54  ;;  %v5674_v54 = vld [vmem:[%s5990_s6 + $0x23c] sm:$0xff]  ;;  %v5683_v41 = vld [vmem:[%s5990_s6 + $0x128] sm:$0xff] }
 0x16b   : > { %783 = vmatmul.bf16.gmra.mxu1 %v5598_v49  ;;  %2119 = vmatmul.bf16.gmra.mxu0 %v5673_v25  ;;  %v1384_v19 = vadd.f32 %v6392_v2, %v842_v31  ;;  %v2375_v31 = vshll.u32 %v5683_v41, 16 }
 0x16c   : > { %v6447_v53 = vadd.f32 %v2077_v6, %v1780_v1  ;;  %v5649_v1 = vld [vmem:[%s5990_s6 + $0x1a8] sm:$0xff] }
 0x16e   : > { %7015 = vst [vmem:[#allocation4_spill] sm:$0xff] %v6447_v53  ;;  %1722 = vmatmul.bf16.gmra.mxu3 %v5648_v50  ;;  %v3462_v53 = vshll.u32 %v6472_v60, 16 }
 0x16f   : > { %3131 = vmatmul.bf16.gmra.mxu2 %v2932_v17  ;;  %v2373_v17 = vshrl.u32 %v5683_v41, 16 }
 0x170   : > { %v746_v28 = vpop.f32.mrf.mxu1  ;;  %v2082_v27 = vpop.f32.mrf.mxu0 }
 0x171   : > { %v1683_v56 = vpop.f32.mrf.mxu3  ;;  %v843_v2 = vadd.f32 %v746_v28, %v6229_v39  ;;  %v6456_v37 = vpop.f32.mrf.mxu2  ;;  %v2933_v28 = vshrl.u32 %v5710_v38, 16 }
 0x172   : > { %v1781_v13 = vadd.f32 %v1683_v56, %v1384_v19  ;;  %v5711_v19 = vld [vmem:[%s5990_s6 + $0x20] sm:$0xff]  ;;  %v3457_v56 = vshll.u32 %v5733_v29, 16 }
 0x173   : > { %v1385_v20 = vadd.f32 %v6411_v45, %v843_v2  ;;  %v2937_v2 = vshll.u32 %v5711_v19, 16 }
 0x174   : > { %v6453_v6 = vadd.f32 %v2080_v26, %v1781_v13  ;;  %v5758_v13 = vld [vmem:[%s5990_s6 + $0x8] sm:$0xf0]  ;;  %v3459_v38 = vrot.slane %v3457_v56, 1 }
 0x176   : > { %7016 = vst [vmem:[#allocation5_spill] sm:$0xff] %v6453_v6 }
 0x178   : > { %v749_v25 = vpop.f32.mrf.mxu1  ;;  %v2085_v39 = vpop.f32.mrf.mxu0 }
 0x179   : > { %v1685_v7 = vpop.f32.mrf.mxu3  ;;  %v844_v26 = vadd.f32 %v749_v25, %v6238_v46  ;;  %v6476_v46 = vpop.f32.mrf.mxu2  ;;  %v2380_v25 = vshll.u32 %v6469_v21, 16 }
 0x17a   : > { %v1782_v49 = vadd.f32 %v1685_v7, %v1385_v20  ;;  %v2377_v20 = vrot.slane %v2375_v31, 1  ;;  %v2935_v7 = vor.u32 %v2933_v28, %v2931_v10 }
 0x17b   : > { %788 = vmatmul.bf16.gmra.mxu1 %v5599_v8  ;;  %2124 = vmatmul.bf16.gmra.mxu0 %v5674_v54  ;;  %v1386_v50 = vadd.f32 %v6421_v59, %v844_v26  ;;  %v2939_v59 = vrot.slane %v2937_v2, 1  ;;  %v6480_v26 = vld [vmem:[%s5990_s6 + $0x10] sm:$0xff]  ;;  %v2382_v31 = vrot.slane %v2380_v25, 1 }
 0x17c   : > { %v6464_v45 = vadd.f32 %v2082_v27, %v1782_v49 }
 0x17d   : > { %v2940_v44 = vsel %vm1036_vm0, %v2935_v7, %v2939_v59  ;;  %v6500_v7 = vld [vmem:[%s5990_s6 + $0x138] sm:$0xff] }
 0x17e   : > { %7017 = vst [vmem:[#allocation6_spill] sm:$0xff] %v6464_v45  ;;  %1727 = vmatmul.bf16.gmra.mxu3 %v5649_v1  ;;  %v3455_v1 = vshrl.u32 %v5733_v29, 16  ;;  %v5459_v45 = vor.u32 %v5758_v13, %v5458_v47  ;;  %v3997_v29 = vrot.slane %v6480_v26, 1  ;;  %v3464_v47 = vrot.slane %v3462_v53, 1 }
 0x17f   : > { %3136 = vmatmul.bf16.gmra.mxu2 %v2940_v44 }
 0x180   : > { %v751_v54 = vpop.f32.mrf.mxu1  ;;  %v2087_v49 = vpop.f32.mrf.mxu0  ;;  %v3996_v28 = vrot.slane %v5459_v45, 1  ;;  %v3460_v2 = vor.u32 %v3459_v38, %v3455_v1 }
 0x181   : > { %v1688_v27 = vpop.f32.mrf.mxu3  ;;  %v845_v6 = vadd.f32 %v751_v54, %v6248_v58  ;;  %v6489_v58 = vpop.f32.mrf.mxu2  ;;  %v2941_v54 = vshrl.u32 %v5711_v19, 16 }
 0x182   : > { %v1783_v8 = vadd.f32 %v1688_v27, %v1386_v50  ;;  %v2378_v50 = vor.u32 %v2377_v20, %v2373_v17  ;;  %v3998_v44 = vsel %vm3995_vm1, %v3996_v28, %v3997_v29  ;;  %v3465_v45 = vsel %vm1036_vm0, %v3460_v2, %v3464_v47  ;;  %v5712_v20 = vld [vmem:[%s5990_s6 + $0x28] sm:$0xff]  ;;  %v5760_v2 = vld [vmem:[%s5990_s6 + $0x18] sm:$0xff] }
 0x183   : > { %v1387_v10 = vadd.f32 %v6432_v9, %v845_v6  ;;  %v2945_v25 = vshll.u32 %v5712_v20, 16  ;;  %v2943_v26 = vor.u32 %v2941_v54, %v2939_v59  ;;  %v2384_v28 = vshrl.u32 %v6469_v21, 16 }
 0x184   : > { %v6485_v41 = vadd.f32 %v2085_v39, %v1783_v8  ;;  %v2383_v9 = vsel %vm1036_vm0, %v2378_v50, %v2382_v31  ;;  %v6503_v8 = vld [vmem:[%s5990_s6 + $0xac] sm:$0xff] }
 0x185   : > { %v2947_v38 = vrot.slane %v2945_v25, 1  ;;  %v3470_v19 = vshll.u32 %v6503_v8, 16 }
 0x188   : > { %v754_v39 = vpop.f32.mrf.mxu1  ;;  %v2090_v27 = vpop.f32.mrf.mxu0 }
 0x189   : > { %v1690_v56 = vpop.f32.mrf.mxu3  ;;  %v846_v6 = vadd.f32 %v754_v39, %v6268_v12  ;;  %v6505_v1 = vpop.f32.mrf.mxu2  ;;  %v2948_v39 = vsel %vm1036_vm0, %v2943_v26, %v2947_v38 }
 0x18a   : > { %v1784_v13 = vadd.f32 %v1690_v56, %v1387_v10 }
 0x18b   : > { %2585 = vmatmul.bf16.vlgmr.msra.gmra.mxu1 %v2383_v9  ;;  %4104 = vmatmul.bf16.vlgmr.msra.gmra.mxu0 %v3998_v44  ;;  %v1388_v53 = vadd.f32 %v6439_v63, %v846_v6  ;;  %v2388_v63 = vshll.u32 %v6500_v7, 16  ;;  %v2386_v44 = vor.u32 %v2384_v28, %v2382_v31  ;;  %v6528_v28 = vld [vmem:[%s5990_s6 + $0x140] sm:$0xff] }
 0x18c   : > { %v6495_v17 = vadd.f32 %v2087_v49, %v1784_v13  ;;  %v3466_v13 = vshrl.u32 %v6472_v60, 16 }
 0x18d   : > { %v2390_v6 = vrot.slane %v2388_v63, 1  ;;  %v6531_v63 = vld [vmem:[%s5990_s6 + $0xb4] sm:$0xff] }
 0x18e   : > { %3667 = vmatmul.bf16.vlgmr.msra.gmra.mxu3 %v3465_v45  ;;  %v3999_v45 = vrot.slane %v5760_v2, 1  ;;  %v3468_v21 = vor.u32 %v3466_v13, %v3464_v47  ;;  %v2949_v2 = vshrl.u32 %v5712_v20, 16  ;;  %v3478_v20 = vshll.u32 %v6531_v63, 16 }
 0x18f   : > { %3141 = vmatmul.bf16.gmra.mxu2 %v2948_v39 }
 0x190   : > { %v756_v10 = vpop.f32.mrf.mxu1  ;;  %v2092_v50 = vpop.f32.mrf.mxu0  ;;  %v4000_v26 = vsel %vm3995_vm1, %v3997_v29, %v3999_v45  ;;  %v2951_v13 = vor.u32 %v2949_v2, %v2947_v38 }
 0x191   : > { %v1693_v12 = vpop.f32.mrf.mxu3  ;;  %v847_v56 = vadd.f32 %v756_v10, %v6281_v30  ;;  %v6517_v54 = vpop.f32.mrf.mxu2  ;;  %v5713_v10 = vld [vmem:[%s5990_s6 + $0x30] sm:$0xff] }
 0x192   : > { %v1785_v49 = vadd.f32 %v1693_v12, %v1388_v53  ;;  %v3472_v53 = vrot.slane %v3470_v19, 1 }
 0x193   : > { %v1389_v59 = vadd.f32 %v6449_v43, %v847_v56  ;;  %v2953_v56 = vshll.u32 %v5713_v10, 16 }
 0x194   : > { %v6514_v9 = vadd.f32 %v2090_v27, %v1785_v49  ;;  %v2391_v27 = vsel %vm1036_vm0, %v2386_v44, %v2390_v6  ;;  %v3473_v31 = vsel %vm1036_vm0, %v3468_v21, %v3472_v53  ;;  %v2392_v44 = vshrl.u32 %v6500_v7, 16  ;;  %v5761_v21 = vld [vmem:[%s5990_s6 + $0x20] sm:$0xff] }
 0x195   : > { %v2955_v19 = vrot.slane %v2953_v56, 1 }
 0x198   : > { %v759_v25 = vpop.f32.mrf.mxu1  ;;  %v2095_v12 = vpop.f32.mrf.mxu0 }
 0x199   : > { %v1695_v30 = vpop.f32.mrf.mxu3  ;;  %v848_v43 = vadd.f32 %v759_v25, %v6178_v3  ;;  %v6533_v29 = vpop.f32.mrf.mxu2  ;;  %v2956_v25 = vsel %vm1036_vm0, %v2951_v13, %v2955_v19 }
 0x19a   : > { %v1786_v60 = vadd.f32 %v1695_v30, %v1389_v59 }
 0x19b   : > { %2590 = vmatmul.bf16.gmra.mxu1 %v2391_v27  ;;  %4109 = vmatmul.bf16.gmra.mxu0 %v4000_v26  ;;  %v1390_v47 = vadd.f32 %v6456_v37, %v848_v43  ;;  %v2396_v37 = vshll.u32 %v6528_v28, 16  ;;  %v2394_v26 = vor.u32 %v2392_v44, %v2390_v6  ;;  %v6556_v44 = vld [vmem:[%s5990_s6 + $0x148] sm:$0xff] }
 0x19c   : > { %v6523_v49 = vadd.f32 %v2092_v50, %v1786_v60  ;;  %v3474_v60 = vshrl.u32 %v6503_v8, 16 }
 0x19d   : > { %v2398_v43 = vrot.slane %v2396_v37, 1  ;;  %v6559_v37 = vld [vmem:[%s5990_s6 + $0xbc] sm:$0xff] }
 0x19e   : > { %3672 = vmatmul.bf16.gmra.mxu3 %v3473_v31  ;;  %v4001_v31 = vrot.slane %v5761_v21, 1  ;;  %v3476_v7 = vor.u32 %v3474_v60, %v3472_v53  ;;  %v2957_v21 = vshrl.u32 %v5713_v10, 16  ;;  %v3486_v10 = vshll.u32 %v6559_v37, 16 }
 0x19f   : > { %3146 = vmatmul.bf16.gmra.mxu2 %v2956_v25 }
 0x1a0   : > { %v761_v39 = vpop.f32.mrf.mxu1  ;;  %v2097_v59 = vpop.f32.mrf.mxu0  ;;  %v4002_v13 = vsel %vm3995_vm1, %v3999_v45, %v4001_v31  ;;  %v2959_v60 = vor.u32 %v2957_v21, %v2955_v19 }
 0x1a1   : > { %v1698_v3 = vpop.f32.mrf.mxu3  ;;  %v849_v30 = vadd.f32 %v761_v39, %v6190_v11  ;;  %v6545_v2 = vpop.f32.mrf.mxu2  ;;  %v5714_v39 = vld [vmem:[%s5990_s6 + $0x38] sm:$0xff] }
 0x1a2   : > { %v1787_v50 = vadd.f32 %v1698_v3, %v1390_v47  ;;  %v3480_v47 = vrot.slane %v3478_v20, 1 }
 0x1a3   : > { %v1391_v38 = vadd.f32 %v6476_v46, %v849_v30  ;;  %v2961_v30 = vshll.u32 %v5714_v39, 16 }
 0x1a4   : > { %v6542_v27 = vadd.f32 %v2095_v12, %v1787_v50  ;;  %v2399_v12 = vsel %vm1036_vm0, %v2394_v26, %v2398_v43  ;;  %v3481_v6 = vsel %vm1036_vm0, %v3476_v7, %v3480_v47  ;;  %v2400_v26 = vshrl.u32 %v6528_v28, 16  ;;  %v5762_v7 = vld [vmem:[%s5990_s6 + $0x28] sm:$0xff] }
 0x1a5   : > { %v2963_v20 = vrot.slane %v2961_v30, 1 }
 0x1a8   : > { %v764_v56 = vpop.f32.mrf.mxu1  ;;  %v2100_v3 = vpop.f32.mrf.mxu0 }
 0x1a9   : > { %v1700_v11 = vpop.f32.mrf.mxu3  ;;  %v850_v46 = vadd.f32 %v764_v56, %v6208_v23  ;;  %v6561_v45 = vpop.f32.mrf.mxu2  ;;  %v2964_v56 = vsel %vm1036_vm0, %v2959_v60, %v2963_v20 }
 0x1aa   : > { %v1788_v8 = vadd.f32 %v1700_v11, %v1391_v38 }
 0x1ab   : > { %2595 = vmatmul.bf16.gmra.mxu1 %v2399_v12  ;;  %4114 = vmatmul.bf16.gmra.mxu0 %v4002_v13  ;;  %v1392_v53 = vadd.f32 %v6489_v58, %v850_v46  ;;  %v2404_v58 = vshll.u32 %v6556_v44, 16  ;;  %v2402_v13 = vor.u32 %v2400_v26, %v2398_v43  ;;  %v6584_v26 = vld [vmem:[%s5990_s6 + $0x150] sm:$0xff] }
 0x1ac   : > { %v6551_v50 = vadd.f32 %v2097_v59, %v1788_v8  ;;  %v3482_v8 = vshrl.u32 %v6531_v63, 16 }
 0x1ad   : > { %v2406_v46 = vrot.slane %v2404_v58, 1  ;;  %v6587_v58 = vld [vmem:[%s5990_s6 + $0xc4] sm:$0xff] }
 0x1ae   : > { %3677 = vmatmul.bf16.gmra.mxu3 %v3481_v6  ;;  %v4003_v6 = vrot.slane %v5762_v7, 1  ;;  %v3484_v28 = vor.u32 %v3482_v8, %v3480_v47  ;;  %v2965_v7 = vshrl.u32 %v5714_v39, 16  ;;  %v3494_v39 = vshll.u32 %v6587_v58, 16 }
 0x1af   : > { %3151 = vmatmul.bf16.gmra.mxu2 %v2964_v56 }
 0x1b0   : > { %v766_v25 = vpop.f32.mrf.mxu1  ;;  %v2102_v38 = vpop.f32.mrf.mxu0  ;;  %v4004_v60 = vsel %vm3995_vm1, %v4001_v31, %v4003_v6  ;;  %v2967_v8 = vor.u32 %v2965_v7, %v2963_v20 }
 0x1b1   : > { %v1703_v23 = vpop.f32.mrf.mxu3  ;;  %v851_v11 = vadd.f32 %v766_v25, %v6223_v32  ;;  %v6573_v21 = vpop.f32.mrf.mxu2  ;;  %v5715_v25 = vld [vmem:[%s5990_s6 + $0x40] sm:$0xff] }
 0x1b2   : > { %v1789_v59 = vadd.f32 %v1703_v23, %v1392_v53  ;;  %v3488_v53 = vrot.slane %v3486_v10, 1 }
 0x1b3   : > { %v1393_v19 = vadd.f32 %v6505_v1, %v851_v11  ;;  %v2969_v11 = vshll.u32 %v5715_v25, 16 }
 0x1b4   : > { %v6570_v12 = vadd.f32 %v2100_v3, %v1789_v59  ;;  %v2407_v3 = vsel %vm1036_vm0, %v2402_v13, %v2406_v46  ;;  %v3489_v43 = vsel %vm1036_vm0, %v3484_v28, %v3488_v53  ;;  %v2408_v13 = vshrl.u32 %v6556_v44, 16  ;;  %v5763_v28 = vld [vmem:[%s5990_s6 + $0x30] sm:$0xff] }
 0x1b5   : > { %v2971_v10 = vrot.slane %v2969_v11, 1 }
 0x1b8   : > { %v769_v30 = vpop.f32.mrf.mxu1  ;;  %v2105_v23 = vpop.f32.mrf.mxu0 }
 0x1b9   : > { %v1705_v32 = vpop.f32.mrf.mxu3  ;;  %v852_v1 = vadd.f32 %v769_v30, %v6171_v61  ;;  %v6589_v31 = vpop.f32.mrf.mxu2  ;;  %v2972_v30 = vsel %vm1036_vm0, %v2967_v8, %v2971_v10 }
 0x1ba   : > { %v1790_v63 = vadd.f32 %v1705_v32, %v1393_v19 }
 0x1bb   : > { %2600 = vmatmul.bf16.gmra.mxu1 %v2407_v3  ;;  %4119 = vmatmul.bf16.gmra.mxu0 %v4004_v60  ;;  %v1394_v47 = vadd.f32 %v6517_v54, %v852_v1  ;;  %v2412_v54 = vshll.u32 %v6584_v26, 16  ;;  %v2410_v60 = vor.u32 %v2408_v13, %v2406_v46  ;;  %v6612_v13 = vld [vmem:[%s5990_s6 + $0x158] sm:$0xff] }
 0x1bc   : > { %v6579_v59 = vadd.f32 %v2102_v38, %v1790_v63  ;;  %v3490_v63 = vshrl.u32 %v6559_v37, 16 }
 0x1bd   : > { %v2414_v1 = vrot.slane %v2412_v54, 1  ;;  %v6615_v54 = vld [vmem:[%s5990_s6 + $0xcc] sm:$0xff] }
 0x1be   : > { %3682 = vmatmul.bf16.gmra.mxu3 %v3489_v43  ;;  %v4005_v43 = vrot.slane %v5763_v28, 1  ;;  %v3492_v44 = vor.u32 %v3490_v63, %v3488_v53  ;;  %v2973_v28 = vshrl.u32 %v5715_v25, 16  ;;  %v3502_v25 = vshll.u32 %v6615_v54, 16 }
 0x1bf   : > { %3156 = vmatmul.bf16.gmra.mxu2 %v2972_v30 }
 0x1c0   : > { %v771_v56 = vpop.f32.mrf.mxu1  ;;  %v2107_v19 = vpop.f32.mrf.mxu0  ;;  %v4006_v8 = vsel %vm3995_vm1, %v4003_v6, %v4005_v43  ;;  %v2975_v63 = vor.u32 %v2973_v28, %v2971_v10 }
 0x1c1   : > { %v1708_v61 = vpop.f32.mrf.mxu3  ;;  %v853_v32 = vadd.f32 %v771_v56, %v6180_v4  ;;  %v6601_v7 = vpop.f32.mrf.mxu2  ;;  %v5716_v56 = vld [vmem:[%s5990_s6 + $0x48] sm:$0xff] }
 0x1c2   : > { %v1791_v38 = vadd.f32 %v1708_v61, %v1394_v47  ;;  %v3496_v47 = vrot.slane %v3494_v39, 1 }
 0x1c3   : > { %v1395_v20 = vadd.f32 %v6533_v29, %v853_v32  ;;  %v2977_v32 = vshll.u32 %v5716_v56, 16 }
 0x1c4   : > { %v6598_v3 = vadd.f32 %v2105_v23, %v1791_v38  ;;  %v2415_v23 = vsel %vm1036_vm0, %v2410_v60, %v2414_v1  ;;  %v3497_v46 = vsel %vm1036_vm0, %v3492_v44, %v3496_v47  ;;  %v2416_v60 = vshrl.u32 %v6584_v26, 16  ;;  %v5764_v44 = vld [vmem:[%s5990_s6 + $0x38] sm:$0xff] }
 0x1c5   : > { %v2979_v39 = vrot.slane %v2977_v32, 1 }
 0x1c8   : > { %v774_v11 = vpop.f32.mrf.mxu1  ;;  %v2110_v61 = vpop.f32.mrf.mxu0 }
 0x1c9   : > { %v1710_v4 = vpop.f32.mrf.mxu3  ;;  %v854_v29 = vadd.f32 %v774_v11, %v6192_v14  ;;  %v6617_v6 = vpop.f32.mrf.mxu2  ;;  %v2980_v11 = vsel %vm1036_vm0, %v2975_v63, %v2979_v39 }
 0x1ca   : > { %v1792_v37 = vadd.f32 %v1710_v4, %v1395_v20 }
 0x1cb   : > { %2605 = vmatmul.bf16.gmra.mxu1 %v2415_v23  ;;  %4124 = vmatmul.bf16.gmra.mxu0 %v4006_v8  ;;  %v1396_v53 = vadd.f32 %v6545_v2, %v854_v29  ;;  %v2420_v2 = vshll.u32 %v6612_v13, 16  ;;  %v2418_v8 = vor.u32 %v2416_v60, %v2414_v1  ;;  %v6640_v60 = vld [vmem:[%s5990_s6 + $0x160] sm:$0xff] }
 0x1cc   : > { %v6607_v38 = vadd.f32 %v2107_v19, %v1792_v37  ;;  %v3498_v37 = vshrl.u32 %v6587_v58, 16 }
 0x1cd   : > { %v2422_v29 = vrot.slane %v2420_v2, 1  ;;  %v6643_v2 = vld [vmem:[%s5990_s6 + $0xd4] sm:$0xff] }
 0x1ce   : > { %3687 = vmatmul.bf16.gmra.mxu3 %v3497_v46  ;;  %v4007_v46 = vrot.slane %v5764_v44, 1  ;;  %v3500_v26 = vor.u32 %v3498_v37, %v3496_v47  ;;  %v2981_v44 = vshrl.u32 %v5716_v56, 16  ;;  %v3510_v56 = vshll.u32 %v6643_v2, 16 }
 0x1cf   : > { %3161 = vmatmul.bf16.gmra.mxu2 %v2980_v11 }
 0x1d0   : > { %v776_v30 = vpop.f32.mrf.mxu1  ;;  %v2112_v20 = vpop.f32.mrf.mxu0  ;;  %v4008_v63 = vsel %vm3995_vm1, %v4005_v43, %v4007_v46  ;;  %v2983_v37 = vor.u32 %v2981_v44, %v2979_v39 }
 0x1d1   : > { %v1713_v14 = vpop.f32.mrf.mxu3  ;;  %v855_v4 = vadd.f32 %v776_v30, %v6210_v24  ;;  %v5717_v30 = vld [vmem:[%s5990_s6 + $0x50] sm:$0xff] }
 0x1d2   : > { %v1793_v19 = vadd.f32 %v1713_v14, %v1396_v53  ;;  %v3504_v53 = vrot.slane %v3502_v25, 1  ;;  %v6629_v28 = vpop.f32.mrf.mxu2 }
 0x1d3   : > { %v1397_v10 = vadd.f32 %v6561_v45, %v855_v4  ;;  %v2985_v4 = vshll.u32 %v5717_v30, 16 }
 0x1d4   : > { %v6626_v23 = vadd.f32 %v2110_v61, %v1793_v19  ;;  %v2423_v61 = vsel %vm1036_vm0, %v2418_v8, %v2422_v29  ;;  %v3505_v1 = vsel %vm1036_vm0, %v3500_v26, %v3504_v53  ;;  %v2424_v8 = vshrl.u32 %v6612_v13, 16  ;;  %v5765_v26 = vld [vmem:[%s5990_s6 + $0x40] sm:$0xff] }
 0x1d5   : > { %v2987_v25 = vrot.slane %v2985_v4, 1 }
 0x1d8   : > { %v779_v32 = vpop.f32.mrf.mxu1  ;;  %v2115_v14 = vpop.f32.mrf.mxu0 }
 0x1d9   : > { %v1715_v24 = vpop.f32.mrf.mxu3  ;;  %v856_v45 = vadd.f32 %v779_v32, %v6225_v35  ;;  %v2988_v32 = vsel %vm1036_vm0, %v2983_v37, %v2987_v25 }
 0x1da   : > { %v1794_v58 = vadd.f32 %v1715_v24, %v1397_v10  ;;  %v6645_v43 = vpop.f32.mrf.mxu2 }
 0x1db   : > { %2610 = vmatmul.bf16.gmra.mxu1 %v2423_v61  ;;  %4129 = vmatmul.bf16.gmra.mxu0 %v4008_v63  ;;  %v1398_v47 = vadd.f32 %v6573_v21, %v856_v45  ;;  %v2428_v21 = vshll.u32 %v6640_v60, 16  ;;  %v2426_v63 = vor.u32 %v2424_v8, %v2422_v29  ;;  %v6668_v8 = vld [vmem:[%s5990_s6 + $0x168] sm:$0xff] }
 0x1dc   : > { %v6635_v19 = vadd.f32 %v2112_v20, %v1794_v58  ;;  %v3506_v58 = vshrl.u32 %v6615_v54, 16 }
 0x1dd   : > { %v2430_v45 = vrot.slane %v2428_v21, 1  ;;  %v6671_v21 = vld [vmem:[%s5990_s6 + $0xdc] sm:$0xff] }
 0x1de   : > { %3692 = vmatmul.bf16.gmra.mxu3 %v3505_v1  ;;  %v4009_v1 = vrot.slane %v5765_v26, 1  ;;  %v3508_v13 = vor.u32 %v3506_v58, %v3504_v53  ;;  %v2989_v26 = vshrl.u32 %v5717_v30, 16  ;;  %v3518_v30 = vshll.u32 %v6671_v21, 16 }
 0x1df   : > { %3166 = vmatmul.bf16.gmra.mxu2 %v2988_v32 }
 0x1e0   : > { %v781_v11 = vpop.f32.mrf.mxu1  ;;  %v2117_v10 = vpop.f32.mrf.mxu0  ;;  %v4010_v37 = vsel %vm3995_vm1, %v4007_v46, %v4009_v1  ;;  %v2991_v58 = vor.u32 %v2989_v26, %v2987_v25 }
 0x1e1   : > { %v1718_v35 = vpop.f32.mrf.mxu3  ;;  %v857_v24 = vadd.f32 %v781_v11, %v6232_v42  ;;  %v5718_v11 = vld [vmem:[%s5990_s6 + $0x58] sm:$0xff] }
 0x1e2   : > { %v1795_v20 = vadd.f32 %v1718_v35, %v1398_v47  ;;  %v3512_v47 = vrot.slane %v3510_v56, 1  ;;  %v6657_v44 = vpop.f32.mrf.mxu2 }
 0x1e3   : > { %v1399_v39 = vadd.f32 %v6589_v31, %v857_v24  ;;  %v2993_v24 = vshll.u32 %v5718_v11, 16 }
 0x1e4   : > { %v6654_v61 = vadd.f32 %v2115_v14, %v1795_v20  ;;  %v2431_v14 = vsel %vm1036_vm0, %v2426_v63, %v2430_v45  ;;  %v3513_v29 = vsel %vm1036_vm0, %v3508_v13, %v3512_v47  ;;  %v2432_v63 = vshrl.u32 %v6640_v60, 16  ;;  %v5766_v13 = vld [vmem:[%s5990_s6 + $0x48] sm:$0xff] }
 0x1e5   : > { %v2995_v56 = vrot.slane %v2993_v24, 1 }
 0x1e8   : > { %v784_v4 = vpop.f32.mrf.mxu1  ;;  %v2120_v35 = vpop.f32.mrf.mxu0 }
 0x1e9   : > { %v1720_v42 = vpop.f32.mrf.mxu3  ;;  %v858_v31 = vadd.f32 %v784_v4, %v6244_v52  ;;  %v2996_v4 = vsel %vm1036_vm0, %v2991_v58, %v2995_v56 }
 0x1ea   : > { %v1796_v54 = vadd.f32 %v1720_v42, %v1399_v39  ;;  %v6673_v46 = vpop.f32.mrf.mxu2 }
 0x1eb   : > { %2615 = vmatmul.bf16.gmra.mxu1 %v2431_v14  ;;  %4134 = vmatmul.bf16.gmra.mxu0 %v4010_v37  ;;  %v1400_v53 = vadd.f32 %v6601_v7, %v858_v31  ;;  %v2436_v7 = vshll.u32 %v6668_v8, 16  ;;  %v2434_v37 = vor.u32 %v2432_v63, %v2430_v45  ;;  %v5692_v63 = vld [vmem:[%s5990_s6 + $0x170] sm:$0xff] }
 0x1ec   : > { %v6663_v20 = vadd.f32 %v2117_v10, %v1796_v54  ;;  %v3514_v54 = vshrl.u32 %v6643_v2, 16 }
 0x1ed   : > { %v2438_v31 = vrot.slane %v2436_v7, 1  ;;  %v6697_v7 = vld [vmem:[%s5990_s6 + $0xe4] sm:$0xff] }
 0x1ee   : > { %3697 = vmatmul.bf16.gmra.mxu3 %v3513_v29  ;;  %v4011_v29 = vrot.slane %v5766_v13, 1  ;;  %v3516_v60 = vor.u32 %v3514_v54, %v3512_v47  ;;  %v2997_v13 = vshrl.u32 %v5718_v11, 16  ;;  %v3526_v11 = vshll.u32 %v6697_v7, 16 }
 0x1ef   : > { %3171 = vmatmul.bf16.gmra.mxu2 %v2996_v4 }
 0x1f0   : > { %v786_v32 = vpop.f32.mrf.mxu1  ;;  %v2122_v39 = vpop.f32.mrf.mxu0  ;;  %v4012_v58 = vsel %vm3995_vm1, %v4009_v1, %v4011_v29 }
 0x1f1   : > { %v1723_v52 = vpop.f32.mrf.mxu3  ;;  %v859_v42 = vadd.f32 %v786_v32, %v6262_v5  ;;  %v5719_v32 = vld [vmem:[%s5990_s6 + $0x60] sm:$0xff] }
 0x1f2   : > { %v1797_v10 = vadd.f32 %v1723_v52, %v1400_v53  ;;  %v3520_v53 = vrot.slane %v3518_v30, 1  ;;  %v6685_v26 = vpop.f32.mrf.mxu2 }
 0x1f3   : > { %v1401_v25 = vadd.f32 %v6617_v6, %v859_v42  ;;  %v3001_v42 = vshll.u32 %v5719_v32, 16 }
 0x1f4   : > { %v6682_v14 = vadd.f32 %v2120_v35, %v1797_v10  ;;  %v2439_v35 = vsel %vm1036_vm0, %v2434_v37, %v2438_v31  ;;  %v3521_v45 = vsel %vm1036_vm0, %v3516_v60, %v3520_v53  ;;  %v2440_v37 = vshrl.u32 %v6668_v8, 16 }
 0x1f5   : > { %v3003_v30 = vrot.slane %v3001_v42, 1  ;;  %v2444_v60 = vshll.u32 %v5692_v63, 16 }
 0x1f8   : > { %v789_v24 = vpop.f32.mrf.mxu1  ;;  %v2125_v52 = vpop.f32.mrf.mxu0 }
 0x1f9   : > { %v1725_v5 = vpop.f32.mrf.mxu3  ;;  %v860_v6 = vadd.f32 %v789_v24, %v6277_v22  ;;  %v2999_v22 = vor.u32 %v2997_v13, %v2995_v56 }
 0x1fa   : > { %v1798_v2 = vadd.f32 %v1725_v5, %v1401_v25  ;;  %v6699_v54 = vpop.f32.mrf.mxu2 }
 0x1fb   : > { %2620 = vmatmul.bf16.gmra.mxu1 %v2439_v35  ;;  %4139 = vmatmul.bf16.gmra.mxu0 %v4012_v58  ;;  %v1402_v47 = vadd.f32 %v6629_v28, %v860_v6  ;;  %v6703_v28 = vld [vmem:[%s5990_s6 + $0x50] sm:$0xff]  ;;  %v3004_v24 = vsel %vm1036_vm0, %v2999_v22, %v3003_v30  ;;  %v2442_v58 = vor.u32 %v2440_v37, %v2438_v31  ;;  %v2446_v6 = vrot.slane %v2444_v60, 1 }
 0x1fc   : > { %v6691_v10 = vadd.f32 %v2122_v39, %v1798_v2  ;;  %v3522_v2 = vshrl.u32 %v6671_v21, 16  ;;  %v4013_v8 = vrot.slane %v6703_v28, 1  ;;  %v6726_v37 = vld [vmem:[%s5990_s6 + $0xec] sm:$0xff]  ;;  %v3005_v60 = vshrl.u32 %v5719_v32, 16 }
 0x1fe   : > { %3702 = vmatmul.bf16.gmra.mxu3 %v3521_v45  ;;  %v3524_v45 = vor.u32 %v3522_v2, %v3520_v53  ;;  %v5720_v53 = vld [vmem:[%s5990_s6 + $0x68] sm:$0xff]  ;;  %v3007_v2 = vor.u32 %v3005_v60, %v3003_v30 }
 0x1ff   : > { %3176 = vmatmul.bf16.gmra.mxu2 %v3004_v24  ;;  %v3009_v28 = vshll.u32 %v5720_v53, 16 }
 0x200   : > { %v791_v39 = vpop.f32.mrf.mxu1  ;;  %v2127_v25 = vpop.f32.mrf.mxu0 }
 0x201   : > { %v1728_v1 = vpop.f32.mrf.mxu3  ;;  %v861_v5 = vadd.f32 %v791_v39, %v6286_v34  ;;  %v6723_v39 = vld [vmem:[%s5990_s6 + $0x178] sm:$0xff] }
 0x202   : > { %v1799_v4 = vadd.f32 %v1728_v1, %v1402_v47  ;;  %v3528_v47 = vrot.slane %v3526_v11, 1  ;;  %v6713_v34 = vpop.f32.mrf.mxu2  ;;  %v3011_v11 = vrot.slane %v3009_v28, 1 }
 0x203   : > { %v1403_v56 = vadd.f32 %v6645_v43, %v861_v5  ;;  %v4014_v43 = vsel %vm3995_vm1, %v4011_v29, %v4013_v8 }
 0x204   : > { %v6709_v35 = vadd.f32 %v2125_v52, %v1799_v4  ;;  %v2447_v52 = vsel %vm1036_vm0, %v2442_v58, %v2446_v6  ;;  %v3529_v31 = vsel %vm1036_vm0, %v3524_v45, %v3528_v47  ;;  %v2448_v58 = vshrl.u32 %v5692_v63, 16 }
 0x205   : > { %v2452_v45 = vshll.u32 %v6723_v39, 16  ;;  %v3012_v32 = vsel %vm1036_vm0, %v3007_v2, %v3011_v11 }
 0x206   : > { %v2450_v30 = vor.u32 %v2448_v58, %v2446_v6 }
 0x208   : > { %v2586_v42 = vpop.f32.mrf.mxu1  ;;  %v4105_v1 = vpop.f32.mrf.mxu0 }
 0x209   : > { %v1730_v21 = vpop.f32.mrf.mxu3  ;;  %v2705_v4 = vadd.f32 %v2586_v42, %v6303_v16  ;;  %v6733_v16 = vld [vmem:[%s5990_s6 + $0x58] sm:$0xff] }
 0x20a   : > { %v1800_v13 = vadd.f32 %v1730_v21, %v1403_v56  ;;  %v6728_v5 = vpop.f32.mrf.mxu2  ;;  %v3530_v21 = vshrl.u32 %v6697_v7, 16  ;;  %v6743_v7 = vld [vmem:[%s7012_s2] ss:$0 sm:$0xff] }
 0x20b   : > { %2625 = vmatmul.bf16.gmra.mxu1 %v2447_v52  ;;  %4144 = vmatmul.bf16.gmra.mxu0 %v4014_v43  ;;  %v2454_v43 = vrot.slane %v2452_v45, 1 }
 0x20c   : > { %v6718_v22 = vadd.f32 %v2127_v25, %v1800_v13  ;;  %v3246_v25 = vadd.f32 %v6657_v44, %v2705_v4  ;;  %v3534_v13 = vshll.u32 %v6726_v37, 16  ;;  %v4015_v44 = vrot.slane %v6733_v16, 1 }
 0x20d   : > { %v3532_v63 = vor.u32 %v3530_v21, %v3528_v47  ;;  %v2455_v47 = vsel %vm1036_vm0, %v2450_v30, %v2454_v43  ;;  %v6757_v21 = vld [vmem:[%s5990_s6 + $0x180] sm:$0xff] }
 0x20e   : > { %3707 = vmatmul.bf16.gmra.mxu3 %v3529_v31  ;;  %v3536_v31 = vrot.slane %v3534_v13, 1  ;;  %v6760_v13 = vld [vmem:[%s5990_s6 + $0xf4] sm:$0xff] }
 0x20f   : > { %3181 = vmatmul.bf16.gmra.mxu2 %v3012_v32 }
 0x210   : > { %v2588_v24 = vpop.f32.mrf.mxu1  ;;  %v4107_v56 = vpop.f32.mrf.mxu0 }
 0x211   : > { %v3668_v29 = vpop.f32.mrf.mxu3  ;;  %v2706_v52 = vadd.f32 %v2588_v24, %v6315_v51 }
 0x212   : > { %v3787_v42 = vadd.f32 %v3668_v29, %v3246_v25  ;;  %v6746_v28 = vpop.f32.mrf.mxu2  ;;  %v3537_v25 = vsel %vm1036_vm0, %v3532_v63, %v3536_v31 }
 0x213   : > { %v3247_v60 = vadd.f32 %v6673_v46, %v2706_v52  ;;  %v5721_v46 = vld [vmem:[%s5990_s6 + $0x70] sm:$0xff] }
 0x214   : > { %v4224_v4 = vadd.f32 %v4105_v1, %v3787_v42  ;;  %v4016_v1 = vsel %vm3995_vm1, %v4013_v8, %v4015_v44  ;;  %v3013_v8 = vshrl.u32 %v5720_v53, 16  ;;  %v3017_v32 = vshll.u32 %v5721_v46, 16 }
 0x215   : > { %v2456_v53 = vshrl.u32 %v6723_v39, 16 }
 0x216   : > { %v4330_v24 = vadd.f32 %v6743_v7, %v4224_v4  ;;  %v3019_v63 = vrot.slane %v3017_v32, 1 }
 0x218   : > { %v2591_v29 = vpop.f32.mrf.mxu1  ;;  %v4110_v2 = vpop.f32.mrf.mxu0  ;;  %v4364_v42 = vmax.f32 %v4330_v24, 0.0 }
 0x219   : > { %v3670_v51 = vpop.f32.mrf.mxu3  ;;  %v2707_v16 = vadd.f32 %v2591_v29, %v6326_v15  ;;  %v3015_v15 = vor.u32 %v3013_v8, %v3011_v11  ;;  %v2460_v29 = vshll.u32 %v6757_v21, 16 }
 0x21a   : > { %v3788_v6 = vadd.f32 %v3670_v51, %v3247_v60  ;;  %v6762_v30 = vpop.f32.mrf.mxu2 }
 0x21b   : > { %2630 = vmatmul.bf16.gmra.mxu1 %v2455_v47  ;;  %4149 = vmatmul.bf16.gmra.mxu0 %v4016_v1  ;;  %v3248_v60 = vadd.f32 %v6685_v26, %v2707_v16  ;;  %v6773_v47 = vld [vmem:[%s5990_s6 + $0x60] sm:$0xff]  ;;  %v3538_v1 = vshrl.u32 %v6726_v37, 16  ;;  %v3020_v24 = vsel %vm1036_vm0, %v3015_v15, %v3019_v63  ;;  %v2458_v26 = vor.u32 %v2456_v53, %v2454_v43 }
 0x21c   : > { %v4225_v58 = vadd.f32 %v4107_v56, %v3788_v6  ;;  %v4017_v16 = vrot.slane %v6773_v47, 1  ;;  %v6795_v47 = vld [vmem:[%s5990_s6 + $0xfc] sm:$0xff] }
 0x21d   : > { %v3540_v39 = vor.u32 %v3538_v1, %v3536_v31  ;;  %v3021_v1 = vshrl.u32 %v5721_v46, 16  ;;  %v3546_v46 = vshrl.u32 %v6760_v13, 16 }
 0x21e   : > { %v4331_v45 = vadd.f32 %v6743_v7, %v4225_v58  ;;  %3712 = vmatmul.bf16.gmra.mxu3 %v3537_v25  ;;  %v3542_v25 = vshll.u32 %v6760_v13, 16  ;;  %v4018_v43 = vsel %vm3995_vm1, %v4015_v44, %v4017_v16 }
 0x21f   : > { %3186 = vmatmul.bf16.gmra.mxu2 %v3020_v24 }
 0x220   : > { %v4365_v52 = vmax.f32 %v4331_v45, 0.0  ;;  %v2593_v51 = vpop.f32.mrf.mxu1  ;;  %v4112_v6 = vpop.f32.mrf.mxu0  ;;  %v2462_v45 = vrot.slane %v2460_v29, 1  ;;  %v3544_v8 = vrot.slane %v3542_v25, 1  ;;  %v6792_v29 = vld [vmem:[%s5990_s6 + $0x188] sm:$0xff] }
 0x221   : > { %v3673_v56 = vpop.f32.mrf.mxu3  ;;  %v2708_v58 = vadd.f32 %v2593_v51, %v6335_v18 }
 0x222   : > { %v5786_v4 = vpack.c.bf16 %v4365_v52, %v4364_v42  ;;  %v3789_v11 = vadd.f32 %v3673_v56, %v3248_v60  ;;  %v6782_v37 = vpop.f32.mrf.mxu2  ;;  %v2463_v18 = vsel %vm1036_vm0, %v2458_v26, %v2462_v45  ;;  %v3545_v60 = vsel %vm1036_vm0, %v3540_v39, %v3544_v8 }
 0x223   : > { %v3249_v42 = vadd.f32 %v6699_v54, %v2708_v58  ;;  %v5722_v54 = vld [vmem:[%s5990_s6 + $0x78] sm:$0xff]  ;;  %v3023_v58 = vor.u32 %v3021_v1, %v3019_v63 }
 0x224   : > { %5787 = vst [vmem:[%s6767_s21] sm:$0xff] %v5786_v4   ;;  %v4226_v32 = vadd.f32 %v4110_v2, %v3789_v11  ;;  %v3025_v44 = vshll.u32 %v5722_v54, 16 }
 0x226   : > { %v4332_v31 = vadd.f32 %v6743_v7, %v4226_v32  ;;  %v3027_v26 = vrot.slane %v3025_v44, 1 }
 0x228   : > { %v2596_v56 = vpop.f32.mrf.mxu1  ;;  %v4115_v4 = vpop.f32.mrf.mxu0  ;;  %v4366_v25 = vmax.f32 %v4332_v31, 0.0 }
 0x229   : > { %v3675_v52 = vpop.f32.mrf.mxu3  ;;  %v2709_v53 = vadd.f32 %v2596_v56, %v6346_v48  ;;  %v6803_v56 = vld [vmem:[%s5990_s6 + $0x68] sm:$0xff] }
 0x22a   : > { %v3790_v15 = vadd.f32 %v3675_v52, %v3249_v42  ;;  %v6797_v11 = vpop.f32.mrf.mxu2  ;;  %v2464_v52 = vshrl.u32 %v6757_v21, 16  ;;  %v3548_v21 = vor.u32 %v3546_v46, %v3544_v8 }
 0x22b   : > { %2635 = vmatmul.bf16.gmra.mxu1 %v2463_v18  ;;  %4154 = vmatmul.bf16.gmra.mxu0 %v4018_v43  ;;  %v3250_v32 = vadd.f32 %v6713_v34, %v2709_v53  ;;  %v3550_v18 = vshll.u32 %v6795_v47, 16  ;;  %v3028_v43 = vsel %vm1036_vm0, %v3023_v58, %v3027_v26 }
 0x22c   : > { %v4227_v51 = vadd.f32 %v4112_v6, %v3790_v15  ;;  %v2468_v15 = vshll.u32 %v6792_v29, 16  ;;  %v2466_v34 = vor.u32 %v2464_v52, %v2462_v45  ;;  %v6827_v52 = vld [vmem:[%s5990_s6 + $0x104] sm:$0xff] }
 0x22e   : > { %v4333_v2 = vadd.f32 %v6743_v7, %v4227_v51  ;;  %3717 = vmatmul.bf16.gmra.mxu3 %v3545_v60  ;;  %v2470_v31 = vrot.slane %v2468_v15, 1  ;;  %v4019_v51 = vrot.slane %v6803_v56, 1 }
 0x22f   : > { %3191 = vmatmul.bf16.gmra.mxu2 %v3028_v43 }
 0x230   : > { %v4367_v24 = vmax.f32 %v4333_v2, 0.0  ;;  %v2598_v48 = vpop.f32.mrf.mxu1  ;;  %v4117_v42 = vpop.f32.mrf.mxu0  ;;  %v3552_v2 = vrot.slane %v3550_v18, 1  ;;  %v4020_v45 = vsel %vm3995_vm1, %v4017_v16, %v4019_v51  ;;  %v3029_v16 = vshrl.u32 %v5722_v54, 16  ;;  %v6836_v54 = vld [vmem:[%s5990_s6 + $0x70] sm:$0xff] }
 0x231   : > { %v3678_v6 = vpop.f32.mrf.mxu3  ;;  %v2710_v60 = vadd.f32 %v2598_v48, %v6361_v40  ;;  %v2471_v40 = vsel %vm1036_vm0, %v2466_v34, %v2470_v31  ;;  %v6824_v48 = vld [vmem:[%s5990_s6 + $0x190] sm:$0xff] }
 0x232   : > { %v5791_v39 = vpack.c.bf16 %v4367_v24, %v4366_v25  ;;  %v3791_v63 = vadd.f32 %v3678_v6, %v3250_v32  ;;  %v6812_v13 = vpop.f32.mrf.mxu2  ;;  %v3553_v58 = vsel %vm1036_vm0, %v3548_v21, %v3552_v2  ;;  %v3031_v43 = vor.u32 %v3029_v16, %v3027_v26 }
 0x233   : > { %v3251_v1 = vadd.f32 %v6728_v5, %v2710_v60  ;;  %v6819_v5 = vld [vmem:[%s5990_s6 + $0x80] sm:$0xff] }
 0x234   : > { %5868 = vst [vmem:[%s6767_s21 + $0x8] sm:$0xff] %v5791_v39   ;;  %v4228_v53 = vadd.f32 %v4115_v4, %v3791_v63  ;;  %v3033_v15 = vshll.u32 %v6819_v5, 16 }
 0x236   : > { %v4334_v8 = vadd.f32 %v6743_v7, %v4228_v53  ;;  %v3035_v63 = vrot.slane %v3033_v15, 1  ;;  %v2472_v53 = vshrl.u32 %v6792_v29, 16 }
 0x238   : > { %v2601_v24 = vpop.f32.mrf.mxu1  ;;  %v4120_v6 = vpop.f32.mrf.mxu0  ;;  %v4368_v56 = vmax.f32 %v4334_v8, 0.0 }
 0x239   : > { %v3680_v44 = vpop.f32.mrf.mxu3  ;;  %v2711_v32 = vadd.f32 %v2601_v24, %v6372_v33  ;;  %v3036_v24 = vsel %vm1036_vm0, %v3031_v43, %v3035_v63 }
 0x23a   : > { %v3792_v25 = vadd.f32 %v3680_v44, %v3251_v1  ;;  %v6830_v46 = vpop.f32.mrf.mxu2  ;;  %v2476_v1 = vshll.u32 %v6824_v48, 16  ;;  %v3554_v44 = vshrl.u32 %v6795_v47, 16 }
 0x23b   : > { %2640 = vmatmul.bf16.gmra.mxu1 %v2471_v40  ;;  %4159 = vmatmul.bf16.gmra.mxu0 %v4020_v45  ;;  %v3252_v33 = vadd.f32 %v6746_v28, %v2711_v32  ;;  %v2474_v28 = vor.u32 %v2472_v53, %v2470_v31 }
 0x23c   : > { %v4229_v39 = vadd.f32 %v4117_v42, %v3792_v25  ;;  %v3558_v25 = vshll.u32 %v6827_v52, 16  ;;  %v2478_v45 = vrot.slane %v2476_v1, 1  ;;  %v3556_v29 = vor.u32 %v3554_v44, %v3552_v2 }
 0x23d   : > { %v2480_v44 = vshrl.u32 %v6824_v48, 16 }
 0x23e   : > { %v4335_v4 = vadd.f32 %v6743_v7, %v4229_v39  ;;  %3722 = vmatmul.bf16.gmra.mxu3 %v3553_v58  ;;  %v4021_v58 = vrot.slane %v6836_v54, 1  ;;  %v3560_v8 = vrot.slane %v3558_v25, 1 }
 0x23f   : > { %3196 = vmatmul.bf16.gmra.mxu2 %v3036_v24 }
 0x240   : > { %v4369_v42 = vmax.f32 %v4335_v4, 0.0  ;;  %v2603_v34 = vpop.f32.mrf.mxu1  ;;  %v4122_v21 = vpop.f32.mrf.mxu0  ;;  %v4022_v31 = vsel %vm3995_vm1, %v4019_v51, %v4021_v58 }
 0x241   : > { %v3683_v18 = vpop.f32.mrf.mxu3  ;;  %v2712_v40 = vadd.f32 %v2603_v34, %v6381_v36  ;;  %v2479_v36 = vsel %vm1036_vm0, %v2474_v28, %v2478_v45  ;;  %v6870_v28 = vld [vmem:[%s5990_s6 + $0x78] sm:$0xff] }
 0x242   : > { %v5796_v60 = vpack.c.bf16 %v4369_v42, %v4368_v56  ;;  %v3793_v26 = vadd.f32 %v3683_v18, %v3252_v33  ;;  %v6845_v47 = vpop.f32.mrf.mxu2  ;;  %v3561_v42 = vsel %vm1036_vm0, %v3556_v29, %v3560_v8  ;;  %v6860_v33 = vld [vmem:[%s5990_s6 + $0x10c] sm:$0xff] }
 0x243   : > { %v3253_v4 = vadd.f32 %v6762_v30, %v2712_v40  ;;  %v6852_v30 = vld [vmem:[%s5990_s6 + $0x198] sm:$0xff] }
 0x244   : > { %5869 = vst [vmem:[%s6767_s21 + $0x10] sm:$0xff] %v5796_v60   ;;  %v4230_v39 = vadd.f32 %v4120_v6, %v3793_v26  ;;  %v6857_v60 = vld [vmem:[%s5990_s6 + $0x88] sm:$0xff] }
 0x245   : > { %v3041_v1 = vshll.u32 %v6857_v60, 16 }
 0x246   : > { %v4336_v2 = vadd.f32 %v6743_v7, %v4230_v39 }
 0x247   : > { %v3043_v39 = vrot.slane %v3041_v1, 1 }
 0x248   : > { %v2606_v15 = vpop.f32.mrf.mxu1  ;;  %v4125_v56 = vpop.f32.mrf.mxu0  ;;  %v4370_v51 = vmax.f32 %v4336_v2, 0.0 }
 0x249   : > { %v3685_v32 = vpop.f32.mrf.mxu3  ;;  %v2713_v43 = vadd.f32 %v2606_v15, %v6389_v0  ;;  %v2484_v0 = vshll.u32 %v6852_v30, 16  ;;  %v2482_v15 = vor.u32 %v2480_v44, %v2478_v45  ;;  %v6889_v44 = vld [vmem:[%s5990_s6 + $0x1a0] sm:$0xff] }
 0x24a   : > { %v3794_v16 = vadd.f32 %v3685_v32, %v3253_v4  ;;  %v6862_v53 = vpop.f32.mrf.mxu2  ;;  %v3562_v4 = vshrl.u32 %v6827_v52, 16 }
 0x24b   : > { %2645 = vmatmul.bf16.gmra.mxu1 %v2479_v36  ;;  %4164 = vmatmul.bf16.gmra.mxu0 %v4022_v31  ;;  %v3254_v24 = vadd.f32 %v6782_v37, %v2713_v43  ;;  %v2486_v37 = vrot.slane %v2484_v0, 1  ;;  %v4023_v36 = vrot.slane %v6870_v28, 1  ;;  %v6892_v0 = vld [vmem:[%s5990_s6 + $0x114] sm:$0xff]  ;;  %v2488_v28 = vshrl.u32 %v6852_v30, 16 }
 0x24c   : > { %v4231_v18 = vadd.f32 %v4122_v21, %v3794_v16  ;;  %v3037_v21 = vshrl.u32 %v6819_v5, 16  ;;  %v3566_v5 = vshll.u32 %v6860_v33, 16  ;;  %v3564_v31 = vor.u32 %v3562_v4, %v3560_v8 }
 0x24d   : > { %v4024_v45 = vsel %vm3995_vm1, %v4021_v58, %v4023_v36 }
 0x24e   : > { %v4337_v6 = vadd.f32 %v6743_v7, %v4231_v18  ;;  %3727 = vmatmul.bf16.gmra.mxu3 %v3561_v42  ;;  %v3039_v29 = vor.u32 %v3037_v21, %v3035_v63  ;;  %v3568_v42 = vrot.slane %v3566_v5, 1  ;;  %v2807_v21 = vld [vmem:[%s5990_s6 + $0x90] sm:$0x1] }
 0x250   : > { %v4371_v34 = vmax.f32 %v4337_v6, 0.0  ;;  %v2608_v26 = vpop.f32.mrf.mxu1  ;;  %v4127_v40 = vpop.f32.mrf.mxu0  ;;  %v3044_v48 = vsel %vm1036_vm0, %v3039_v29, %v3043_v39 }
 0x251   : > { %v3688_v54 = vpop.f32.mrf.mxu3  ;;  %v2714_v16 = vadd.f32 %v2608_v26, %v6405_v57  ;;  %3201 = vmatmul.bf16.gmra.mxu2 %v3044_v48  ;;  %v3045_v26 = vshrl.u32 %v6857_v60, 16  ;;  %v6899_v48 = vld [vmem:[%s5990_s6 + $0x80] sm:$0xff] }
 0x252   : > { %v5801_v25 = vpack.c.bf16 %v4371_v34, %v4370_v51  ;;  %v3795_v32 = vadd.f32 %v3688_v54, %v3254_v24  ;;  %v6879_v18 = vpop.f32.mrf.mxu2  ;;  %v2487_v51 = vsel %vm1036_vm0, %v2482_v15, %v2486_v37  ;;  %v3569_v34 = vsel %vm1036_vm0, %v3564_v31, %v3568_v42 }
 0x253   : > { %v3255_v2 = vadd.f32 %v6797_v11, %v2714_v16  ;;  %v2894_v11 = vunpack.c.l.b16 %v2807_v21  ;;  %v2492_v16 = vshll.u32 %v6889_v44, 16  ;;  %v3047_v15 = vor.u32 %v3045_v26, %v3043_v39  ;;  %v6922_v26 = vld [vmem:[%s5990_s6 + $0x11c] sm:$0xff] }
 0x254   : > { %5870 = vst [vmem:[%s6767_s21 + $0x18] sm:$0xff] %v5801_v25   ;;  %v4232_v63 = vadd.f32 %v4125_v56, %v3795_v32  ;;  %v3570_v31 = vshrl.u32 %v6860_v33, 16 }
 0x255   : > { %v2912_v58 = vpack.c.b16 %v2894_v11, %v2894_v11 }
 0x256   : > { %v4338_v8 = vadd.f32 %v6743_v7, %v4232_v63  ;;  %v3574_v63 = vshll.u32 %v6892_v0, 16 }
 0x257   : > { %v3049_v29 = vshll.u32 %v2912_v58, 16 }
 0x258   : > { %v2611_v57 = vpop.f32.mrf.mxu1  ;;  %v4130_v43 = vpop.f32.mrf.mxu0  ;;  %v4372_v25 = vmax.f32 %v4338_v8, 0.0  ;;  %v3576_v39 = vrot.slane %v3574_v63, 1 }
 0x259   : > { %v3690_v52 = vpop.f32.mrf.mxu3  ;;  %v2715_v54 = vadd.f32 %v2611_v57, %v6418_v55  ;;  %v3051_v60 = vrot.slane %v3049_v29, 1  ;;  %v2494_v57 = vrot.slane %v2492_v16, 1 }
 0x25a   : > { %v3796_v6 = vadd.f32 %v3690_v52, %v3255_v2  ;;  %v6903_v2 = vpop.f32.mrf.mxu2 }
 0x25b   : > { %2650 = vmatmul.bf16.gmra.mxu1 %v2487_v51  ;;  %4169 = vmatmul.bf16.gmra.mxu0 %v4024_v45  ;;  %v3256_v5 = vadd.f32 %v6812_v13, %v2715_v54  ;;  %v3052_v13 = vsel %vm1036_vm0, %v3047_v15, %v3051_v60  ;;  %v4025_v51 = vrot.slane %v6899_v48, 1  ;;  %v3572_v45 = vor.u32 %v3570_v31, %v3568_v42  ;;  %v6928_v48 = vld [vmem:[%s5990_s6 + $0x88] sm:$0xff] }
 0x25c   : > { %v4233_v56 = vadd.f32 %v4127_v40, %v3796_v6  ;;  %v2490_v6 = vor.u32 %v2488_v28, %v2486_v37  ;;  %v3578_v15 = vshrl.u32 %v6892_v0, 16  ;;  %v3582_v31 = vshll.u32 %v6922_v26, 16  ;;  %v7019_v60 = vld [vmem:[#allocation4_spill] sm:$0xff]  ;;  %v3348_v0 = vld [vmem:[%s5990_s6 + $0x124] sm:$0x1] }
 0x25d   : > { %v3577_v37 = vsel %vm1036_vm0, %v3572_v45, %v3576_v39  ;;  %v2266_v45 = vld [vmem:[%s5990_s6 + $0x1b0] sm:$0x1] }
 0x25e   : > { %v4339_v1 = vadd.f32 %v6743_v7, %v4233_v56  ;;  %3732 = vmatmul.bf16.gmra.mxu3 %v3569_v34 }
 0x260   : > { %v4373_v24 = vmax.f32 %v4339_v1, 0.0  ;;  %v2613_v55 = vpop.f32.mrf.mxu1  ;;  %v4132_v32 = vpop.f32.mrf.mxu0  ;;  %v4026_v1 = vsel %vm3995_vm1, %v4023_v36, %v4025_v51 }
 0x261   : > { %v3693_v40 = vpop.f32.mrf.mxu3  ;;  %v2716_v52 = vadd.f32 %v2613_v55, %v6428_v62  ;;  %3206 = vmatmul.bf16.gmra.mxu2 %v3052_v13  ;;  %v2495_v62 = vsel %vm1036_vm0, %v2490_v6, %v2494_v57  ;;  %v4027_v13 = vrot.slane %v6928_v48, 1  ;;  %v3580_v6 = vor.u32 %v3578_v15, %v3576_v39 }
 0x262   : > { %v5806_v4 = vpack.c.bf16 %v4373_v24, %v4372_v25  ;;  %v3797_v30 = vadd.f32 %v3693_v40, %v3256_v5  ;;  %v6914_v42 = vpop.f32.mrf.mxu2  ;;  %v6919_v24 = vld [vmem:[%s5990_s6 + $0x1a8] sm:$0xff] }
 0x263   : > { %v3257_v33 = vadd.f32 %v6830_v46, %v2716_v52  ;;  %v2500_v16 = vshll.u32 %v6919_v24, 16 }
 0x264   : > { %5871 = vst [vmem:[%s6767_s21 + $0x20] sm:$0xff] %v5806_v4   ;;  %v4234_v34 = vadd.f32 %v4130_v43, %v3797_v30  ;;  %v7018_v43 = vld [vmem:[#allocation3_spill] sm:$0xff] }
 0x266   : > { %v4340_v54 = vadd.f32 %v6743_v7, %v4234_v34 }
 0x268   : > { %v2616_v56 = vpop.f32.mrf.mxu1  ;;  %v4135_v11 = vpop.f32.mrf.mxu0  ;;  %v4374_v36 = vmax.f32 %v4340_v54, 0.0  ;;  %v2353_v54 = vunpack.c.l.b16 %v2266_v45  ;;  %v7021_v45 = vld [vmem:[#allocation6_spill] sm:$0xff] }
 0x269   : > { %v3695_v21 = vpop.f32.mrf.mxu3  ;;  %v2717_v25 = vadd.f32 %v2616_v56, %v7018_v43 }
 0x26a   : > { %v3798_v8 = vadd.f32 %v3695_v21, %v3257_v33  ;;  %v6936_v34 = vpop.f32.mrf.mxu2 }
 0x26b   : > { %2655 = vmatmul.bf16.gmra.mxu1 %v2495_v62  ;;  %4174 = vmatmul.bf16.gmra.mxu0 %v4026_v1  ;;  %v3258_v4 = vadd.f32 %v6845_v47, %v2717_v25  ;;  %v2502_v47 = vrot.slane %v2500_v16, 1 }
 0x26c   : > { %v4235_v58 = vadd.f32 %v4132_v32, %v3798_v8  ;;  %v2496_v32 = vshrl.u32 %v6889_v44, 16  ;;  %v3584_v44 = vrot.slane %v3582_v31, 1 }
 0x26e   : > { %v4341_v46 = vadd.f32 %v6743_v7, %v4235_v58  ;;  %3737 = vmatmul.bf16.gmra.mxu3 %v3577_v37  ;;  %v2498_v52 = vor.u32 %v2496_v32, %v2494_v57  ;;  %v4028_v57 = vsel %vm3995_vm1, %v4025_v51, %v4027_v13  ;;  %v3585_v39 = vsel %vm1036_vm0, %v3580_v6, %v3584_v44 }
 0x26f   : > { %v3435_v58 = vunpack.c.l.b16 %v3348_v0  ;;  %v2504_v32 = vshrl.u32 %v6919_v24, 16 }
 0x270   : > { %v4375_v40 = vmax.f32 %v4341_v46, 0.0  ;;  %v2618_v5 = vpop.f32.mrf.mxu1  ;;  %v4137_v55 = vpop.f32.mrf.mxu0  ;;  %v2503_v37 = vsel %vm1036_vm0, %v2498_v52, %v2502_v47  ;;  %v3889_v46 = vld [vmem:[%s5990_s6 + $0x90] sm:$0x1] }
 0x271   : > { %v3698_v28 = vpop.f32.mrf.mxu3  ;;  %v2718_v30 = vadd.f32 %v2618_v5, %v7019_v60 }
 0x272   : > { %v5811_v29 = vpack.c.bf16 %v4375_v40, %v4374_v36  ;;  %v3799_v63 = vadd.f32 %v3698_v28, %v3258_v4  ;;  %v2371_v40 = vpack.c.b16 %v2353_v54, %v2353_v54  ;;  %v3976_v28 = vunpack.c.l.b16 %v3889_v46  ;;  %v3172_v16 = vpop.f32.mrf.mxu2 }
 0x273   : > { %v3259_v21 = vadd.f32 %v6862_v53, %v2718_v30  ;;  %v3586_v30 = vshrl.u32 %v6922_v26, 16 }
 0x274   : > { %5872 = vst [vmem:[%s6767_s21 + $0x28] sm:$0xff] %v5811_v29   ;;  %v4236_v33 = vadd.f32 %v4135_v11, %v3799_v63  ;;  %v7020_v11 = vld [vmem:[#allocation5_spill] sm:$0xff]  ;;  %v3453_v29 = vpack.c.b16 %v3435_v58, %v3435_v58  ;;  %v2508_v63 = vshll.u32 %v2371_v40, 16  ;;  %v3994_v60 = vpack.c.b16 %v3976_v28, %v3976_v28 }
 0x276   : > { %v4342_v43 = vadd.f32 %v6743_v7, %v4236_v33  ;;  %v3590_v52 = vshll.u32 %v3453_v29, 16  ;;  %v2510_v0 = vrot.slane %v2508_v63, 1 }
 0x278   : > { %v2621_v62 = vpop.f32.mrf.mxu1  ;;  %v4140_v1 = vpop.f32.mrf.mxu0  ;;  %v4376_v51 = vmax.f32 %v4342_v43, 0.0  ;;  %v3592_v24 = vrot.slane %v3590_v52, 1 }
 0x279   : > { %v3700_v8 = vpop.f32.mrf.mxu3  ;;  %v2719_v36 = vadd.f32 %v2621_v62, %v7020_v11 }
 0x27a   : > { %v3800_v56 = vadd.f32 %v3700_v8, %v3259_v21  ;;  %v2506_v21 = vor.u32 %v2504_v32, %v2502_v47  ;;  %v4029_v8 = vrot.slane %v3994_v60, 1  ;;  %v3174_v43 = vpop.f32.mrf.mxu2 }
 0x27b   : > { %2660 = vmatmul.bf16.gmra.mxu1 %v2503_v37  ;;  %4179 = vmatmul.bf16.gmra.mxu0 %v4028_v57 }
 0x27c   : > { %v4237_v25 = vadd.f32 %v4137_v55, %v3800_v56  ;;  %v3260_v55 = vadd.f32 %v6879_v18, %v2719_v36  ;;  %v3588_v56 = vor.u32 %v3586_v30, %v3584_v44  ;;  %v2511_v58 = vsel %vm1036_vm0, %v2506_v21, %v2510_v0 }
 0x27d   : > { %v4030_v26 = vsel %vm3995_vm1, %v4027_v13, %v4029_v8 }
 0x27e   : > { %v4343_v53 = vadd.f32 %v6743_v7, %v4237_v25  ;;  %3742 = vmatmul.bf16.gmra.mxu3 %v3585_v39  ;;  %v3593_v46 = vsel %vm1036_vm0, %v3588_v56, %v3592_v24 }
 0x280   : > { %v4377_v4 = vmax.f32 %v4343_v53, 0.0  ;;  %v2623_v15 = vpop.f32.mrf.mxu1  ;;  %v4142_v31 = vpop.f32.mrf.mxu0 }
 0x281   : > { %v3703_v5 = vpop.f32.mrf.mxu3  ;;  %v2720_v33 = vadd.f32 %v2623_v15, %v7021_v45 }
 0x282   : > { %v5816_v48 = vpack.c.bf16 %v4377_v4, %v4376_v51  ;;  %v3801_v6 = vadd.f32 %v3703_v5, %v3260_v55  ;;  %v3177_v4 = vpop.f32.mrf.mxu2 }
 0x283   : > { %v3261_v37 = vadd.f32 %v6903_v2, %v2720_v33 }
 0x284   : > { %5873 = vst [vmem:[%s6767_s21 + $0x30] sm:$0xff] %v5816_v48   ;;  %v4238_v62 = vadd.f32 %v4140_v1, %v3801_v6 }
 0x286   : > { %v4344_v47 = vadd.f32 %v6743_v7, %v4238_v62 }
 0x288   : > { %v2626_v54 = vpop.f32.mrf.mxu1  ;;  %v4145_v39 = vpop.f32.mrf.mxu0  ;;  %v4378_v1 = vmax.f32 %v4344_v47, 0.0 }
 0x289   : > { %v3705_v18 = vpop.f32.mrf.mxu3  ;;  %v2721_v2 = vadd.f32 %v2626_v54, %v6485_v41 }
 0x28a   : > { %v3802_v57 = vadd.f32 %v3705_v18, %v3261_v37  ;;  %v3179_v30 = vpop.f32.mrf.mxu2 }
 0x28b   : > { %2665 = vmatmul.bf16.gmra.mxu1 %v2511_v58  ;;  %4184 = vmatmul.bf16.gmra.mxu0 %v4030_v26  ;;  %v3262_v13 = vadd.f32 %v6914_v42, %v2721_v2 }
 0x28c   : > { %v4239_v25 = vadd.f32 %v4142_v31, %v3802_v57 }
 0x28e   : > { %v4345_v44 = vadd.f32 %v6743_v7, %v4239_v25  ;;  %3747 = vmatmul.bf16.gmra.mxu3 %v3593_v46 }
 0x290   : > { %v4379_v53 = vmax.f32 %v4345_v44, 0.0  ;;  %v2628_v40 = vpop.f32.mrf.mxu1  ;;  %v4147_v28 = vpop.f32.mrf.mxu0 }
 0x291   : > { %v3708_v11 = vpop.f32.mrf.mxu3  ;;  %v2722_v51 = vadd.f32 %v2628_v40, %v6495_v17 }
 0x292   : > { %v5821_v36 = vpack.c.bf16 %v4379_v53, %v4378_v1  ;;  %v3803_v29 = vadd.f32 %v3708_v11, %v3262_v13  ;;  %v3182_v37 = vpop.f32.mrf.mxu2 }
 0x293   : > { %v3263_v32 = vadd.f32 %v6936_v34, %v2722_v51 }
 0x294   : > { %5874 = vst [vmem:[%s6767_s21 + $0x38] sm:$0xff] %v5821_v36   ;;  %v4240_v5 = vadd.f32 %v4145_v39, %v3803_v29 }
 0x296   : > { %v4346_v31 = vadd.f32 %v6743_v7, %v4240_v5 }
 0x298   : > { %v2631_v55 = vpop.f32.mrf.mxu1  ;;  %v4150_v15 = vpop.f32.mrf.mxu0  ;;  %v4380_v52 = vmax.f32 %v4346_v31, 0.0 }
 0x299   : > { %v3710_v48 = vpop.f32.mrf.mxu3  ;;  %v2723_v60 = vadd.f32 %v2631_v55, %v6514_v9 }
 0x29a   : > { %v3804_v41 = vadd.f32 %v3710_v48, %v3263_v32  ;;  %v3184_v2 = vpop.f32.mrf.mxu2 }
 0x29b   : > { %v3264_v33 = vadd.f32 %v3172_v16, %v2723_v60 }
 0x29c   : > { %v4241_v63 = vadd.f32 %v4147_v28, %v3804_v41 }
 0x29e   : > { %v4347_v42 = vadd.f32 %v6743_v7, %v4241_v63 }
 0x2a0   : > { %v4381_v6 = vmax.f32 %v4347_v42, 0.0  ;;  %v2633_v21 = vpop.f32.mrf.mxu1  ;;  %v4152_v34 = vpop.f32.mrf.mxu0 }
 0x2a1   : > { %v3713_v17 = vpop.f32.mrf.mxu3  ;;  %v2724_v8 = vadd.f32 %v2633_v21, %v6523_v49 }
 0x2a2   : > { %v5826_v45 = vpack.c.bf16 %v4381_v6, %v4380_v52  ;;  %v3805_v0 = vadd.f32 %v3713_v17, %v3264_v33  ;;  %v3187_v5 = vpop.f32.mrf.mxu2 }
 0x2a3   : > { %v3265_v24 = vadd.f32 %v3174_v43, %v2724_v8 }
 0x2a4   : > { %5875 = vst [vmem:[%s6767_s21 + $0x40] sm:$0xff] %v5826_v45   ;;  %v4242_v56 = vadd.f32 %v4150_v15, %v3805_v0 }
 0x2a6   : > { %v4348_v54 = vadd.f32 %v6743_v7, %v4242_v56 }
 0x2a8   : > { %v2636_v57 = vpop.f32.mrf.mxu1  ;;  %v4155_v9 = vpop.f32.mrf.mxu0  ;;  %v4382_v26 = vmax.f32 %v4348_v54, 0.0 }
 0x2a9   : > { %v3715_v62 = vpop.f32.mrf.mxu3  ;;  %v2725_v16 = vadd.f32 %v2636_v57, %v6542_v27 }
 0x2aa   : > { %v3806_v18 = vadd.f32 %v3715_v62, %v3265_v24 }
 0x2ab   : > { %v3266_v49 = vadd.f32 %v3177_v4, %v2725_v16 }
 0x2ac   : > { %v4243_v39 = vadd.f32 %v4152_v34, %v3806_v18 }
 0x2ae   : > { %v4349_v58 = vadd.f32 %v6743_v7, %v4243_v39 }
 0x2b0   : > { %v4383_v46 = vmax.f32 %v4349_v58, 0.0  ;;  %v2638_v44 = vpop.f32.mrf.mxu1  ;;  %v4157_v43 = vpop.f32.mrf.mxu0 }
 0x2b1   : > { %v3718_v47 = vpop.f32.mrf.mxu3  ;;  %v2726_v53 = vadd.f32 %v2638_v44, %v6551_v50 }
 0x2b2   : > { %v5831_v25 = vpack.c.bf16 %v4383_v46, %v4382_v26  ;;  %v3807_v1 = vadd.f32 %v3718_v47, %v3266_v49 }
 0x2b3   : > { %v3267_v36 = vadd.f32 %v3179_v30, %v2726_v53  ;;  %v3189_v30 = vpop.f32.mrf.mxu2 }
 0x2b4   : > { %5876 = vst [vmem:[%s6767_s21 + $0x48] sm:$0xff] %v5831_v25   ;;  %v4244_v11 = vadd.f32 %v4155_v9, %v3807_v1 }
 0x2b6   : > { %v4350_v27 = vadd.f32 %v6743_v7, %v4244_v11 }
 0x2b8   : > { %v2641_v28 = vpop.f32.mrf.mxu1  ;;  %v4160_v29 = vpop.f32.mrf.mxu0  ;;  %v4384_v48 = vmax.f32 %v4350_v27, 0.0 }
 0x2b9   : > { %v3720_v13 = vpop.f32.mrf.mxu3  ;;  %v2727_v32 = vadd.f32 %v2641_v28, %v6570_v12 }
 0x2ba   : > { %v3808_v40 = vadd.f32 %v3720_v13, %v3267_v36 }
 0x2bb   : > { %v3268_v50 = vadd.f32 %v3182_v37, %v2727_v32  ;;  %v3192_v37 = vpop.f32.mrf.mxu2 }
 0x2bc   : > { %v4245_v51 = vadd.f32 %v4157_v43, %v3808_v40 }
 0x2be   : > { %v4351_v4 = vadd.f32 %v6743_v7, %v4245_v51 }
 0x2c0   : > { %v4385_v41 = vmax.f32 %v4351_v4, 0.0  ;;  %v2643_v31 = vpop.f32.mrf.mxu1  ;;  %v4162_v63 = vpop.f32.mrf.mxu0 }
 0x2c1   : > { %v3723_v55 = vpop.f32.mrf.mxu3  ;;  %v2728_v60 = vadd.f32 %v2643_v31, %v6579_v59 }
 0x2c2   : > { %v5836_v15 = vpack.c.bf16 %v4385_v41, %v4384_v48  ;;  %v3809_v42 = vadd.f32 %v3723_v55, %v3268_v50 }
 0x2c3   : > { %v3269_v6 = vadd.f32 %v3184_v2, %v2728_v60 }
 0x2c4   : > { %5877 = vst [vmem:[%s6767_s21 + $0x50] sm:$0xff] %v5836_v15   ;;  %v4246_v52 = vadd.f32 %v4160_v29, %v3809_v42 }
 0x2c6   : > { %v4352_v12 = vadd.f32 %v6743_v7, %v4246_v52 }
 0x2c8   : > { %v2646_v33 = vpop.f32.mrf.mxu1  ;;  %v4165_v21 = vpop.f32.mrf.mxu0  ;;  %v4386_v56 = vmax.f32 %v4352_v12, 0.0 }
 0x2c9   : > { %v3725_v17 = vpop.f32.mrf.mxu3  ;;  %v2729_v8 = vadd.f32 %v2646_v33, %v6598_v3  ;;  %v3194_v3 = vpop.f32.mrf.mxu2 }
 0x2ca   : > { %v3810_v45 = vadd.f32 %v3725_v17, %v3269_v6 }
 0x2cb   : > { %v3270_v18 = vadd.f32 %v3187_v5, %v2729_v8 }
 0x2cc   : > { %v4247_v34 = vadd.f32 %v4162_v63, %v3810_v45 }
 0x2ce   : > { %v4353_v0 = vadd.f32 %v6743_v7, %v4247_v34 }
 0x2d0   : > { %v4387_v24 = vmax.f32 %v4353_v0, 0.0  ;;  %v2648_v57 = vpop.f32.mrf.mxu1  ;;  %v4167_v9 = vpop.f32.mrf.mxu0 }
 0x2d1   : > { %v3728_v62 = vpop.f32.mrf.mxu3  ;;  %v2730_v39 = vadd.f32 %v2648_v57, %v6607_v38  ;;  %v3197_v27 = vpop.f32.mrf.mxu2 }
 0x2d2   : > { %v5841_v59 = vpack.c.bf16 %v4387_v24, %v4386_v56  ;;  %v3811_v54 = vadd.f32 %v3728_v62, %v3270_v18 }
 0x2d3   : > { %v3271_v16 = vadd.f32 %v3189_v30, %v2730_v39 }
 0x2d4   : > { %5878 = vst [vmem:[%s6767_s21 + $0x58] sm:$0xff] %v5841_v59   ;;  %v4248_v58 = vadd.f32 %v4165_v21, %v3811_v54 }
 0x2d6   : > { %v4354_v49 = vadd.f32 %v6743_v7, %v4248_v58 }
 0x2d8   : > { %v2651_v47 = vpop.f32.mrf.mxu1  ;;  %v4170_v25 = vpop.f32.mrf.mxu0  ;;  %v4388_v1 = vmax.f32 %v4354_v49, 0.0 }
 0x2d9   : > { %v3730_v26 = vpop.f32.mrf.mxu3  ;;  %v2731_v2 = vadd.f32 %v2651_v47, %v6626_v23  ;;  %v3199_v31 = vpop.f32.mrf.mxu2 }
 0x2da   : > { %v3812_v46 = vadd.f32 %v3730_v26, %v3271_v16 }
 0x2db   : > { %v3272_v38 = vadd.f32 %v3192_v37, %v2731_v2 }
 0x2dc   : > { %v4249_v44 = vadd.f32 %v4167_v9, %v3812_v46 }
 0x2de   : > { %v4355_v43 = vadd.f32 %v6743_v7, %v4249_v44 }
 0x2e0   : > { %v4389_v53 = vmax.f32 %v4355_v43, 0.0  ;;  %v2653_v13 = vpop.f32.mrf.mxu1  ;;  %v4172_v40 = vpop.f32.mrf.mxu0 }
 0x2e1   : > { %v3733_v11 = vpop.f32.mrf.mxu3  ;;  %v2732_v29 = vadd.f32 %v2653_v13, %v6635_v19  ;;  %v3202_v12 = vpop.f32.mrf.mxu2 }
 0x2e2   : > { %v5846_v36 = vpack.c.bf16 %v4389_v53, %v4388_v1  ;;  %v3813_v28 = vadd.f32 %v3733_v11, %v3272_v38 }
 0x2e3   : > { %v3273_v5 = vadd.f32 %v3194_v3, %v2732_v29 }
 0x2e4   : > { %5879 = vst [vmem:[%s6767_s21 + $0x60] sm:$0xff] %v5846_v36   ;;  %v4250_v51 = vadd.f32 %v4170_v25, %v3813_v28 }
 0x2e6   : > { %v4356_v23 = vadd.f32 %v6743_v7, %v4250_v51 }
 0x2e8   : > { %v2656_v48 = vpop.f32.mrf.mxu1  ;;  %v4175_v41 = vpop.f32.mrf.mxu0  ;;  %v4390_v63 = vmax.f32 %v4356_v23, 0.0 }
 0x2e9   : > { %v3735_v4 = vpop.f32.mrf.mxu3  ;;  %v2733_v50 = vadd.f32 %v2656_v48, %v6654_v61  ;;  %v3204_v39 = vpop.f32.mrf.mxu2 }
 0x2ea   : > { %v3814_v32 = vadd.f32 %v3735_v4, %v3273_v5 }
 0x2eb   : > { %v3274_v30 = vadd.f32 %v3197_v27, %v2733_v50 }
 0x2ec   : > { %v4251_v55 = vadd.f32 %v4172_v40, %v3814_v32 }
 0x2ee   : > { %v4357_v15 = vadd.f32 %v6743_v7, %v4251_v55 }
 0x2f0   : > { %v4391_v42 = vmax.f32 %v4357_v15, 0.0  ;;  %v2658_v52 = vpop.f32.mrf.mxu1  ;;  %v4177_v6 = vpop.f32.mrf.mxu0 }
 0x2f1   : > { %v3738_v60 = vpop.f32.mrf.mxu3  ;;  %v2734_v45 = vadd.f32 %v2658_v52, %v6663_v20  ;;  %v3207_v43 = vpop.f32.mrf.mxu2 }
 0x2f2   : > { %v5851_v19 = vpack.c.bf16 %v4391_v42, %v4390_v63  ;;  %v3815_v17 = vadd.f32 %v3738_v60, %v3274_v30 }
 0x2f3   : > { %v3275_v21 = vadd.f32 %v3199_v31, %v2734_v45 }
 0x2f4   : > { %5880 = vst [vmem:[%s6767_s21 + $0x68] sm:$0xff] %v5851_v19   ;;  %v4252_v33 = vadd.f32 %v4175_v41, %v3815_v17 }
 0x2f6   : > { %v4358_v61 = vadd.f32 %v6743_v7, %v4252_v33 }
 0x2f8   : > { %v2661_v8 = vpop.f32.mrf.mxu1  ;;  %v4180_v24 = vpop.f32.mrf.mxu0  ;;  %v4392_v59 = vmax.f32 %v4358_v61, 0.0 }
 0x2f9   : > { %v3740_v34 = vpop.f32.mrf.mxu3  ;;  %v2735_v37 = vadd.f32 %v2661_v8, %v6682_v14  ;;  %v3209_v27 = vpop.f32.mrf.mxu2 }
 0x2fa   : > { %v3816_v0 = vadd.f32 %v3740_v34, %v3275_v21 }
 0x2fb   : > { %v3276_v20 = vadd.f32 %v3202_v12, %v2735_v37 }
 0x2fc   : > { %v4253_v56 = vadd.f32 %v4177_v6, %v3816_v0 }
 0x2fe   : > { %v4359_v62 = vadd.f32 %v6743_v7, %v4253_v56 }
 0x300   : > { %v4393_v18 = vmax.f32 %v4359_v62, 0.0  ;;  %v2663_v54 = vpop.f32.mrf.mxu1  ;;  %v4182_v26 = vpop.f32.mrf.mxu0 }
 0x301   : > { %v3743_v57 = vpop.f32.mrf.mxu3  ;;  %v2736_v16 = vadd.f32 %v2663_v54, %v6691_v10 }
 0x302   : > { %v5856_v9 = vpack.c.bf16 %v4393_v18, %v4392_v59  ;;  %v3817_v58 = vadd.f32 %v3743_v57, %v3276_v20 }
 0x303   : > { %v3277_v47 = vadd.f32 %v3204_v39, %v2736_v16 }
 0x304   : > { %5881 = vst [vmem:[%s6767_s21 + $0x70] sm:$0xff] %v5856_v9   ;;  %v4254_v46 = vadd.f32 %v4180_v24, %v3817_v58 }
 0x306   : > { %v4360_v14 = vadd.f32 %v6743_v7, %v4254_v46 }
 0x308   : > { %v2666_v49 = vpop.f32.mrf.mxu1  ;;  %v4394_v53 = vmax.f32 %v4360_v14, 0.0  ;;  %v4185_v36 = vpop.f32.mrf.mxu0 }
 0x309   : > { %v3745_v25 = vpop.f32.mrf.mxu3  ;;  %v2737_v1 = vadd.f32 %v2666_v49, %v6709_v35  ;;  %v5919_v35 = vld [vmem:[%s7012_s2] ss:$0 sm:$0xff] }
 0x30a   : > { %v3818_v3 = vadd.f32 %v3745_v25, %v3277_v47 }
 0x30b   : > { %v3278_v13 = vadd.f32 %v3207_v43, %v2737_v1 }
 0x30c   : > { %v4255_v44 = vadd.f32 %v4182_v26, %v3818_v3 }
 0x30e   : > { %v4361_v2 = vadd.f32 %v6743_v7, %v4255_v44 }
 0x310   : > { %v4395_v11 = vmax.f32 %v4361_v2, 0.0  ;;  %v2668_v40 = vpop.f32.mrf.mxu1  ;;  %v4187_v7 = vpop.f32.mrf.mxu0 }
 0x311   : > { %v3748_v38 = vpop.f32.mrf.mxu3  ;;  %v2738_v29 = vadd.f32 %v2668_v40, %v6718_v22 }
 0x312   : > { %v5861_v10 = vpack.c.bf16 %v4395_v11, %v4394_v53  ;;  %v3819_v28 = vadd.f32 %v3748_v38, %v3278_v13 }
 0x313   : > { %v3279_v5 = vadd.f32 %v3209_v27, %v2738_v29 }
 0x314   : > { %5882 = vst [vmem:[%s6767_s21 + $0x78] sm:$0xff] %v5861_v10   ;;  %v4256_v51 = vadd.f32 %v4185_v36, %v3819_v28 }
 0x316   : > { %v4362_v48 = vadd.f32 %v5919_v35, %v4256_v51 }
 0x318   : > { %v4396_v55 = vmax.f32 %v4362_v48, 0.0 }
 0x319   : > { %v3750_v4 = vpop.f32.mrf.mxu3 }
 0x31a   : > { %v3820_v32 = vadd.f32 %v3750_v4, %v3279_v5 }
 0x31c   : > { %v4257_v41 = vadd.f32 %v4187_v7, %v3820_v32 }
 0x31e   : > { %v4363_v23 = vadd.f32 %v5919_v35, %v4257_v41 }
 0x320   : > { %v4397_v15 = vmax.f32 %v4363_v23, 0.0 }
 0x322   : > { %v5866_v50 = vpack.c.bf16 %v4397_v15, %v4396_v55 }
 0x324   : > { %5883 = vst [vmem:[%s6767_s21 + $0x80] sm:$0xff] %v5866_v50  }
 0x325 PF: > { %s13_s12 = sadd.s32 1, %s5926_s12  }
 0x326   : > { %p10_p4 = scmp.ge.s32.totalorder %s13_s12, 4  }
 0x328   :  { %12 = sbr.rel (!%p10_p4) target bundleno = 1 (0x1), region = 70 }

// kernel: _forward_core.8
= control target key start
LH: loop header
LB: loop body
LE: loop exit
PB: predicated region body
PF: predicated region fallthrough
CT: control target
= control target key end

     0   :  { %s499_s12 = smov 0   ;;  %s543_s0 = inlined_call_operand.vmem [shape: bf16[128,128], index: 0, kind: input, shape index: {}]   ;;  %s544_s1 = inlined_call_operand.vmem [shape: bf16[128,128], index: 1, kind: input, shape index: {}]   ;;  %s545_s2 = inlined_call_operand.vmem [shape: f32[1,128], index: 2, kind: input, shape index: {}]   ;;  %s546_s3 = inlined_call_operand.vmem [shape: f32[128,128], index: 3, kind: output, shape index: {}]  }
   0x1 LB: > { %s367_s13 = sadd.s32 4294967295, %s477_s12   ;;  %p371_p0 = scmp.ge.s32.totalorder %s477_s12, 1  ;;  %s477_s12 = sphi %s499_s12, %s13_s12  }
   0x2   : > { %p138_p1 = scmp.lt.s32.totalorder %s477_s12, 3 }
   0x4   : > { %p139_p2 = pnand %p371_p0, %p138_p1 }
   0x5   : > { %s372_s22 = sshll.u32 (!%p139_p2), %s367_s13, 3 }
   0x6   : > { %142 = sbr.rel (%p139_p2) target bundleno = 188 (0xbc), region = 32  ;;  %p163_p3 = scmp.lt.s32.totalorder (!%p139_p2), %s372_s22, 15 }
   0xb   : > { %v437_v0 = vld [vmem:[%s544_s1 + $0x38] sm:$0xff]  ;;  %v436_v1 = vld [vmem:[%s544_s1 + $0x30] sm:$0xff]  ;;  %v435_v2 = vld [vmem:[%s544_s1 + $0x28] sm:$0xff]  ;;  %s548_s22 = smov (!%p163_p3, %s372_s22), 15 }
   0xc   : > { %274 = vmatpush.bf16.msra.mxu0 %v437_v0  ;;  %438 = vmatpush.bf16.msra.mxu1 %v437_v0  ;;  %v434_v3 = vld [vmem:[%s544_s1 + $0x20] sm:$0xff]  ;;  %v433_v4 = vld [vmem:[%s544_s1 + $0x18] sm:$0xff]  ;;  %v432_v5 = vld [vmem:[%s544_s1 + $0x10] sm:$0xff]  ;;  %s373_s29 = sshll.u32 %s548_s22, 2  ;;  %s375_s8 = sshll.u32 %s548_s22, 3 }
   0xd   : > { %439 = vmatpush.bf16.msra.mxu2 %v437_v0  ;;  %440 = vmatpush.bf16.msra.mxu3 %v437_v0  ;;  %v431_v6 = vld [vmem:[%s544_s1 + $0x8] sm:$0xff]  ;;  %v430_v7 = vld [vmem:[%s544_s1] sm:$0xff]  ;;  %s166_s7 = scalar_lea.vmem %s543_s0, %s373_s29  ;;  %s172_s14 = scalar_lea.vmem %s546_s3, %s375_s8 }
   0xe   : > { %v426_v8 = vld [vmem:[%s166_s7] sm:$0xff]  ;;  %v427_v9 = vld [vmem:[%s166_s7 + $0x8] sm:$0xff]  ;;  %v428_v10 = vld [vmem:[%s166_s7 + $0x10] sm:$0xff] }
   0xf   : > { %v429_v11 = vld [vmem:[%s166_s7 + $0x18] sm:$0xff]  ;;  %v470_v12 = vld [vmem:[%s545_s2] ss:$0 sm:$0xff] }
  0x10   : > { %275 = vmatpush.bf16.msra.mxu0 %v436_v1  ;;  %441 = vmatpush.bf16.msra.mxu1 %v436_v1 }
  0x11   : > { %442 = vmatpush.bf16.msra.mxu2 %v436_v1  ;;  %443 = vmatpush.bf16.msra.mxu3 %v436_v1 }
  0x14   : > { %276 = vmatpush.bf16.msra.mxu0 %v435_v2  ;;  %444 = vmatpush.bf16.msra.mxu1 %v435_v2 }
  0x15   : > { %445 = vmatpush.bf16.msra.mxu2 %v435_v2  ;;  %446 = vmatpush.bf16.msra.mxu3 %v435_v2 }
  0x18   : > { %277 = vmatpush.bf16.msra.mxu0 %v434_v3  ;;  %447 = vmatpush.bf16.msra.mxu1 %v434_v3 }
  0x19   : > { %448 = vmatpush.bf16.msra.mxu2 %v434_v3  ;;  %449 = vmatpush.bf16.msra.mxu3 %v434_v3 }
  0x1c   : > { %278 = vmatpush.bf16.msra.mxu0 %v433_v4  ;;  %450 = vmatpush.bf16.msra.mxu1 %v433_v4 }
  0x1d   : > { %451 = vmatpush.bf16.msra.mxu2 %v433_v4  ;;  %452 = vmatpush.bf16.msra.mxu3 %v433_v4 }
  0x20   : > { %279 = vmatpush.bf16.msra.mxu0 %v432_v5  ;;  %453 = vmatpush.bf16.msra.mxu1 %v432_v5 }
  0x21   : > { %454 = vmatpush.bf16.msra.mxu2 %v432_v5  ;;  %455 = vmatpush.bf16.msra.mxu3 %v432_v5 }
  0x24   : > { %280 = vmatpush.bf16.msra.mxu0 %v431_v6  ;;  %456 = vmatpush.bf16.msra.mxu1 %v431_v6 }
  0x25   : > { %457 = vmatpush.bf16.msra.mxu2 %v431_v6  ;;  %458 = vmatpush.bf16.msra.mxu3 %v431_v6 }
  0x28   : > { %281 = vmatpush.bf16.msra.mxu0 %v430_v7  ;;  %459 = vmatpush.bf16.msra.mxu1 %v430_v7 }
  0x29   : > { %460 = vmatpush.bf16.msra.mxu2 %v430_v7  ;;  %461 = vmatpush.bf16.msra.mxu3 %v430_v7 }
  0x2b   : > { %282 = vmatmul.bf16.vlgmr.msra.gmra.mxu0 %v426_v8  ;;  %287 = vmatmul.bf16.vlgmr.msra.gmra.mxu1 %v427_v9 }
  0x2c   : > { %292 = vmatmul.bf16.vlgmr.msra.gmra.mxu2 %v428_v10  ;;  %297 = vmatmul.bf16.vlgmr.msra.gmra.mxu3 %v429_v11 }
  0xa8   : > { %v283_v13 = vpop.f32.mrf.mxu0  ;;  %v288_v14 = vpop.f32.mrf.mxu1 }
  0xa9   : > { %v284_v15 = vadd.f32 %v470_v12, %v283_v13  ;;  %v289_v16 = vadd.f32 %v470_v12, %v288_v14 }
  0xab   : > { %303 = vst [vmem:[%s172_s14] sm:$0xff] %v284_v15 }
  0xac   : > { %305 = vst [vmem:[%s172_s14 + $0x10] sm:$0xff] %v289_v16 }
  0xaf   : > { %v293_v17 = vpop.f32.mrf.mxu2  ;;  %v298_v18 = vpop.f32.mrf.mxu3 }
  0xb0   : > { %v294_v19 = vadd.f32 %v470_v12, %v293_v17  ;;  %v299_v20 = vadd.f32 %v470_v12, %v298_v18  ;;  %v285_v21 = vpop.f32.mrf.mxu0  ;;  %v290_v22 = vpop.f32.mrf.mxu1 }
  0xb1   : > { %v286_v23 = vadd.f32 %v470_v12, %v285_v21  ;;  %v291_v24 = vadd.f32 %v470_v12, %v290_v22 }
  0xb2   : > { %307 = vst [vmem:[%s172_s14 + $0x20] sm:$0xff] %v294_v19 }
  0xb3   : > { %309 = vst [vmem:[%s172_s14 + $0x30] sm:$0xff] %v299_v20 }
  0xb4   : > { %304 = vst [vmem:[%s172_s14 + $0x8] sm:$0xff] %v286_v23 }
  0xb5   : > { %306 = vst [vmem:[%s172_s14 + $0x18] sm:$0xff] %v291_v24 }
  0xb7   : > { %v295_v25 = vpop.f32.mrf.mxu2  ;;  %v300_v26 = vpop.f32.mrf.mxu3 }
  0xb8   : > { %v296_v27 = vadd.f32 %v470_v12, %v295_v25  ;;  %v301_v28 = vadd.f32 %v470_v12, %v300_v26 }
  0xba   : > { %308 = vst [vmem:[%s172_s14 + $0x28] sm:$0xff] %v296_v27 }
  0xbb   : > { %310 = vst [vmem:[%s172_s14 + $0x38] sm:$0xff] %v301_v28 }
  0xbc PF: > { %s13_s12 = sadd.s32 1, %s477_s12  }
  0xbd   : > { %p10_p4 = scmp.ge.s32.totalorder %s13_s12, 4  }
  0xbf   :  { %12 = sbr.rel (!%p10_p4) target bundleno = 1 (0x1), region = 62 }

// kernel: _forward_core.6
= control target key start
LH: loop header
LB: loop body
LE: loop exit
PB: predicated region body
PF: predicated region fallthrough
CT: control target
= control target key end

     0   :  { %s2676_s12 = smov 0   ;;  %s3056_s0 = inlined_call_operand.vmem [shape: bf16[2,352,128], index: 0, kind: input, shape index: {}]   ;;  %s3057_s1 = inlined_call_operand.vmem [shape: bf16[9,128,128], index: 1, kind: input, shape index: {}]   ;;  %s3058_s2 = inlined_call_operand.vmem [shape: f32[1,128], index: 2, kind: input, shape index: {}]   ;;  %s3059_s3 = inlined_call_operand.vmem [shape: bf16[2,72,128], index: 3, kind: output, shape index: {}]  }
   0x1 LB: > { %s1896_s13 = sadd.s32 4294967295, %s2654_s12   ;;  %p1900_p0 = scmp.ge.s32.totalorder %s2654_s12, 1  ;;  %s2654_s12 = sphi %s2676_s12, %s13_s12  }
   0x2   : > { %p137_p1 = scmp.lt.s32.totalorder %s2654_s12, 3 }
   0x4   : > { %p138_p2 = pnand %p1900_p0, %p137_p1 }
   0x5   : > { %p161_p3 = scmp.lt.s32.totalorder (!%p138_p2), %s1896_s13, 1 }
   0x6   : > { %141 = sbr.rel (%p138_p2) target bundleno = 367 (0x16f), region = 32 }
   0xb   : > { %v2496_v0 = vld [vmem:[%s3057_s1 + $0x38] sm:$0xff]  ;;  %v2495_v1 = vld [vmem:[%s3057_s1 + $0x30] sm:$0xff]  ;;  %v2494_v4 = vld [vmem:[%s3057_s1 + $0x28] sm:$0xff]  ;;  %s3061_s13 = smov (!%p161_p3, %s1896_s13), 1  ;;  %vm528_vm0 = vsmask.f32 7424 }
   0xc   : > { %272 = vmatpush.bf16.msra.mxu0 %v2496_v0  ;;  %2621 = vmatpush.bf16.msra.mxu1 %v2496_v0  ;;  %v2533_v2 = vld [vmem:[%s3057_s1 + $0xf8] sm:$0xff]  ;;  %v2532_v3 = vld [vmem:[%s3057_s1 + $0xf0] sm:$0xff]  ;;  %v2531_v5 = vld [vmem:[%s3057_s1 + $0xe8] sm:$0xff]  ;;  %s2637_s9 = smul.u32 176, %s3061_s13  ;;  %vm1669_vm1 = vcmask 1046528  }
   0xd   : > { %2622 = vmatpush.bf16.msra.mxu2 %v2496_v0  ;;  %783 = vmatpush.bf16.msra.mxu3 %v2533_v2  ;;  %v2493_v6 = vld [vmem:[%s3057_s1 + $0x20] sm:$0xff]  ;;  %v2492_v8 = vld [vmem:[%s3057_s1 + $0x18] sm:$0xff]  ;;  %v2491_v10 = vld [vmem:[%s3057_s1 + $0x10] sm:$0xff]  ;;  %s2638_s17 = smul.u32 36, %s3061_s13 }
   0xe   : > { %v2530_v7 = vld [vmem:[%s3057_s1 + $0xe0] sm:$0xff]  ;;  %v2529_v9 = vld [vmem:[%s3057_s1 + $0xd8] sm:$0xff]  ;;  %v2528_v11 = vld [vmem:[%s3057_s1 + $0xd0] sm:$0xff]  ;;  %s2729_s18 = scalar_lea.vmem %s3056_s0, %s2637_s9 }
   0xf   : > { %v2490_v12 = vld [vmem:[%s3057_s1 + $0x8] sm:$0xff]  ;;  %v179_v13 = vld [vmem:[%s2729_s18 + $0x20] sm:$0xf]  ;;  %v2508_v17 = vld [vmem:[%s3057_s1 + $0x78] sm:$0xff]  ;;  %s3033_s21 = scalar_lea.vmem %s3059_s3, %s2638_s17 }
  0x10   : > { %273 = vmatpush.bf16.msra.mxu0 %v2495_v1  ;;  %2623 = vmatpush.bf16.msra.mxu1 %v2495_v1  ;;  %v2527_v14 = vld [vmem:[%s3057_s1 + $0xc8] sm:$0xff]  ;;  %v2489_v15 = vld [vmem:[%s3057_s1] sm:$0xff]  ;;  %v213_v16 = vunpack.c.l.b16 %v179_v13  ;;  %v2521_v18 = vld [vmem:[%s3057_s1 + $0xb8] sm:$0xff] }
  0x11   : > { %2624 = vmatpush.bf16.msra.mxu2 %v2495_v1  ;;  %784 = vmatpush.bf16.msra.mxu3 %v2532_v3  ;;  %v2545_v19 = vld [vmem:[%s3057_s1 + $0x138] sm:$0xff]  ;;  %v2485_v20 = vld [vmem:[%s2729_s18] sm:$0xff]  ;;  %v2487_v21 = vld [vmem:[%s2729_s18 + $0x10] sm:$0xff] }
  0x12   : > { %v218_v22 = vpack.c.b16 %v213_v16, %v213_v16  ;;  %v2526_v23 = vld [vmem:[%s3057_s1 + $0xc0] sm:$0xff]  ;;  %v2507_v24 = vld [vmem:[%s3057_s1 + $0x70] sm:$0xff]  ;;  %v2584_v25 = vld [vmem:[%s3057_s1 + $0x1f8] sm:$0xff] }
  0x13   : > { %v2520_v26 = vld [vmem:[%s3057_s1 + $0xb0] sm:$0xff]  ;;  %v2522_v28 = vld [vmem:[%s2729_s18 + $0x58] sm:$0xff]  ;;  %v2506_v29 = vld [vmem:[%s3057_s1 + $0x68] sm:$0xff] }
  0x14   : > { %274 = vmatpush.bf16.msra.mxu0 %v2494_v4  ;;  %2625 = vmatpush.bf16.msra.mxu1 %v2494_v4  ;;  %v2544_v27 = vld [vmem:[%s3057_s1 + $0x130] sm:$0xff]  ;;  %v2519_v31 = vld [vmem:[%s3057_s1 + $0xa8] sm:$0xff]  ;;  %v2505_v33 = vld [vmem:[%s3057_s1 + $0x60] sm:$0xff] }
  0x15   : > { %2626 = vmatpush.bf16.msra.mxu2 %v2494_v4  ;;  %785 = vmatpush.bf16.msra.mxu3 %v2531_v5  ;;  %v2583_v30 = vld [vmem:[%s3057_s1 + $0x1f0] sm:$0xff]  ;;  %v2543_v32 = vld [vmem:[%s3057_s1 + $0x128] sm:$0xff]  ;;  %v2518_v34 = vld [vmem:[%s3057_s1 + $0xa0] sm:$0xff] }
  0x16   : > { %v2542_v35 = vld [vmem:[%s3057_s1 + $0x120] sm:$0xff]  ;;  %v2504_v36 = vld [vmem:[%s3057_s1 + $0x58] sm:$0xff]  ;;  %v2486_v40 = vld [vmem:[%s2729_s18 + $0x8] sm:$0xff] }
  0x17   : > { %v2517_v37 = vld [vmem:[%s3057_s1 + $0x98] sm:$0xff]  ;;  %v2509_v39 = vld [vmem:[%s2729_s18] sm:$0xff]  ;;  %v2503_v42 = vld [vmem:[%s3057_s1 + $0x50] sm:$0xff] }
  0x18   : > { %275 = vmatpush.bf16.msra.mxu0 %v2493_v6  ;;  %2627 = vmatpush.bf16.msra.mxu1 %v2493_v6  ;;  %v2541_v38 = vld [vmem:[%s3057_s1 + $0x118] sm:$0xff]  ;;  %v2516_v43 = vld [vmem:[%s3057_s1 + $0x90] sm:$0xff]  ;;  %v2808_v45 = vld [vmem:[%s2729_s18 + $0x8] sm:$0xff]  ;;  %v532_v46 = vshll.u32 %v2509_v39, 16  ;;  %v530_v52 = vshrl.u32 %v2509_v39, 16 }
  0x19   : > { %2628 = vmatpush.bf16.msra.mxu2 %v2493_v6  ;;  %786 = vmatpush.bf16.msra.mxu3 %v2530_v7  ;;  %v2488_v41 = vld [vmem:[%s2729_s18 + $0x18] sm:$0xff]  ;;  %v2540_v44 = vld [vmem:[%s3057_s1 + $0x110] sm:$0xff]  ;;  %v2523_v47 = vld [vmem:[%s2729_s18 + $0x60] sm:$0xff]  ;;  %v537_v54 = vshll.u32 %v2808_v45, 16 }
  0x1a   : > { %v2582_v48 = vld [vmem:[%s3057_s1 + $0x1e8] sm:$0xff]  ;;  %v534_v53 = vrot.slane %v532_v46, 1  ;;  %v2501_v55 = vld [vmem:[%s3057_s1 + $0x40] sm:$0xff]  ;;  %v2571_v60 = vld [vmem:[%s3057_s1 + $0x1b8] sm:$0xff] }
  0x1b   : > { %v2502_v49 = vld [vmem:[%s3057_s1 + $0x48] sm:$0xff]  ;;  %v2514_v56 = vld [vmem:[%s3057_s1 + $0x80] sm:$0xff]  ;;  %v539_v58 = vrot.slane %v537_v54, 1  ;;  %v2558_v61 = vld [vmem:[%s3057_s1 + $0x178] sm:$0xff] }
  0x1c   : > { %276 = vmatpush.bf16.msra.mxu0 %v2492_v8  ;;  %2629 = vmatpush.bf16.msra.mxu1 %v2492_v8  ;;  %v2515_v50 = vld [vmem:[%s3057_s1 + $0x88] sm:$0xff]  ;;  %v535_v57 = vor.u32 %v534_v53, %v530_v52  ;;  %v2538_v59 = vld [vmem:[%s3057_s1 + $0x100] sm:$0xff]  ;;  %v2597_v62 = vld [vmem:[%s3057_s1 + $0x238] sm:$0xff] }
  0x1d   : > { %2630 = vmatpush.bf16.msra.mxu2 %v2492_v8  ;;  %787 = vmatpush.bf16.msra.mxu3 %v2529_v9  ;;  %v2539_v51 = vld [vmem:[%s3057_s1 + $0x108] sm:$0xff]  ;;  %v2570_v2 = vld [vmem:[%s3057_s1 + $0x1b0] sm:$0xff]  ;;  %v2581_v5 = vld [vmem:[%s3057_s1 + $0x1e0] sm:$0xff] }
  0x1e   : > { %v540_v63 = vsel %vm528_vm0, %v535_v57, %v539_v58  ;;  %v2497_v0 = vld [vmem:[%s2729_s18 + $0x2c] sm:$0xff]  ;;  %v2534_v1 = vld [vmem:[%s2729_s18 + $0x84] sm:$0xff]  ;;  %v2499_v39 = vld [vmem:[%s2729_s18 + $0x3c] sm:$0xff] }
  0x1f   : > { %v2557_v3 = vld [vmem:[%s3057_s1 + $0x170] sm:$0xff]  ;;  %v2524_v7 = vld [vmem:[%s2729_s18 + $0x68] sm:$0xff]  ;;  %v2594_v16 = vld [vmem:[%s3057_s1 + $0x220] sm:$0xff] }
  0x20   : > { %277 = vmatpush.bf16.msra.mxu0 %v2491_v10  ;;  %2631 = vmatpush.bf16.msra.mxu1 %v2491_v10  ;;  %v2596_v4 = vld [vmem:[%s3057_s1 + $0x230] sm:$0xff]  ;;  %v2569_v8 = vld [vmem:[%s3057_s1 + $0x1a8] sm:$0xff]  ;;  %v2573_v54 = vld [vmem:[%s2729_s18 + $0x38] sm:$0xff] }
  0x21   : > { %2632 = vmatpush.bf16.msra.mxu2 %v2491_v10  ;;  %788 = vmatpush.bf16.msra.mxu3 %v2528_v11  ;;  %v2511_v6 = vld [vmem:[%s2729_s18 + $0x10] sm:$0xff]  ;;  %v2556_v9 = vld [vmem:[%s3057_s1 + $0x168] sm:$0xff]  ;;  %v2580_v11 = vld [vmem:[%s3057_s1 + $0x1d8] sm:$0xff] }
  0x22   : > { %v2595_v10 = vld [vmem:[%s3057_s1 + $0x228] sm:$0xff]  ;;  %v545_v13 = vshll.u32 %v2511_v6, 16 }
  0x24   : > { %278 = vmatpush.bf16.msra.mxu0 %v2490_v12  ;;  %2633 = vmatpush.bf16.msra.mxu1 %v2490_v12 }
  0x25   : > { %2634 = vmatpush.bf16.msra.mxu2 %v2490_v12  ;;  %789 = vmatpush.bf16.msra.mxu3 %v2527_v14  ;;  %v541_v12 = vshrl.u32 %v2808_v45, 16  ;;  %v2568_v14 = vld [vmem:[%s3057_s1 + $0x1a0] sm:$0xff] }
  0x28   : > { %279 = vmatpush.bf16.msra.mxu0 %v2489_v15  ;;  %2635 = vmatpush.bf16.msra.mxu1 %v2489_v15 }
  0x29   : > { %2636 = vmatpush.bf16.msra.mxu2 %v2489_v15  ;;  %790 = vmatpush.bf16.msra.mxu3 %v2526_v23  ;;  %v2555_v15 = vld [vmem:[%s3057_s1 + $0x160] sm:$0xff]  ;;  %v2535_v23 = vld [vmem:[%s2729_s18 + $0x8c] sm:$0xff] }
  0x2b   : > { %280 = vmatmul.bf16.vlgmr.msra.gmra.mxu0 %v2485_v20  ;;  %290 = vmatmul.bf16.vlgmr.msra.gmra.mxu1 %v2487_v21  ;;  %v2554_v20 = vld [vmem:[%s3057_s1 + $0x158] sm:$0xff] }
  0x2c   : > { %416 = vmatpush.bf16.msrb.mxu1 %v2508_v17  ;;  %945 = vmatpush.bf16.msrb.mxu0 %v2545_v19  ;;  %v543_v17 = vor.u32 %v541_v12, %v539_v58  ;;  %v2567_v19 = vld [vmem:[%s3057_s1 + $0x198] sm:$0xff] }
  0x2d   : > { %621 = vmatpush.bf16.msrb.mxu2 %v2521_v18  ;;  %1557 = vmatpush.bf16.msrb.mxu3 %v2584_v25  ;;  %v547_v18 = vrot.slane %v545_v13, 1  ;;  %v2593_v25 = vld [vmem:[%s3057_s1 + $0x218] sm:$0xff]  ;;  %v2559_v13 = vld [vmem:[%s2729_s18 + $0x4] sm:$0xff] }
  0x2e   : > { %300 = vmatmul.bf16.vlgmr.msra.gmra.mxu2 %v218_v22  ;;  %791 = vmatmul.bf16.vlgmr.msra.gmra.mxu3 %v2522_v28  ;;  %v2498_v22 = vld [vmem:[%s2729_s18 + $0x34] sm:$0xff] }
  0x2f   : > { %v548_v21 = vsel %vm528_vm0, %v543_v17, %v547_v18  ;;  %v2579_v28 = vld [vmem:[%s3057_s1 + $0x1d0] sm:$0xff] }
  0x30   : > { %417 = vmatpush.bf16.msrb.mxu1 %v2507_v24  ;;  %946 = vmatpush.bf16.msrb.mxu0 %v2544_v27  ;;  %v2566_v24 = vld [vmem:[%s3057_s1 + $0x190] sm:$0xff] }
  0x31   : > { %622 = vmatpush.bf16.msrb.mxu2 %v2520_v26  ;;  %1558 = vmatpush.bf16.msrb.mxu3 %v2583_v30  ;;  %v2512_v26 = vld [vmem:[%s2729_s18 + $0x18] sm:$0xff]  ;;  %v2525_v27 = vld [vmem:[%s2729_s18 + $0x70] sm:$0xff]  ;;  %v2565_v30 = vld [vmem:[%s3057_s1 + $0x188] sm:$0xff] }
  0x32   : > { %v557_v52 = vshrl.u32 %v2512_v26, 16 }
  0x34   : > { %418 = vmatpush.bf16.msrb.mxu1 %v2506_v29  ;;  %947 = vmatpush.bf16.msrb.mxu0 %v2543_v32  ;;  %v2553_v29 = vld [vmem:[%s3057_s1 + $0x150] sm:$0xff]  ;;  %v2578_v32 = vld [vmem:[%s3057_s1 + $0x1c8] sm:$0xff] }
  0x35   : > { %623 = vmatpush.bf16.msrb.mxu2 %v2519_v31  ;;  %1559 = vmatpush.bf16.msrb.mxu3 %v2582_v48  ;;  %v2592_v31 = vld [vmem:[%s3057_s1 + $0x210] sm:$0xff]  ;;  %v2591_v48 = vld [vmem:[%s3057_s1 + $0x208] sm:$0xff] }
  0x38   : > { %419 = vmatpush.bf16.msrb.mxu1 %v2505_v33  ;;  %948 = vmatpush.bf16.msrb.mxu0 %v2542_v35  ;;  %v549_v33 = vshrl.u32 %v2511_v6, 16  ;;  %v2574_v6 = vld [vmem:[%s2729_s18 + $0x40] sm:$0xff] }
  0x39   : > { %624 = vmatpush.bf16.msrb.mxu2 %v2518_v34  ;;  %1560 = vmatpush.bf16.msrb.mxu3 %v2581_v5  ;;  %v553_v34 = vshll.u32 %v2512_v26, 16  ;;  %v851_v5 = vld [vmem:[%s2729_s18 + $0xa4] sm:$0xf]  ;;  %v1262_v26 = vshrl.u32 %v2559_v13, 16 }
  0x3a   : > { %v551_v35 = vor.u32 %v549_v33, %v547_v18 }
  0x3b   : > { %285 = vmatmul.bf16.gmra.mxu0 %v2486_v40  ;;  %295 = vmatmul.bf16.gmra.mxu1 %v2488_v41  ;;  %v2536_v40 = vld [vmem:[%s2729_s18 + $0x94] sm:$0xff]  ;;  %v2049_v41 = vld [vmem:[%s2729_s18 + $0x20] sm:$0xf] }
  0x3c   : > { %420 = vmatpush.bf16.msrb.mxu1 %v2504_v36  ;;  %949 = vmatpush.bf16.msrb.mxu0 %v2541_v38  ;;  %v555_v36 = vrot.slane %v553_v34, 1  ;;  %v2575_v34 = vld [vmem:[%s2729_s18 + $0x48] sm:$0xff] }
  0x3d   : > { %625 = vmatpush.bf16.msrb.mxu2 %v2517_v37  ;;  %1561 = vmatpush.bf16.msrb.mxu3 %v2580_v11  ;;  %v689_v37 = vld [vmem:[%s2729_s18 + $0x78] sm:$0xf]  ;;  %v1481_v11 = vshll.u32 %v2574_v6, 16 }
  0x3e   : > { %796 = vmatmul.bf16.gmra.mxu3 %v2523_v47  ;;  %v556_v38 = vsel %vm528_vm0, %v551_v35, %v555_v36  ;;  %v2564_v47 = vld [vmem:[%s3057_s1 + $0x180] sm:$0xff] }
  0x3f   : > { %v1483_v18 = vrot.slane %v1481_v11, 1 }
  0x40   : > { %421 = vmatpush.bf16.msrb.mxu1 %v2503_v42  ;;  %950 = vmatpush.bf16.msrb.mxu0 %v2540_v44  ;;  %v2513_v42 = vld [vmem:[%s2729_s18 + $0x20] sm:$0x10]  ;;  %v2552_v44 = vld [vmem:[%s3057_s1 + $0x148] sm:$0xff] }
  0x41   : > { %626 = vmatpush.bf16.msrb.mxu2 %v2516_v43  ;;  %1562 = vmatpush.bf16.msrb.mxu3 %v2579_v28  ;;  %v724_v43 = vunpack.c.l.b16 %v689_v37  ;;  %v2050_v45 = vor.u32 %v2513_v42, %v2049_v41  ;;  %v1485_v41 = vshrl.u32 %v2574_v6, 16  ;;  %v1489_v42 = vshll.u32 %v2575_v34, 16 }
  0x43   : > { %v729_v46 = vpack.c.b16 %v724_v43, %v724_v43  ;;  %v561_v53 = vshll.u32 %v2050_v45, 16 }
  0x44   : > { %422 = vmatpush.bf16.msrb.mxu1 %v2502_v49  ;;  %951 = vmatpush.bf16.msrb.mxu0 %v2539_v51  ;;  %v2577_v49 = vld [vmem:[%s3057_s1 + $0x1c0] sm:$0xff]  ;;  %v2572_v51 = vld [vmem:[%s2729_s18 + $0x30] sm:$0xff] }
  0x45   : > { %627 = vmatpush.bf16.msrb.mxu2 %v2515_v50  ;;  %1563 = vmatpush.bf16.msrb.mxu3 %v2578_v32  ;;  %v2551_v50 = vld [vmem:[%s3057_s1 + $0x140] sm:$0xff]  ;;  %v563_v57 = vrot.slane %v561_v53, 1  ;;  %v1466_v58 = vshrl.u32 %v2572_v51, 16  ;;  %v2586_v32 = vld [vmem:[%s2729_s18 + $0xc] sm:$0xff] }
  0x48   : > { %423 = vmatpush.bf16.msrb.mxu1 %v2501_v55  ;;  %952 = vmatpush.bf16.msrb.mxu0 %v2538_v59  ;;  %v1468_v55 = vshll.u32 %v2572_v51, 16  ;;  %v2381_v51 = vld [vmem:[%s2729_s18 + $0x50] sm:$0xf] }
  0x49   : > { %628 = vmatpush.bf16.msrb.mxu2 %v2514_v56  ;;  %1564 = vmatpush.bf16.msrb.mxu3 %v2577_v49  ;;  %v559_v56 = vor.u32 %v557_v52, %v555_v36  ;;  %v2548_v49 = vld [vmem:[%s2729_s18 + $0x68] sm:$0xff]  ;;  %v2576_v52 = vld [vmem:[%s2729_s18 + $0x50] sm:$0x10] }
  0x4a   : > { %v1470_v59 = vrot.slane %v1468_v55, 1 }
  0x4b   : > { %424 = vmatmul.bf16.vlgmr.msrb.gmra.mxu1 %v2497_v0  ;;  %953 = vmatmul.bf16.vlgmr.msrb.gmra.mxu0 %v2534_v1  ;;  %v2590_v0 = vld [vmem:[%s3057_s1 + $0x200] sm:$0xff] }
  0x4c   : > { %1149 = vmatpush.bf16.msra.mxu1 %v2558_v61  ;;  %1732 = vmatpush.bf16.msra.mxu0 %v2597_v62  ;;  %v564_v61 = vsel %vm528_vm0, %v559_v56, %v563_v57  ;;  %v2500_v62 = vld [vmem:[%s2729_s18 + $0x44] sm:$0xff]  ;;  %v1471_v1 = vor.u32 %v1470_v59, %v1466_v58  ;;  %v1073_v56 = vshll.u32 %v2548_v49, 16  ;;  %v2382_v58 = vor.u32 %v2576_v52, %v2381_v51 }
  0x4d   : > { %1353 = vmatpush.bf16.msra.mxu2 %v2571_v60  ;;  %v1473_v60 = vshll.u32 %v2573_v54, 16 }
  0x4e   : > { %629 = vmatmul.bf16.vlgmr.msrb.gmra.mxu2 %v540_v63  ;;  %801 = vmatmul.bf16.gmra.mxu3 %v2524_v7  ;;  %v2537_v63 = vld [vmem:[%s2729_s18 + $0x9c] sm:$0xff]  ;;  %v565_v7 = vshrl.u32 %v2050_v45, 16 }
  0x50   : > { %1150 = vmatpush.bf16.msra.mxu1 %v2557_v3  ;;  %1733 = vmatpush.bf16.msra.mxu0 %v2596_v4  ;;  %v322_v4 = vld [vmem:[%s2729_s18 + $0x4c] sm:$0xf]  ;;  %v567_v12 = vor.u32 %v565_v7, %v563_v57  ;;  %v2587_v57 = vld [vmem:[%s2729_s18 + $0x14] sm:$0xff] }
  0x51   : > { %1354 = vmatpush.bf16.msra.mxu2 %v2570_v2  ;;  %v1475_v2 = vrot.slane %v1473_v60, 1 }
  0x53   : > { %v1476_v3 = vsel %vm528_vm0, %v1471_v1, %v1475_v2  ;;  %v1497_v1 = vshll.u32 %v2382_v58, 16 }
  0x54   : > { %1151 = vmatpush.bf16.msra.mxu1 %v2556_v9  ;;  %1734 = vmatpush.bf16.msra.mxu0 %v2595_v10  ;;  %v886_v9 = vunpack.c.l.b16 %v851_v5  ;;  %v1477_v10 = vshrl.u32 %v2573_v54, 16 }
  0x55   : > { %1355 = vmatpush.bf16.msra.mxu2 %v2569_v8  ;;  %v357_v8 = vunpack.c.l.b16 %v322_v4 }
  0x56   : > { %v1479_v17 = vor.u32 %v1477_v10, %v1475_v2  ;;  %v2549_v10 = vld [vmem:[%s2729_s18 + $0x70] sm:$0xff] }
  0x58   : > { %1152 = vmatpush.bf16.msra.mxu1 %v2555_v15  ;;  %1735 = vmatpush.bf16.msra.mxu0 %v2594_v16  ;;  %v891_v15 = vpack.c.b16 %v886_v9, %v886_v9  ;;  %v2546_v16 = vld [vmem:[%s2729_s18 + $0x58] sm:$0xff] }
  0x59   : > { %1356 = vmatpush.bf16.msra.mxu2 %v2568_v14  ;;  %v362_v14 = vpack.c.b16 %v357_v8, %v357_v8  ;;  %v1499_v8 = vrot.slane %v1497_v1, 1  ;;  %v2562_v9 = vld [vmem:[%s2729_s18 + $0x1c] sm:$0xff] }
  0x5b   : > { %429 = vmatmul.bf16.gmra.mxu1 %v2498_v22  ;;  %958 = vmatmul.bf16.gmra.mxu0 %v2535_v23  ;;  %v1060_v22 = vshll.u32 %v2546_v16, 16  ;;  %v1484_v23 = vsel %vm528_vm0, %v1479_v17, %v1483_v18  ;;  %v1077_v17 = vshrl.u32 %v2548_v49, 16 }
  0x5c   : > { %1153 = vmatpush.bf16.msra.mxu1 %v2554_v20  ;;  %1736 = vmatpush.bf16.msra.mxu0 %v2593_v25  ;;  %v1264_v20 = vshll.u32 %v2559_v13, 16  ;;  %v2585_v25 = vld [vmem:[%s2729_s18 + $0x4] sm:$0xf0]  ;;  %v1285_v13 = vshll.u32 %v2562_v9, 16 }
  0x5d   : > { %1357 = vmatpush.bf16.msra.mxu2 %v2567_v19  ;;  %v2560_v19 = vld [vmem:[%s2729_s18 + $0xc] sm:$0xff] }
  0x5e   : > { %634 = vmatmul.bf16.gmra.mxu2 %v548_v21  ;;  %806 = vmatmul.bf16.gmra.mxu3 %v2525_v27  ;;  %v2547_v21 = vld [vmem:[%s2729_s18 + $0x60] sm:$0xff]  ;;  %v1266_v27 = vrot.slane %v1264_v20, 1  ;;  %v1269_v28 = vshll.u32 %v2560_v19, 16  ;;  %v1273_v53 = vshrl.u32 %v2560_v19, 16 }
  0x5f   : > { %v1069_v55 = vshrl.u32 %v2547_v21, 16  ;;  %v2588_v19 = vld [vmem:[%s2729_s18 + $0x1c] sm:$0xff] }
  0x60   : > { %1154 = vmatpush.bf16.msra.mxu1 %v2553_v29  ;;  %1737 = vmatpush.bf16.msra.mxu0 %v2592_v31  ;;  %v1058_v29 = vshrl.u32 %v2546_v16, 16  ;;  %v1065_v31 = vshll.u32 %v2547_v21, 16  ;;  %v1267_v35 = vor.u32 %v1266_v27, %v1262_v26  ;;  %v1271_v36 = vrot.slane %v1269_v28, 1  ;;  %v2313_v28 = vld [vmem:[%s2729_s18 + $0x24] sm:$0xf] }
  0x61   : > { %1358 = vmatpush.bf16.msra.mxu2 %v2566_v24  ;;  %v2433_v24 = vld [vmem:[%s2729_s18 + $0x4] sm:$0xe]  ;;  %v1287_v21 = vrot.slane %v1285_v13, 1 }
  0x62   : > { %v2434_v33 = vor.u32 %v2585_v25, %v2433_v24  ;;  %v1272_v43 = vsel %vm528_vm0, %v1267_v35, %v1271_v36  ;;  %v1275_v59 = vor.u32 %v1273_v53, %v1271_v36  ;;  %v1675_v25 = vrot.slane %v2588_v19, 1  ;;  %v2245_v35 = vld [vmem:[%s2729_s18 + $0x78] sm:$0xf]  ;;  %v2550_v36 = vld [vmem:[%s2729_s18 + $0x78] sm:$0x10] }
  0x64   : > { %1155 = vmatpush.bf16.msra.mxu1 %v2552_v44  ;;  %1738 = vmatpush.bf16.msra.mxu0 %v2591_v48  ;;  %v2561_v48 = vld [vmem:[%s2729_s18 + $0x14] sm:$0xff] }
  0x65   : > { %1359 = vmatpush.bf16.msra.mxu2 %v2565_v30  ;;  %v1062_v30 = vrot.slane %v1060_v22, 1  ;;  %v1277_v54 = vshll.u32 %v2561_v48, 16 }
  0x67   : > { %v1063_v37 = vor.u32 %v1062_v30, %v1058_v29  ;;  %v1279_v60 = vrot.slane %v1277_v54, 1  ;;  %v2563_v29 = vld [vmem:[%s2729_s18 + $0x24] sm:$0x10]  ;;  %v1501_v30 = vshrl.u32 %v2382_v58, 16 }
  0x68   : > { %1156 = vmatpush.bf16.msra.mxu1 %v2551_v50  ;;  %1739 = vmatpush.bf16.msra.mxu0 %v2590_v0  ;;  %v1493_v0 = vshrl.u32 %v2575_v34, 16 }
  0x69   : > { %1360 = vmatpush.bf16.msra.mxu2 %v2564_v47  ;;  %v1491_v47 = vrot.slane %v1489_v42, 1  ;;  %v1280_v2 = vsel %vm528_vm0, %v1275_v59, %v1279_v60  ;;  %v2589_v42 = vld [vmem:[%s2729_s18 + $0x24] sm:$0x10] }
  0x6b   : > { %434 = vmatmul.bf16.gmra.mxu1 %v2499_v39  ;;  %963 = vmatmul.bf16.gmra.mxu0 %v2536_v40  ;;  %v1670_v39 = vrot.slane %v2434_v33, 1  ;;  %v1671_v40 = vrot.slane %v2586_v32, 1  ;;  %v1495_v7 = vor.u32 %v1493_v0, %v1491_v47 }
  0x6d   : > { %v1672_v45 = vsel %vm1669_vm1, %v1670_v39, %v1671_v40  ;;  %v1500_v11 = vsel %vm528_vm0, %v1495_v7, %v1499_v8  ;;  %v1503_v39 = vor.u32 %v1501_v30, %v1499_v8 }
  0x6e   : > { %639 = vmatmul.bf16.gmra.mxu2 %v556_v38  ;;  %811 = vmatmul.bf16.gmra.mxu3 %v729_v46  ;;  %v1067_v38 = vrot.slane %v1065_v31, 1  ;;  %v1487_v46 = vor.u32 %v1485_v41, %v1483_v18  ;;  %v1081_v18 = vshll.u32 %v2549_v10, 16  ;;  %v2449_v41 = vld [vmem:[%s2729_s18 + $0x24] sm:$0xf] }
  0x6f   : > { %v2450_v49 = vor.u32 %v2589_v42, %v2449_v41 }
  0x70   : > { %v1068_v44 = vsel %vm528_vm0, %v1063_v37, %v1067_v38  ;;  %v1492_v50 = vsel %vm528_vm0, %v1487_v46, %v1491_v47  ;;  %v1083_v24 = vrot.slane %v1081_v18, 1  ;;  %v2314_v37 = vor.u32 %v2563_v29, %v2313_v28 }
  0x71   : > { %v1085_v47 = vshrl.u32 %v2549_v10, 16 }
  0x72   : > { %v1297_v7 = vshrl.u32 %v2314_v37, 16 }
  0x73   : > { %v1087_v53 = vor.u32 %v1085_v47, %v1083_v24 }
  0x7b   : > { %439 = vmatmul.bf16.gmra.mxu1 %v2500_v62  ;;  %968 = vmatmul.bf16.gmra.mxu0 %v2537_v63  ;;  %v1075_v62 = vrot.slane %v1073_v56, 1  ;;  %v1673_v63 = vrot.slane %v2587_v57, 1 }
  0x7d   : > { %v1674_v6 = vsel %vm1669_vm1, %v1671_v40, %v1673_v63  ;;  %v1676_v34 = vsel %vm1669_vm1, %v1673_v63, %v1675_v25  ;;  %v2246_v40 = vor.u32 %v2550_v36, %v2245_v35 }
  0x7e   : > { %644 = vmatmul.bf16.gmra.mxu2 %v564_v61  ;;  %1565 = vmatmul.bf16.vlgmr.msrb.gmra.mxu3 %v1476_v3  ;;  %v1071_v61 = vor.u32 %v1069_v55, %v1067_v38  ;;  %v1677_v55 = vrot.slane %v2450_v49, 1 }
  0x7f   : > { %v1093_v10 = vshrl.u32 %v2246_v40, 16 }
  0x80   : > { %v1076_v5 = vsel %vm528_vm0, %v1071_v61, %v1075_v62 }
  0x8b   : > { %444 = vmatmul.bf16.gmra.mxu1 %v362_v14  ;;  %973 = vmatmul.bf16.gmra.mxu0 %v891_v15 }
  0x8e   : > { %649 = vmatmul.bf16.gmra.mxu2 %v567_v12  ;;  %1570 = vmatmul.bf16.gmra.mxu3 %v1484_v23  ;;  %v1281_v12 = vshrl.u32 %v2561_v48, 16  ;;  %v1079_v23 = vor.u32 %v1077_v17, %v1075_v62  ;;  %v1089_v48 = vshll.u32 %v2246_v40, 16 }
  0x90   : > { %v1283_v20 = vor.u32 %v1281_v12, %v1279_v60  ;;  %v1084_v33 = vsel %vm528_vm0, %v1079_v23, %v1083_v24  ;;  %v1091_v54 = vrot.slane %v1089_v48, 1  ;;  %v1678_v60 = vsel %vm1669_vm1, %v1675_v25, %v1677_v55 }
  0x92   : > { %v1288_v26 = vsel %vm528_vm0, %v1283_v20, %v1287_v21  ;;  %v1092_v59 = vsel %vm528_vm0, %v1087_v53, %v1091_v54 }
  0x9b   : > { %1157 = vmatmul.bf16.vlgmr.msra.gmra.mxu1 %v1068_v44  ;;  %1740 = vmatmul.bf16.vlgmr.msra.gmra.mxu0 %v1672_v45  ;;  %v1293_v44 = vshll.u32 %v2314_v37, 16 }
  0x9d   : > { %v1295_v51 = vrot.slane %v1293_v44, 1 }
  0x9e   : > { %1361 = vmatmul.bf16.vlgmr.msra.gmra.mxu2 %v1272_v43  ;;  %1575 = vmatmul.bf16.gmra.mxu3 %v1492_v50  ;;  %v1289_v43 = vshrl.u32 %v2562_v9, 16 }
  0x9f   : > { %v1299_v13 = vor.u32 %v1297_v7, %v1295_v51 }
  0xa0   : > { %v1291_v50 = vor.u32 %v1289_v43, %v1287_v21 }
  0xa2   : > { %v1296_v56 = vsel %vm528_vm0, %v1291_v50, %v1295_v51 }
  0xa8   : > { %v2965_v3 = vpop.f32.mrf.mxu0  ;;  %v2967_v4 = vpop.f32.mrf.mxu1 }
  0xab   : > { %1162 = vmatmul.bf16.gmra.mxu1 %v1076_v5  ;;  %1745 = vmatmul.bf16.gmra.mxu0 %v1674_v6 }
  0xae   : > { %1366 = vmatmul.bf16.gmra.mxu2 %v1280_v2  ;;  %1580 = vmatmul.bf16.gmra.mxu3 %v1500_v11 }
  0xb0   : > { %v283_v15 = vpop.f32.mrf.mxu0  ;;  %v2976_v16 = vpop.f32.mrf.mxu1 }
  0xb1   : > { %v2974_v14 = vpop.f32.mrf.mxu2  ;;  %v792_v22 = vpop.f32.mrf.mxu3 }
  0xb8   : > { %v286_v31 = vpop.f32.mrf.mxu0  ;;  %v2982_v32 = vpop.f32.mrf.mxu1 }
  0xb9   : > { %v303_v27 = vpop.f32.mrf.mxu2  ;;  %v794_v38 = vpop.f32.mrf.mxu3 }
  0xbb   : > { %1167 = vmatmul.bf16.gmra.mxu1 %v1084_v33  ;;  %1750 = vmatmul.bf16.gmra.mxu0 %v1676_v34 }
  0xbe   : > { %1371 = vmatmul.bf16.gmra.mxu2 %v1288_v26  ;;  %1585 = vmatmul.bf16.gmra.mxu3 %v1503_v39 }
  0xc0   : > { %v288_v45 = vpop.f32.mrf.mxu0  ;;  %v2990_v46 = vpop.f32.mrf.mxu1 }
  0xc1   : > { %v797_v52 = vpop.f32.mrf.mxu3 }
  0xc8   : > { %v425_v57 = vpop.f32.mrf.mxu1  ;;  %v954_v58 = vpop.f32.mrf.mxu0 }
  0xc9   : > { %v458_v61 = vadd.f32 %v425_v57, %v2965_v3  ;;  %v799_v62 = vpop.f32.mrf.mxu3  ;;  %v1095_v3 = vor.u32 %v1093_v10, %v1091_v54 }
  0xcb   : > { %1172 = vmatmul.bf16.gmra.mxu1 %v1092_v59  ;;  %1755 = vmatmul.bf16.gmra.mxu0 %v1678_v60 }
  0xce   : > { %1376 = vmatmul.bf16.gmra.mxu2 %v1296_v56 }
  0xd0   : > { %v427_v2 = vpop.f32.mrf.mxu1  ;;  %v956_v5 = vpop.f32.mrf.mxu0 }
  0xd1   : > { %v630_v63 = vpop.f32.mrf.mxu2  ;;  %v459_v6 = vadd.f32 %v427_v2, %v283_v15  ;;  %v802_v9 = vpop.f32.mrf.mxu3 }
  0xd2   : > { %v663_v0 = vadd.f32 %v630_v63, %v458_v61 }
  0xd4   : > { %v825_v1 = vadd.f32 %v792_v22, %v663_v0 }
  0xd6   : > { %v2996_v8 = vadd.f32 %v954_v58, %v825_v1 }
  0xd8   : > { %v430_v18 = vpop.f32.mrf.mxu1  ;;  %v959_v19 = vpop.f32.mrf.mxu0 }
  0xd9   : > { %v632_v11 = vpop.f32.mrf.mxu2  ;;  %v460_v20 = vadd.f32 %v430_v18, %v286_v31  ;;  %v804_v22 = vpop.f32.mrf.mxu3 }
  0xda   : > { %v664_v12 = vadd.f32 %v632_v11, %v459_v6 }
  0xdb   : > { %1177 = vmatmul.bf16.gmra.mxu1 %v1095_v3  ;;  %1760 = vmatmul.bf16.gmra.mxu0 %v1677_v55 }
  0xdc   : > { %v826_v17 = vadd.f32 %v794_v38, %v664_v12 }
  0xde   : > { %1381 = vmatmul.bf16.gmra.mxu2 %v1299_v13  ;;  %v2998_v21 = vadd.f32 %v956_v5, %v826_v17 }
  0xe0   : > { %v432_v25 = vpop.f32.mrf.mxu1  ;;  %v961_v26 = vpop.f32.mrf.mxu0 }
  0xe1   : > { %v635_v15 = vpop.f32.mrf.mxu2  ;;  %v461_v27 = vadd.f32 %v432_v25, %v288_v45  ;;  %v807_v29 = vpop.f32.mrf.mxu3 }
  0xe2   : > { %v665_v23 = vadd.f32 %v635_v15, %v460_v20 }
  0xe4   : > { %v827_v24 = vadd.f32 %v797_v52, %v665_v23 }
  0xe6   : > { %v3000_v28 = vadd.f32 %v959_v19, %v827_v24 }
  0xe8   : > { %v435_v35 = vpop.f32.mrf.mxu1  ;;  %v964_v31 = vpop.f32.mrf.mxu0 }
  0xe9   : > { %v637_v30 = vpop.f32.mrf.mxu2  ;;  %v462_v36 = vadd.f32 %v435_v35, %v2967_v4  ;;  %v809_v38 = vpop.f32.mrf.mxu3 }
  0xea   : > { %v666_v33 = vadd.f32 %v637_v30, %v461_v27  ;;  %v3024_v30 = vld [vmem:[%s3058_s2] ss:$0 sm:$0xff] }
  0xec   : > { %v828_v34 = vadd.f32 %v799_v62, %v666_v33 }
  0xee   : > { %v3003_v37 = vadd.f32 %v961_v26, %v828_v34 }
  0xf0   : > { %v437_v42 = vpop.f32.mrf.mxu1  ;;  %v966_v43 = vpop.f32.mrf.mxu0 }
  0xf1   : > { %v640_v39 = vpop.f32.mrf.mxu2  ;;  %v463_v44 = vadd.f32 %v437_v42, %v2976_v16  ;;  %v812_v47 = vpop.f32.mrf.mxu3 }
  0xf2   : > { %v667_v40 = vadd.f32 %v640_v39, %v462_v36 }
  0xf4   : > { %v829_v41 = vadd.f32 %v802_v9, %v667_v40 }
  0xf6   : > { %v3006_v45 = vadd.f32 %v964_v31, %v829_v41 }
  0xf8   : > { %v440_v51 = vpop.f32.mrf.mxu1  ;;  %v969_v52 = vpop.f32.mrf.mxu0 }
  0xf9   : > { %v642_v48 = vpop.f32.mrf.mxu2  ;;  %v464_v4 = vadd.f32 %v440_v51, %v2982_v32  ;;  %v814_v54 = vpop.f32.mrf.mxu3 }
  0xfa   : > { %v668_v49 = vadd.f32 %v642_v48, %v463_v44 }
  0xfc   : > { %v830_v50 = vadd.f32 %v804_v22, %v668_v49 }
  0xfe   : > { %v3009_v53 = vadd.f32 %v966_v43, %v830_v50 }
 0x100   : > { %v442_v58 = vpop.f32.mrf.mxu1  ;;  %v971_v59 = vpop.f32.mrf.mxu0 }
 0x101   : > { %v645_v55 = vpop.f32.mrf.mxu2  ;;  %v465_v16 = vadd.f32 %v442_v58, %v2990_v46  ;;  %v1566_v61 = vpop.f32.mrf.mxu3 }
 0x102   : > { %v669_v56 = vadd.f32 %v645_v55, %v464_v4 }
 0x104   : > { %v831_v57 = vadd.f32 %v807_v29, %v669_v56 }
 0x106   : > { %v3012_v60 = vadd.f32 %v969_v52, %v831_v57 }
 0x108   : > { %v445_v1 = vpop.f32.mrf.mxu1  ;;  %v974_v2 = vpop.f32.mrf.mxu0 }
 0x109   : > { %v647_v62 = vpop.f32.mrf.mxu2  ;;  %v466_v32 = vadd.f32 %v445_v1, %v2974_v14  ;;  %v1568_v6 = vpop.f32.mrf.mxu3 }
 0x10a   : > { %v670_v63 = vadd.f32 %v647_v62, %v465_v16 }
 0x10c   : > { %v832_v0 = vadd.f32 %v809_v38, %v670_v63 }
 0x10e   : > { %v3015_v5 = vadd.f32 %v971_v59, %v832_v0 }
 0x110   : > { %v447_v11 = vpop.f32.mrf.mxu1  ;;  %v976_v12 = vpop.f32.mrf.mxu0 }
 0x111   : > { %v650_v7 = vpop.f32.mrf.mxu2  ;;  %v1571_v46 = vpop.f32.mrf.mxu3 }
 0x112   : > { %v671_v9 = vadd.f32 %v650_v7, %v466_v32 }
 0x114   : > { %v833_v10 = vadd.f32 %v812_v47, %v671_v9 }
 0x116   : > { %v3017_v13 = vadd.f32 %v974_v2, %v833_v10 }
 0x118   : > { %v1158_v3 = vpop.f32.mrf.mxu1  ;;  %v1741_v18 = vpop.f32.mrf.mxu0 }
 0x119   : > { %v652_v17 = vpop.f32.mrf.mxu2  ;;  %v1191_v19 = vadd.f32 %v1158_v3, %v2996_v8  ;;  %v1573_v20 = vpop.f32.mrf.mxu3 }
 0x120   : > { %v1160_v14 = vpop.f32.mrf.mxu1  ;;  %v1743_v23 = vpop.f32.mrf.mxu0 }
 0x121   : > { %v1362_v22 = vpop.f32.mrf.mxu2  ;;  %v1192_v25 = vadd.f32 %v1160_v14, %v2998_v21  ;;  %v1576_v26 = vpop.f32.mrf.mxu3 }
 0x122   : > { %v1395_v15 = vadd.f32 %v1362_v22, %v1191_v19 }
 0x124   : > { %v1599_v24 = vadd.f32 %v1566_v61, %v1395_v15 }
 0x126   : > { %v1774_v29 = vadd.f32 %v1741_v18, %v1599_v24 }
 0x128   : > { %v1163_v8 = vpop.f32.mrf.mxu1  ;;  %v1746_v35 = vpop.f32.mrf.mxu0  ;;  %v1805_v31 = vadd.f32 %v3024_v30, %v1774_v29 }
 0x129   : > { %v1364_v27 = vpop.f32.mrf.mxu2  ;;  %v1193_v38 = vadd.f32 %v1163_v8, %v3000_v28  ;;  %v1578_v39 = vpop.f32.mrf.mxu3 }
 0x12a   : > { %v1396_v33 = vadd.f32 %v1364_v27, %v1192_v25  ;;  %v1814_v41 = vmax.f32 %v1805_v31, 0.0 }
 0x12c   : > { %v1600_v34 = vadd.f32 %v1568_v6, %v1396_v33 }
 0x12e   : > { %v1775_v36 = vadd.f32 %v1743_v23, %v1600_v34 }
 0x130   : > { %v1806_v21 = vadd.f32 %v3024_v30, %v1775_v36  ;;  %v1165_v47 = vpop.f32.mrf.mxu1  ;;  %v1748_v48 = vpop.f32.mrf.mxu0 }
 0x131   : > { %v1367_v40 = vpop.f32.mrf.mxu2  ;;  %v1194_v28 = vadd.f32 %v1165_v47, %v3003_v37  ;;  %v1581_v50 = vpop.f32.mrf.mxu3 }
 0x132   : > { %v1815_v42 = vmax.f32 %v1806_v21, 0.0  ;;  %v1397_v43 = vadd.f32 %v1367_v40, %v1193_v38 }
 0x134   : > { %v2601_v44 = vpack.c.bf16 %v1815_v42, %v1814_v41  ;;  %v1601_v49 = vadd.f32 %v1571_v46, %v1397_v43 }
 0x136   : > { %2602 = vst [vmem:[%s3033_s21] sm:$0xff] %v2601_v44   ;;  %v1776_v52 = vadd.f32 %v1746_v35, %v1601_v49 }
 0x138   : > { %v1168_v55 = vpop.f32.mrf.mxu1  ;;  %v1751_v56 = vpop.f32.mrf.mxu0  ;;  %v1807_v57 = vadd.f32 %v3024_v30, %v1776_v52 }
 0x139   : > { %v1369_v51 = vpop.f32.mrf.mxu2  ;;  %v1195_v59 = vadd.f32 %v1168_v55, %v3006_v45  ;;  %v1583_v16 = vpop.f32.mrf.mxu3 }
 0x13a   : > { %v1398_v4 = vadd.f32 %v1369_v51, %v1194_v28  ;;  %v1816_v63 = vmax.f32 %v1807_v57, 0.0 }
 0x13c   : > { %v1602_v54 = vadd.f32 %v1573_v20, %v1398_v4 }
 0x13e   : > { %v1777_v58 = vadd.f32 %v1748_v48, %v1602_v54 }
 0x140   : > { %v1808_v61 = vadd.f32 %v3024_v30, %v1777_v58  ;;  %v1170_v2 = vpop.f32.mrf.mxu1  ;;  %v1753_v32 = vpop.f32.mrf.mxu0 }
 0x141   : > { %v1372_v62 = vpop.f32.mrf.mxu2  ;;  %v1196_v7 = vadd.f32 %v1170_v2, %v3009_v53  ;;  %v1586_v9 = vpop.f32.mrf.mxu3 }
 0x142   : > { %v1817_v0 = vmax.f32 %v1808_v61, 0.0  ;;  %v1399_v37 = vadd.f32 %v1372_v62, %v1195_v59 }
 0x144   : > { %v2606_v1 = vpack.c.bf16 %v1817_v0, %v1816_v63  ;;  %v1603_v6 = vadd.f32 %v1576_v26, %v1399_v37 }
 0x146   : > { %2618 = vst [vmem:[%s3033_s21 + $0x8] sm:$0xff] %v2606_v1   ;;  %v1778_v11 = vadd.f32 %v1751_v56, %v1603_v6 }
 0x148   : > { %v1173_v46 = vpop.f32.mrf.mxu1  ;;  %v1756_v17 = vpop.f32.mrf.mxu0  ;;  %v1809_v3 = vadd.f32 %v3024_v30, %v1778_v11 }
 0x149   : > { %v1374_v10 = vpop.f32.mrf.mxu2  ;;  %v1197_v19 = vadd.f32 %v1173_v46, %v3012_v60  ;;  %v1588_v20 = vpop.f32.mrf.mxu3 }
 0x14a   : > { %v1400_v12 = vadd.f32 %v1374_v10, %v1196_v7  ;;  %v1818_v14 = vmax.f32 %v1809_v3, 0.0 }
 0x14c   : > { %v1604_v45 = vadd.f32 %v1578_v39, %v1400_v12 }
 0x14e   : > { %v1779_v18 = vadd.f32 %v1753_v32, %v1604_v45 }
 0x150   : > { %v1810_v22 = vadd.f32 %v3024_v30, %v1779_v18  ;;  %v1175_v25 = vpop.f32.mrf.mxu1  ;;  %v1758_v26 = vpop.f32.mrf.mxu0 }
 0x151   : > { %v1377_v15 = vpop.f32.mrf.mxu2  ;;  %v1198_v29 = vadd.f32 %v1175_v25, %v3015_v5 }
 0x152   : > { %v1819_v23 = vmax.f32 %v1810_v22, 0.0  ;;  %v1401_v53 = vadd.f32 %v1377_v15, %v1197_v19 }
 0x154   : > { %v2611_v24 = vpack.c.bf16 %v1819_v23, %v1818_v14  ;;  %v1605_v27 = vadd.f32 %v1581_v50, %v1401_v53 }
 0x156   : > { %2619 = vst [vmem:[%s3033_s21 + $0x10] sm:$0xff] %v2611_v24   ;;  %v1780_v34 = vadd.f32 %v1756_v17, %v1605_v27 }
 0x158   : > { %v1178_v60 = vpop.f32.mrf.mxu1  ;;  %v1761_v31 = vpop.f32.mrf.mxu0  ;;  %v1811_v36 = vadd.f32 %v3024_v30, %v1780_v34 }
 0x159   : > { %v1379_v33 = vpop.f32.mrf.mxu2  ;;  %v1199_v39 = vadd.f32 %v1178_v60, %v3017_v13 }
 0x15a   : > { %v1402_v8 = vadd.f32 %v1379_v33, %v1198_v29  ;;  %v1820_v41 = vmax.f32 %v1811_v36, 0.0 }
 0x15c   : > { %v1606_v35 = vadd.f32 %v1583_v16, %v1402_v8 }
 0x15e   : > { %v1781_v38 = vadd.f32 %v1758_v26, %v1606_v35 }
 0x160   : > { %v1812_v21 = vadd.f32 %v3024_v30, %v1781_v38  ;;  %v1180_v47 = vpop.f32.mrf.mxu1  ;;  %v1763_v48 = vpop.f32.mrf.mxu0 }
 0x161   : > { %v1382_v40 = vpop.f32.mrf.mxu2 }
 0x162   : > { %v1821_v42 = vmax.f32 %v1812_v21, 0.0  ;;  %v1403_v43 = vadd.f32 %v1382_v40, %v1199_v39 }
 0x164   : > { %v2616_v5 = vpack.c.bf16 %v1821_v42, %v1820_v41  ;;  %v1607_v44 = vadd.f32 %v1586_v9, %v1403_v43 }
 0x166   : > { %2620 = vst [vmem:[%s3033_s21 + $0x18] sm:$0xff] %v2616_v5   ;;  %v1782_v49 = vadd.f32 %v1761_v31, %v1607_v44 }
 0x168   : > { %v1813_v28 = vadd.f32 %v3024_v30, %v1782_v49 }
 0x169   : > { %v1384_v50 = vpop.f32.mrf.mxu2 }
 0x16a   : > { %v1822_v51 = vmax.f32 %v1813_v28, 0.0 }
 0x16c   : > { %v1831_v52 = vpack.c.bf16 %v1822_v51, %v1822_v51 }
 0x16e   : > { %1840 = vst [vmem:[%s3033_s21 + $0x20] sm:$0xf] %v1831_v52 }
 0x16f PF: > { %s13_s12 = sadd.s32 1, %s2654_s12  }
 0x170   : > { %p10_p4 = scmp.ge.s32.totalorder %s13_s12, 4  }
 0x172   :  { %12 = sbr.rel (!%p10_p4) target bundleno = 1 (0x1), region = 70 }

// kernel: _forward_core.7
= control target key start
LH: loop header
LB: loop body
LE: loop exit
PB: predicated region body
PF: predicated region fallthrough
CT: control target
= control target key end

     0   :  { %s2829_s12 = smov 0   ;;  %s3287_s0 = inlined_call_operand.vmem [shape: bf16[2,104,128], index: 0, kind: input, shape index: {}]   ;;  %s3288_s1 = inlined_call_operand.vmem [shape: bf16[9,128,128], index: 1, kind: input, shape index: {}]   ;;  %s3289_s2 = inlined_call_operand.vmem [shape: f32[1,128], index: 2, kind: input, shape index: {}]   ;;  %s3290_s3 = inlined_call_operand.vmem [shape: bf16[2,80,128], index: 3, kind: output, shape index: {}]  }
   0x1 LB: > { %s2023_s13 = sadd.s32 4294967295, %s2807_s12   ;;  %p2027_p0 = scmp.ge.s32.totalorder %s2807_s12, 1  ;;  %s2807_s12 = sphi %s2829_s12, %s13_s12  }
   0x2   : > { %p137_p1 = scmp.lt.s32.totalorder %s2807_s12, 3 }
   0x4   : > { %p138_p2 = pnand %p2027_p0, %p137_p1 }
   0x5   : > { %p161_p3 = scmp.lt.s32.totalorder (!%p138_p2), %s2023_s13, 1 }
   0x6   : > { %141 = sbr.rel (%p138_p2) target bundleno = 375 (0x177), region = 32 }
   0xb   : > { %v2640_v0 = vld [vmem:[%s3288_s1 + $0x38] sm:$0xff]  ;;  %v2639_v1 = vld [vmem:[%s3288_s1 + $0x30] sm:$0xff]  ;;  %v2638_v4 = vld [vmem:[%s3288_s1 + $0x28] sm:$0xff]  ;;  %s3292_s13 = smov (!%p161_p3, %s2023_s13), 1  ;;  %vm593_vm0 = vcmask 1046528   ;;  %vm1189_vm4 = vcmask 1045504  }
   0xc   : > { %275 = vmatpush.bf16.msra.mxu0 %v2640_v0  ;;  %2774 = vmatpush.bf16.msra.mxu1 %v2640_v0  ;;  %v2679_v2 = vld [vmem:[%s3288_s1 + $0xf8] sm:$0xff]  ;;  %v2678_v3 = vld [vmem:[%s3288_s1 + $0xf0] sm:$0xff]  ;;  %v2677_v5 = vld [vmem:[%s3288_s1 + $0xe8] sm:$0xff]  ;;  %s2790_s9 = smul.u32 52, %s3292_s13  ;;  %vm375_vm1 = vsmask.f32 7424 }
   0xd   : > { %2775 = vmatpush.bf16.msra.mxu2 %v2640_v0  ;;  %842 = vmatpush.bf16.msra.mxu3 %v2679_v2  ;;  %v2637_v6 = vld [vmem:[%s3288_s1 + $0x20] sm:$0xff]  ;;  %v2636_v8 = vld [vmem:[%s3288_s1 + $0x18] sm:$0xff]  ;;  %v2635_v10 = vld [vmem:[%s3288_s1 + $0x10] sm:$0xff]  ;;  %vm962_vm2 = vsmask.f32 6400  ;;  %vm1785_vm5 = vcmask 1044480  }
   0xe   : > { %v2676_v7 = vld [vmem:[%s3288_s1 + $0xe0] sm:$0xff]  ;;  %v2675_v9 = vld [vmem:[%s3288_s1 + $0xd8] sm:$0xff]  ;;  %v2674_v11 = vld [vmem:[%s3288_s1 + $0xd0] sm:$0xff]  ;;  %s2882_s18 = scalar_lea.vmem %s3287_s0, %s2790_s9  ;;  %vm1558_vm3 = vsmask.f32 5376  ;;  %s2791_s17 = smul.u32 40, %s3292_s13 }
   0xf   : > { %v2634_v12 = vld [vmem:[%s3288_s1 + $0x8] sm:$0xff]  ;;  %v2236_v13 = vld [vmem:[%s2882_s18 + $0x4] sm:$0xe]  ;;  %v2653_v19 = vld [vmem:[%s3288_s1 + $0x78] sm:$0xff] }
  0x10   : > { %276 = vmatpush.bf16.msra.mxu0 %v2639_v1  ;;  %2776 = vmatpush.bf16.msra.mxu1 %v2639_v1  ;;  %v2667_v14 = vld [vmem:[%s2882_s18 + $0x4] sm:$0xf0]  ;;  %v2633_v16 = vld [vmem:[%s3288_s1] sm:$0xff]  ;;  %v2893_v17 = vld [vmem:[%s2882_s18 + $0xc] sm:$0xff]  ;;  %s3262_s21 = scalar_lea.vmem %s3290_s3, %s2791_s17 }
  0x11   : > { %2777 = vmatpush.bf16.msra.mxu2 %v2639_v1  ;;  %843 = vmatpush.bf16.msra.mxu3 %v2678_v3  ;;  %v2673_v15 = vld [vmem:[%s3288_s1 + $0xc8] sm:$0xff]  ;;  %v2237_v18 = vor.u32 %v2667_v14, %v2236_v13  ;;  %v2666_v20 = vld [vmem:[%s3288_s1 + $0xb8] sm:$0xff]  ;;  %v2628_v22 = vld [vmem:[%s2882_s18] sm:$0xff]  ;;  %v779_v27 = vrot.slane %v2893_v17, 1 }
  0x12   : > { %v2692_v21 = vld [vmem:[%s3288_s1 + $0x138] sm:$0xff]  ;;  %v2630_v23 = vld [vmem:[%s2882_s18 + $0x10] sm:$0xff]  ;;  %v2632_v24 = vld [vmem:[%s2882_s18 + $0x20] sm:$0xff] }
  0x13   : > { %v2672_v25 = vld [vmem:[%s3288_s1 + $0xc0] sm:$0xff]  ;;  %v778_v26 = vrot.slane %v2237_v18, 1  ;;  %v2652_v28 = vld [vmem:[%s3288_s1 + $0x70] sm:$0xff]  ;;  %v2731_v29 = vld [vmem:[%s3288_s1 + $0x1f8] sm:$0xff] }
  0x14   : > { %277 = vmatpush.bf16.msra.mxu0 %v2638_v4  ;;  %2778 = vmatpush.bf16.msra.mxu1 %v2638_v4  ;;  %v2665_v30 = vld [vmem:[%s3288_s1 + $0xb0] sm:$0xff]  ;;  %v2651_v33 = vld [vmem:[%s3288_s1 + $0x68] sm:$0xff]  ;;  %v2650_v37 = vld [vmem:[%s3288_s1 + $0x60] sm:$0xff] }
  0x15   : > { %2779 = vmatpush.bf16.msra.mxu2 %v2638_v4  ;;  %844 = vmatpush.bf16.msra.mxu3 %v2677_v5  ;;  %v2691_v31 = vld [vmem:[%s3288_s1 + $0x130] sm:$0xff]  ;;  %v780_v32 = vsel %vm593_vm0, %v778_v26, %v779_v27  ;;  %v2664_v35 = vld [vmem:[%s3288_s1 + $0xa8] sm:$0xff]  ;;  %v2663_v38 = vld [vmem:[%s3288_s1 + $0xa0] sm:$0xff] }
  0x16   : > { %v2730_v34 = vld [vmem:[%s3288_s1 + $0x1f0] sm:$0xff]  ;;  %v2690_v36 = vld [vmem:[%s3288_s1 + $0x128] sm:$0xff]  ;;  %v2689_v39 = vld [vmem:[%s3288_s1 + $0x120] sm:$0xff] }
  0x17   : > { %v2304_v40 = vld [vmem:[%s2882_s18 + $0x4] sm:$0xe]  ;;  %v2680_v41 = vld [vmem:[%s2882_s18 + $0x4] sm:$0xf0]  ;;  %v2950_v42 = vld [vmem:[%s2882_s18 + $0x14] sm:$0xff] }
  0x18   : > { %278 = vmatpush.bf16.msra.mxu0 %v2637_v6  ;;  %2780 = vmatpush.bf16.msra.mxu1 %v2637_v6  ;;  %v2649_v43 = vld [vmem:[%s3288_s1 + $0x58] sm:$0xff]  ;;  %v2629_v46 = vld [vmem:[%s2882_s18 + $0x8] sm:$0xff]  ;;  %v2641_v48 = vld [vmem:[%s2882_s18] sm:$0xff]  ;;  %v2305_v49 = vor.u32 %v2680_v41, %v2304_v40  ;;  %v781_v51 = vrot.slane %v2950_v42, 1 }
  0x19   : > { %2781 = vmatpush.bf16.msra.mxu2 %v2637_v6  ;;  %845 = vmatpush.bf16.msra.mxu3 %v2676_v7  ;;  %v2662_v44 = vld [vmem:[%s3288_s1 + $0x98] sm:$0xff]  ;;  %v2681_v50 = vld [vmem:[%s2882_s18 + $0xc] sm:$0xff]  ;;  %v2168_v55 = vld [vmem:[%s2882_s18] sm:$0xe]  ;;  %v379_v58 = vshll.u32 %v2641_v48, 16  ;;  %v377_v6 = vshrl.u32 %v2641_v48, 16 }
  0x1a   : > { %v2688_v45 = vld [vmem:[%s3288_s1 + $0x118] sm:$0xff]  ;;  %v2648_v52 = vld [vmem:[%s3288_s1 + $0x50] sm:$0xff]  ;;  %v2654_v56 = vld [vmem:[%s2882_s18] sm:$0xf0]  ;;  %v964_v59 = vshrl.u32 %v2305_v49, 16  ;;  %v967_v61 = vshll.u32 %v2305_v49, 16  ;;  %v782_v0 = vsel %vm593_vm0, %v779_v27, %v781_v51 }
  0x1b   : > { %v2631_v47 = vld [vmem:[%s2882_s18 + $0x18] sm:$0xff]  ;;  %v2661_v53 = vld [vmem:[%s3288_s1 + $0x90] sm:$0xff]  ;;  %v2978_v57 = vld [vmem:[%s2882_s18 + $0x8] sm:$0xff]  ;;  %v972_v62 = vshrl.u32 %v2681_v50, 16  ;;  %v975_v63 = vshll.u32 %v2681_v50, 16  ;;  %v2169_v5 = vor.u32 %v2654_v56, %v2168_v55  ;;  %v381_v7 = vrot.slane %v379_v58, 1 }
  0x1c   : > { %279 = vmatpush.bf16.msra.mxu0 %v2636_v8  ;;  %2782 = vmatpush.bf16.msra.mxu1 %v2636_v8  ;;  %v2687_v54 = vld [vmem:[%s3288_s1 + $0x110] sm:$0xff]  ;;  %v2729_v60 = vld [vmem:[%s3288_s1 + $0x1e8] sm:$0xff]  ;;  %v2646_v13 = vld [vmem:[%s3288_s1 + $0x40] sm:$0xff] }
  0x1d   : > { %2783 = vmatpush.bf16.msra.mxu2 %v2636_v8  ;;  %846 = vmatpush.bf16.msra.mxu3 %v2675_v9  ;;  %v2647_v1 = vld [vmem:[%s3288_s1 + $0x48] sm:$0xff]  ;;  %v384_v8 = vshll.u32 %v2978_v57, 16  ;;  %v966_v9 = vrot.slane %v964_v59, 1  ;;  %v2659_v14 = vld [vmem:[%s3288_s1 + $0x80] sm:$0xff]  ;;  %v2718_v18 = vld [vmem:[%s3288_s1 + $0x1b8] sm:$0xff] }
  0x1e   : > { %v2660_v2 = vld [vmem:[%s3288_s1 + $0x88] sm:$0xff]  ;;  %v2685_v17 = vld [vmem:[%s3288_s1 + $0x100] sm:$0xff]  ;;  %v2714_v55 = vld [vmem:[%s3288_s1 + $0x198] sm:$0xff] }
  0x1f   : > { %v2686_v3 = vld [vmem:[%s3288_s1 + $0x108] sm:$0xff]  ;;  %v2715_v48 = vld [vmem:[%s3288_s1 + $0x1a0] sm:$0xff] }
  0x20   : > { %280 = vmatpush.bf16.msra.mxu0 %v2635_v10  ;;  %2784 = vmatpush.bf16.msra.mxu1 %v2635_v10  ;;  %v2998_v4 = vld [vmem:[%s2882_s18 + $0x8] sm:$0xff]  ;;  %v2702_v49 = vld [vmem:[%s3288_s1 + $0x160] sm:$0xff] }
  0x21   : > { %2785 = vmatpush.bf16.msra.mxu2 %v2635_v10  ;;  %847 = vmatpush.bf16.msra.mxu3 %v2674_v11  ;;  %v969_v10 = vrot.slane %v967_v61, 2  ;;  %v974_v11 = vrot.slane %v972_v62, 1  ;;  %v2742_v41 = vld [vmem:[%s3288_s1 + $0x228] sm:$0xff]  ;;  %v2741_v50 = vld [vmem:[%s3288_s1 + $0x220] sm:$0xff] }
  0x22   : > { %v3079_v56 = vld [vmem:[%s2882_s18 + $0x24] sm:$0xff]  ;;  %v2683_v61 = vld [vmem:[%s2882_s18 + $0x1c] sm:$0xff] }
  0x23   : > { %v785_v62 = vrot.slane %v3079_v56, 1 }
  0x24   : > { %281 = vmatpush.bf16.msra.mxu0 %v2634_v12  ;;  %2786 = vmatpush.bf16.msra.mxu1 %v2634_v12 }
  0x25   : > { %2787 = vmatpush.bf16.msra.mxu2 %v2634_v12  ;;  %848 = vmatpush.bf16.msra.mxu3 %v2673_v15  ;;  %v977_v12 = vrot.slane %v975_v63, 2  ;;  %v594_v15 = vrot.slane %v2169_v5, 1  ;;  %v2713_v63 = vld [vmem:[%s3288_s1 + $0x190] sm:$0xff]  ;;  %v993_v5 = vshll.u32 %v2683_v61, 16 }
  0x28   : > { %282 = vmatpush.bf16.msra.mxu0 %v2633_v16  ;;  %2788 = vmatpush.bf16.msra.mxu1 %v2633_v16 }
  0x29   : > { %2789 = vmatpush.bf16.msra.mxu2 %v2633_v16  ;;  %849 = vmatpush.bf16.msra.mxu3 %v2672_v25  ;;  %v595_v16 = vrot.slane %v2998_v4, 1  ;;  %v3021_v25 = vld [vmem:[%s2882_s18 + $0x1c] sm:$0xff]  ;;  %v990_v4 = vshrl.u32 %v2683_v61, 16 }
  0x2b   : > { %283 = vmatmul.bf16.vlgmr.msra.gmra.mxu0 %v2628_v22  ;;  %293 = vmatmul.bf16.vlgmr.msra.gmra.mxu1 %v2630_v23  ;;  %v970_v22 = vor.u32 %v969_v10, %v966_v9  ;;  %v978_v23 = vor.u32 %v977_v12, %v974_v11  ;;  %v596_v26 = vsel %vm593_vm0, %v594_v15, %v595_v16  ;;  %v732_v9 = vld [vmem:[%s2882_s18 + $0x2c] sm:$0x1]  ;;  %v3118_v11 = vld [vmem:[%s2882_s18 + $0x18] sm:$0xff]  ;;  %v995_v15 = vrot.slane %v993_v5, 2 }
  0x2c   : > { %473 = vmatpush.bf16.msrb.mxu1 %v2653_v19  ;;  %1069 = vmatpush.bf16.msrb.mxu0 %v2692_v21  ;;  %v2705_v19 = vld [vmem:[%s3288_s1 + $0x178] sm:$0xff]  ;;  %v386_v21 = vrot.slane %v384_v8, 1  ;;  %v2739_v8 = vld [vmem:[%s3288_s1 + $0x210] sm:$0xff]  ;;  %v2725_v10 = vld [vmem:[%s3288_s1 + $0x1c8] sm:$0xff] }
  0x2d   : > { %658 = vmatpush.bf16.msrb.mxu2 %v2666_v20  ;;  %1665 = vmatpush.bf16.msrb.mxu3 %v2731_v29  ;;  %v382_v20 = vor.u32 %v381_v7, %v377_v6  ;;  %v2717_v29 = vld [vmem:[%s3288_s1 + $0x1b0] sm:$0xff]  ;;  %v2712_v7 = vld [vmem:[%s3288_s1 + $0x188] sm:$0xff] }
  0x2e   : > { %303 = vmatmul.bf16.vlgmr.msra.gmra.mxu2 %v2632_v24  ;;  %850 = vmatmul.bf16.vlgmr.msra.gmra.mxu3 %v780_v32  ;;  %v2744_v24 = vld [vmem:[%s3288_s1 + $0x238] sm:$0xff]  ;;  %v783_v32 = vrot.slane %v3021_v25, 1 }
  0x2f   : > { %v387_v27 = vsel %vm375_vm1, %v382_v20, %v386_v21 }
  0x30   : > { %474 = vmatpush.bf16.msrb.mxu1 %v2652_v28  ;;  %1070 = vmatpush.bf16.msrb.mxu0 %v2691_v31  ;;  %v979_v28 = vsel %vm962_vm2, %v970_v22, %v978_v23  ;;  %v2682_v31 = vld [vmem:[%s2882_s18 + $0x14] sm:$0xff]  ;;  %v784_v40 = vsel %vm593_vm0, %v781_v51, %v783_v32  ;;  %v786_v6 = vsel %vm593_vm0, %v783_v32, %v785_v62 }
  0x31   : > { %659 = vmatpush.bf16.msrb.mxu2 %v2665_v30  ;;  %1666 = vmatpush.bf16.msrb.mxu3 %v2730_v34  ;;  %v2704_v30 = vld [vmem:[%s3288_s1 + $0x170] sm:$0xff]  ;;  %v2728_v34 = vld [vmem:[%s3288_s1 + $0x1e0] sm:$0xff] }
  0x34   : > { %475 = vmatpush.bf16.msrb.mxu1 %v2651_v33  ;;  %1071 = vmatpush.bf16.msrb.mxu0 %v2690_v36  ;;  %v2743_v33 = vld [vmem:[%s3288_s1 + $0x230] sm:$0xff]  ;;  %v981_v36 = vshrl.u32 %v2682_v31, 16 }
  0x35   : > { %660 = vmatpush.bf16.msrb.mxu2 %v2664_v35  ;;  %1667 = vmatpush.bf16.msrb.mxu3 %v2729_v60  ;;  %v3043_v35 = vld [vmem:[%s2882_s18 + $0x10] sm:$0xff] }
  0x36   : > { %v983_v42 = vrot.slane %v981_v36, 1  ;;  %v396_v12 = vshrl.u32 %v3043_v35, 16 }
  0x38   : > { %476 = vmatpush.bf16.msrb.mxu1 %v2650_v37  ;;  %1072 = vmatpush.bf16.msrb.mxu0 %v2689_v39  ;;  %v984_v37 = vshll.u32 %v2682_v31, 16  ;;  %v2703_v39 = vld [vmem:[%s3288_s1 + $0x168] sm:$0xff] }
  0x39   : > { %661 = vmatpush.bf16.msrb.mxu2 %v2663_v38  ;;  %v2716_v38 = vld [vmem:[%s3288_s1 + $0x1a8] sm:$0xff]  ;;  %1668 = vmatpush.bf16.msrb.mxu3 %v2728_v34 }
  0x3a   : > { %v2738_v34 = vld [vmem:[%s3288_s1 + $0x208] sm:$0xff] }
  0x3b   : > { %288 = vmatmul.bf16.gmra.mxu0 %v2629_v46  ;;  %298 = vmatmul.bf16.gmra.mxu1 %v2631_v47  ;;  %v392_v46 = vshll.u32 %v3043_v35, 16  ;;  %v986_v47 = vrot.slane %v984_v37, 2  ;;  %v2724_v35 = vld [vmem:[%s3288_s1 + $0x1c0] sm:$0xff] }
  0x3c   : > { %477 = vmatpush.bf16.msrb.mxu1 %v2649_v43  ;;  %1073 = vmatpush.bf16.msrb.mxu0 %v2688_v45  ;;  %v2727_v43 = vld [vmem:[%s3288_s1 + $0x1d8] sm:$0xff]  ;;  %v388_v45 = vshrl.u32 %v2978_v57, 16  ;;  %v2698_v37 = vld [vmem:[%s3288_s1 + $0x140] sm:$0xff] }
  0x3d   : > { %662 = vmatpush.bf16.msrb.mxu2 %v2662_v44  ;;  %v3061_v44 = vld [vmem:[%s2882_s18 + $0x10] sm:$0xff]  ;;  %1669 = vmatpush.bf16.msrb.mxu3 %v2727_v43  ;;  %v2701_v57 = vld [vmem:[%s3288_s1 + $0x158] sm:$0xff] }
  0x3e   : > { %855 = vmatmul.bf16.gmra.mxu3 %v782_v0  ;;  %v597_v51 = vrot.slane %v3061_v44, 1  ;;  %v2740_v0 = vld [vmem:[%s3288_s1 + $0x218] sm:$0xff] }
  0x40   : > { %478 = vmatpush.bf16.msrb.mxu1 %v2648_v52  ;;  %1074 = vmatpush.bf16.msrb.mxu0 %v2687_v54  ;;  %v390_v52 = vor.u32 %v388_v45, %v386_v21  ;;  %v987_v54 = vor.u32 %v986_v47, %v983_v42  ;;  %v598_v58 = vsel %vm593_vm0, %v595_v16, %v597_v51  ;;  %v771_v16 = vunpack.c.l.b16 %v732_v9 }
  0x41   : > { %663 = vmatpush.bf16.msrb.mxu2 %v2661_v53  ;;  %v394_v53 = vrot.slane %v392_v46, 1  ;;  %v916_v46 = vld [vmem:[%s2882_s18 + $0x2c] sm:$0x3] }
  0x42   : > { %v988_v60 = vsel %vm962_vm2, %v978_v23, %v987_v54  ;;  %v777_v21 = vpack.c.b16 %v771_v16, %v771_v16  ;;  %v2684_v23 = vld [vmem:[%s2882_s18 + $0x24] sm:$0xff] }
  0x43   : > { %v395_v59 = vsel %vm375_vm1, %v390_v52, %v394_v53  ;;  %v999_v31 = vshrl.u32 %v2684_v23, 16  ;;  %v1002_v32 = vshll.u32 %v2684_v23, 16 }
  0x44   : > { %479 = vmatpush.bf16.msrb.mxu1 %v2647_v1  ;;  %1075 = vmatpush.bf16.msrb.mxu0 %v2686_v3  ;;  %v2726_v1 = vld [vmem:[%s3288_s1 + $0x1d0] sm:$0xff]  ;;  %v3104_v3 = vld [vmem:[%s2882_s18 + $0x18] sm:$0xff] }
  0x45   : > { %664 = vmatpush.bf16.msrb.mxu2 %v2660_v2  ;;  %v2700_v2 = vld [vmem:[%s3288_s1 + $0x150] sm:$0xff]  ;;  %1670 = vmatpush.bf16.msrb.mxu3 %v2726_v1  ;;  %v1001_v44 = vrot.slane %v999_v31, 1  ;;  %v1004_v45 = vrot.slane %v1002_v32, 2  ;;  %v2693_v31 = vld [vmem:[%s2882_s18 + $0x4] sm:$0xf0] }
  0x48   : > { %480 = vmatpush.bf16.msrb.mxu1 %v2646_v13  ;;  %1076 = vmatpush.bf16.msrb.mxu0 %v2685_v17  ;;  %v400_v13 = vshll.u32 %v3104_v3, 16  ;;  %v599_v17 = vrot.slane %v3118_v11, 1 }
  0x49   : > { %665 = vmatpush.bf16.msrb.mxu2 %v2659_v14  ;;  %v992_v14 = vrot.slane %v990_v4, 1  ;;  %1671 = vmatpush.bf16.msrb.mxu3 %v2725_v10  ;;  %v2721_v10 = vld [vmem:[%s2882_s18 + $0x18] sm:$0xff] }
  0x4a   : > { %v600_v22 = vsel %vm593_vm0, %v597_v51, %v599_v17  ;;  %v1577_v16 = vshrl.u32 %v2721_v10, 16 }
  0x4b   : > { %481 = vmatmul.bf16.vlgmr.msrb.gmra.mxu1 %v387_v27  ;;  %1077 = vmatmul.bf16.vlgmr.msrb.gmra.mxu0 %v979_v28  ;;  %v996_v20 = vor.u32 %v995_v15, %v992_v14  ;;  %v2699_v27 = vld [vmem:[%s3288_s1 + $0x148] sm:$0xff] }
  0x4c   : > { %1254 = vmatpush.bf16.msra.mxu1 %v2705_v19  ;;  %1850 = vmatpush.bf16.msra.mxu0 %v2744_v24  ;;  %v402_v19 = vrot.slane %v400_v13, 1  ;;  %v2508_v28 = vld [vmem:[%s2882_s18 + $0x8] sm:$0xc] }
  0x4d   : > { %1438 = vmatpush.bf16.msra.mxu2 %v2718_v18  ;;  %v398_v18 = vor.u32 %v396_v12, %v394_v53  ;;  %v997_v25 = vsel %vm962_vm2, %v987_v54, %v996_v20  ;;  %1672 = vmatpush.bf16.msrb.mxu3 %v2724_v35  ;;  %v1005_v53 = vor.u32 %v1004_v45, %v1001_v44  ;;  %v955_v54 = vunpack.c.l.b16 %v916_v46  ;;  %v2732_v35 = vld [vmem:[%s2882_s18 + $0x8] sm:$0xf0] }
  0x4e   : > { %666 = vmatmul.bf16.vlgmr.msrb.gmra.mxu2 %v596_v26  ;;  %860 = vmatmul.bf16.gmra.mxu3 %v784_v40  ;;  %v787_v26 = vrot.slane %v777_v21, 1  ;;  %v2658_v40 = vld [vmem:[%s2882_s18 + $0x20] sm:$0xff] }
  0x4f   : > { %v403_v24 = vsel %vm375_vm1, %v398_v18, %v402_v19  ;;  %v1006_v1 = vsel %vm962_vm2, %v996_v20, %v1005_v53 }
  0x50   : > { %1255 = vmatpush.bf16.msra.mxu1 %v2704_v30  ;;  %1851 = vmatpush.bf16.msra.mxu0 %v2743_v33  ;;  %v3133_v30 = vld [vmem:[%s2882_s18 + $0x20] sm:$0xff]  ;;  %v788_v36 = vsel %vm593_vm0, %v785_v62, %v787_v26  ;;  %v547_v62 = vld [vmem:[%s2882_s18 + $0x28] sm:$0x1] }
  0x51   : > { %1439 = vmatpush.bf16.msra.mxu2 %v2717_v29  ;;  %v2719_v29 = vld [vmem:[%s2882_s18 + $0x8] sm:$0xf0]  ;;  %v2711_v33 = vld [vmem:[%s3288_s1 + $0x180] sm:$0xff]  ;;  %v408_v43 = vshll.u32 %v3133_v30, 16  ;;  %v586_v5 = vunpack.c.l.b16 %v547_v62  ;;  %v412_v12 = vshrl.u32 %v3133_v30, 16 }
  0x52   : > { %v2372_v30 = vld [vmem:[%s2882_s18 + $0x4] sm:$0xc] }
  0x53   : > { %v410_v52 = vrot.slane %v408_v43, 1  ;;  %v592_v11 = vpack.c.b16 %v586_v5, %v586_v5  ;;  %v1512_v5 = vld [vmem:[%s2882_s18 + $0x30] sm:$0x7] }
  0x54   : > { %1256 = vmatpush.bf16.msra.mxu1 %v2703_v39  ;;  %1852 = vmatpush.bf16.msra.mxu0 %v2742_v41  ;;  %v2509_v39 = vor.u32 %v2719_v29, %v2508_v28  ;;  %v404_v41 = vshrl.u32 %v3104_v3, 16  ;;  %v2440_v28 = vld [vmem:[%s2882_s18 + $0x8] sm:$0xc]  ;;  %v2706_v29 = vld [vmem:[%s2882_s18 + $0x8] sm:$0xf0] }
  0x55   : > { %1440 = vmatpush.bf16.msra.mxu2 %v2716_v38  ;;  %v2720_v38 = vld [vmem:[%s2882_s18 + $0x10] sm:$0xff]  ;;  %v603_v18 = vrot.slane %v592_v11, 1  ;;  %v1551_v11 = vunpack.c.l.b16 %v1512_v5 }
  0x56   : > { %v1560_v42 = vshrl.u32 %v2509_v39, 16  ;;  %v1563_v47 = vshll.u32 %v2509_v39, 16  ;;  %v406_v51 = vor.u32 %v404_v41, %v402_v19  ;;  %v414_v19 = vor.u32 %v412_v12, %v410_v52 }
  0x57   : > { %v2373_v39 = vor.u32 %v2693_v31, %v2372_v30 }
  0x58   : > { %1257 = vmatpush.bf16.msra.mxu1 %v2702_v49  ;;  %1853 = vmatpush.bf16.msra.mxu0 %v2741_v50  ;;  %v1571_v49 = vshll.u32 %v2720_v38, 16  ;;  %v601_v50 = vrot.slane %v2658_v40, 1  ;;  %v1562_v56 = vrot.slane %v1560_v42, 2  ;;  %v411_v61 = vsel %vm375_vm1, %v406_v51, %v410_v52  ;;  %v2733_v40 = vld [vmem:[%s2882_s18 + $0x10] sm:$0xff] }
  0x59   : > { %1441 = vmatpush.bf16.msra.mxu2 %v2715_v48  ;;  %v1568_v48 = vshrl.u32 %v2720_v38, 16  ;;  %v2694_v38 = vld [vmem:[%s2882_s18 + $0xc] sm:$0xff]  ;;  %v1190_v42 = vrot.slane %v2373_v39, 2  ;;  %v2697_v39 = vld [vmem:[%s2882_s18 + $0x24] sm:$0xff] }
  0x5b   : > { %486 = vmatmul.bf16.gmra.mxu1 %v395_v59  ;;  %1082 = vmatmul.bf16.gmra.mxu0 %v988_v60  ;;  %v1573_v59 = vrot.slane %v1571_v49, 3  ;;  %v602_v60 = vsel %vm593_vm0, %v599_v17, %v601_v50  ;;  %v1580_v17 = vshll.u32 %v2721_v10, 16  ;;  %v1787_v49 = vrot.slane %v2733_v40, 3  ;;  %v2736_v40 = vld [vmem:[%s2882_s18 + $0x28] sm:$0xff] }
  0x5c   : > { %1258 = vmatpush.bf16.msra.mxu1 %v2701_v57  ;;  %1854 = vmatpush.bf16.msra.mxu0 %v2740_v0  ;;  %v1565_v57 = vrot.slane %v1563_v47, 3  ;;  %v2737_v0 = vld [vmem:[%s3288_s1 + $0x200] sm:$0xff]  ;;  %v1191_v47 = vrot.slane %v2694_v38, 2 }
  0x5d   : > { %1442 = vmatpush.bf16.msra.mxu2 %v2714_v55  ;;  %v329_v55 = vld [vmem:[%s2882_s18 + $0x28] sm:$0x1]  ;;  %v1582_v23 = vrot.slane %v1580_v17, 3  ;;  %v2696_v17 = vld [vmem:[%s2882_s18 + $0x1c] sm:$0xff] }
  0x5e   : > { %671 = vmatmul.bf16.gmra.mxu2 %v598_v58  ;;  %865 = vmatmul.bf16.gmra.mxu3 %v786_v6  ;;  %v1570_v58 = vrot.slane %v1568_v48, 2  ;;  %v1566_v3 = vor.u32 %v1565_v57, %v1562_v56  ;;  %v2723_v57 = vld [vmem:[%s2882_s18 + $0x28] sm:$0xff] }
  0x5f   : > { %v1598_v62 = vshll.u32 %v2723_v57, 16 }
  0x60   : > { %1259 = vmatpush.bf16.msra.mxu1 %v2700_v2  ;;  %1855 = vmatpush.bf16.msra.mxu0 %v2739_v8  ;;  %v961_v2 = vpack.c.b16 %v955_v54, %v955_v54  ;;  %v1574_v4 = vor.u32 %v1573_v59, %v1570_v58  ;;  %v2708_v58 = vld [vmem:[%s2882_s18 + $0x18] sm:$0xff] }
  0x61   : > { %1443 = vmatpush.bf16.msra.mxu2 %v2713_v63  ;;  %v368_v63 = vunpack.c.l.b16 %v329_v55  ;;  %v2695_v59 = vld [vmem:[%s2882_s18 + $0x14] sm:$0xff] }
  0x62   : > { %v1011_v8 = vshll.u32 %v961_v2, 16  ;;  %v1575_v9 = vsel %vm1558_vm3, %v1566_v3, %v1574_v4  ;;  %v1600_v3 = vrot.slane %v1598_v62, 3 }
  0x63   : > { %v374_v6 = vpack.c.b16 %v368_v63, %v368_v63  ;;  %v1377_v63 = vrot.slane %v2708_v58, 2 }
  0x64   : > { %1260 = vmatpush.bf16.msra.mxu1 %v2699_v27  ;;  %1856 = vmatpush.bf16.msra.mxu0 %v2738_v34  ;;  %v1013_v15 = vrot.slane %v1011_v8, 2  ;;  %v2576_v34 = vld [vmem:[%s2882_s18 + $0x8] sm:$0x8] }
  0x65   : > { %1444 = vmatpush.bf16.msra.mxu2 %v2712_v7  ;;  %v1008_v7 = vshrl.u32 %v961_v2, 16  ;;  %v416_v13 = vshll.u32 %v374_v6, 16  ;;  %v2577_v41 = vor.u32 %v2732_v35, %v2576_v34 }
  0x67   : > { %v1010_v14 = vrot.slane %v1008_v7, 1  ;;  %v418_v20 = vrot.slane %v416_v13, 1  ;;  %v1786_v48 = vrot.slane %v2577_v41, 3  ;;  %v1557_v13 = vpack.c.b16 %v1551_v11, %v1551_v11 }
  0x68   : > { %1261 = vmatpush.bf16.msra.mxu1 %v2698_v37  ;;  %1857 = vmatpush.bf16.msra.mxu0 %v2737_v0  ;;  %v2441_v37 = vor.u32 %v2706_v29, %v2440_v28  ;;  %v1193_v0 = vrot.slane %v2695_v59, 2 }
  0x69   : > { %1445 = vmatpush.bf16.msra.mxu2 %v2711_v33  ;;  %v1014_v21 = vor.u32 %v1013_v15, %v1010_v14  ;;  %v2722_v33 = vld [vmem:[%s2882_s18 + $0x20] sm:$0xff]  ;;  %v1788_v54 = vsel %vm1785_vm5, %v1786_v48, %v1787_v49 }
  0x6a   : > { %v1586_v43 = vshrl.u32 %v2722_v33, 16  ;;  %v1589_v44 = vshll.u32 %v2722_v33, 16  ;;  %v1374_v45 = vrot.slane %v2441_v37, 2  ;;  %v1194_v8 = vsel %vm1189_vm4, %v1191_v47, %v1193_v0  ;;  %v2709_v14 = vld [vmem:[%s2882_s18 + $0x20] sm:$0xff] }
  0x6b   : > { %491 = vmatmul.bf16.gmra.mxu1 %v403_v24  ;;  %1087 = vmatmul.bf16.gmra.mxu0 %v997_v25  ;;  %v604_v24 = vsel %vm593_vm0, %v601_v50, %v603_v18  ;;  %v419_v25 = vsel %vm375_vm1, %v414_v19, %v418_v20  ;;  %v1015_v26 = vsel %vm962_vm2, %v1005_v53, %v1014_v21  ;;  %v2735_v18 = vld [vmem:[%s2882_s18 + $0x20] sm:$0xff]  ;;  %v1604_v19 = vshrl.u32 %v1557_v13, 16 }
  0x6c   : > { %v1588_v50 = vrot.slane %v1586_v43, 2  ;;  %v1591_v51 = vrot.slane %v1589_v44, 3  ;;  %v1192_v53 = vsel %vm1189_vm4, %v1190_v42, %v1191_v47  ;;  %v1607_v20 = vshll.u32 %v1557_v13, 16  ;;  %v1328_v47 = vld [vmem:[%s2882_s18 + $0x30] sm:$0x3] }
  0x6d   : > { %v1379_v21 = vrot.slane %v2709_v14, 2 }
  0x6e   : > { %676 = vmatmul.bf16.gmra.mxu2 %v600_v22  ;;  %870 = vmatmul.bf16.gmra.mxu3 %v788_v36  ;;  %v1579_v22 = vrot.slane %v1577_v16, 2  ;;  %v2707_v36 = vld [vmem:[%s2882_s18 + $0x10] sm:$0xff]  ;;  %v1592_v55 = vor.u32 %v1591_v51, %v1588_v50 }
  0x6f   : > { %v1375_v46 = vrot.slane %v2707_v36, 2  ;;  %v2710_v36 = vld [vmem:[%s2882_s18 + $0x28] sm:$0xff] }
  0x70   : > { %v1583_v27 = vor.u32 %v1582_v23, %v1579_v22  ;;  %v1195_v23 = vrot.slane %v2696_v17, 2  ;;  %v1381_v41 = vrot.slane %v2710_v36, 2 }
  0x71   : > { %v1376_v52 = vsel %vm1189_vm4, %v1374_v45, %v1375_v46  ;;  %v1197_v45 = vrot.slane %v2697_v39, 2 }
  0x72   : > { %v1584_v32 = vsel %vm1558_vm3, %v1574_v4, %v1583_v27  ;;  %v1593_v56 = vsel %vm1558_vm3, %v1583_v27, %v1592_v55  ;;  %v1378_v4 = vsel %vm1189_vm4, %v1375_v46, %v1377_v63  ;;  %v1380_v27 = vsel %vm1189_vm4, %v1377_v63, %v1379_v21 }
  0x73   : > { %v1196_v30 = vsel %vm1189_vm4, %v1193_v0, %v1195_v23  ;;  %v1793_v46 = vrot.slane %v2736_v40, 3  ;;  %v1382_v42 = vsel %vm1189_vm4, %v1379_v21, %v1381_v41  ;;  %v1198_v50 = vsel %vm1189_vm4, %v1195_v23, %v1197_v45 }
  0x7b   : > { %496 = vmatmul.bf16.gmra.mxu1 %v411_v61  ;;  %1092 = vmatmul.bf16.gmra.mxu0 %v1006_v1  ;;  %v1595_v61 = vshrl.u32 %v2723_v57, 16 }
  0x7d   : > { %v1597_v2 = vrot.slane %v1595_v61, 2 }
  0x7e   : > { %681 = vmatmul.bf16.gmra.mxu2 %v602_v60  ;;  %1673 = vmatmul.bf16.vlgmr.msrb.gmra.mxu3 %v1575_v9  ;;  %v2734_v60 = vld [vmem:[%s2882_s18 + $0x18] sm:$0xff] }
  0x7f   : > { %v1789_v1 = vrot.slane %v2734_v60, 3  ;;  %v1601_v10 = vor.u32 %v1600_v3, %v1597_v2 }
  0x81   : > { %v1790_v9 = vsel %vm1785_vm5, %v1787_v49, %v1789_v1  ;;  %v1602_v12 = vsel %vm1558_vm3, %v1592_v55, %v1601_v10  ;;  %v1367_v55 = vunpack.c.l.b16 %v1328_v47 }
  0x83   : > { %v1373_v61 = vpack.c.b16 %v1367_v55, %v1367_v55 }
  0x85   : > { %v1383_v5 = vrot.slane %v1373_v61, 2 }
  0x8b   : > { %501 = vmatmul.bf16.gmra.mxu1 %v419_v25  ;;  %1097 = vmatmul.bf16.gmra.mxu0 %v1015_v26  ;;  %v1606_v25 = vrot.slane %v1604_v19, 2  ;;  %v1609_v26 = vrot.slane %v1607_v20, 3 }
  0x8e   : > { %686 = vmatmul.bf16.gmra.mxu2 %v604_v24  ;;  %1678 = vmatmul.bf16.gmra.mxu3 %v1584_v32  ;;  %v1791_v24 = vrot.slane %v2735_v18, 3  ;;  %v1610_v32 = vor.u32 %v1609_v26, %v1606_v25 }
  0x90   : > { %v1792_v31 = vsel %vm1785_vm5, %v1789_v1, %v1791_v24  ;;  %v1611_v35 = vsel %vm1558_vm3, %v1601_v10, %v1610_v32  ;;  %v1794_v51 = vsel %vm1785_vm5, %v1791_v24, %v1793_v46 }
  0x9b   : > { %1262 = vmatmul.bf16.vlgmr.msra.gmra.mxu1 %v1192_v53  ;;  %1858 = vmatmul.bf16.vlgmr.msra.gmra.mxu0 %v1788_v54  ;;  %v1143_v53 = vld [vmem:[%s2882_s18 + $0x2c] sm:$0x3]  ;;  %v1739_v54 = vld [vmem:[%s2882_s18 + $0x30] sm:$0x7] }
  0x9c   : > { %v1182_v58 = vunpack.c.l.b16 %v1143_v53  ;;  %v1778_v59 = vunpack.c.l.b16 %v1739_v54 }
  0x9e   : > { %1446 = vmatmul.bf16.vlgmr.msra.gmra.mxu2 %v1376_v52  ;;  %1683 = vmatmul.bf16.gmra.mxu3 %v1593_v56  ;;  %v1188_v1 = vpack.c.b16 %v1182_v58, %v1182_v58  ;;  %v1784_v2 = vpack.c.b16 %v1778_v59, %v1778_v59 }
  0xa0   : > { %v1795_v10 = vrot.slane %v1784_v2, 3 }
  0xa2   : > { %v1796_v19 = vsel %vm1785_vm5, %v1793_v46, %v1795_v10 }
  0xa8   : > { %v284_v6 = vpop.f32.mrf.mxu0  ;;  %v3188_v7 = vpop.f32.mrf.mxu1 }
  0xab   : > { %1267 = vmatmul.bf16.gmra.mxu1 %v1194_v8  ;;  %1863 = vmatmul.bf16.gmra.mxu0 %v1790_v9  ;;  %v1199_v9 = vrot.slane %v1188_v1, 2 }
  0xad   : > { %v1200_v18 = vsel %vm1189_vm4, %v1197_v45, %v1199_v9 }
  0xae   : > { %1451 = vmatmul.bf16.gmra.mxu2 %v1378_v4  ;;  %1688 = vmatmul.bf16.gmra.mxu3 %v1602_v12  ;;  %v1384_v12 = vsel %vm1189_vm4, %v1381_v41, %v1383_v5 }
  0xb0   : > { %v286_v15 = vpop.f32.mrf.mxu0  ;;  %v3194_v16 = vpop.f32.mrf.mxu1 }
  0xb1   : > { %v851_v22 = vpop.f32.mrf.mxu3  ;;  %v3203_v33 = vpop.f32.mrf.mxu2 }
  0xb8   : > { %v289_v28 = vpop.f32.mrf.mxu0  ;;  %v3199_v29 = vpop.f32.mrf.mxu1 }
  0xb9   : > { %v853_v34 = vpop.f32.mrf.mxu3  ;;  %v3211_v44 = vpop.f32.mrf.mxu2 }
  0xbb   : > { %1272 = vmatmul.bf16.gmra.mxu1 %v1196_v30  ;;  %1868 = vmatmul.bf16.gmra.mxu0 %v1792_v31 }
  0xbe   : > { %1456 = vmatmul.bf16.gmra.mxu2 %v1380_v27  ;;  %1693 = vmatmul.bf16.gmra.mxu3 %v1611_v35 }
  0xc0   : > { %v291_v37 = vpop.f32.mrf.mxu0  ;;  %v3207_v38 = vpop.f32.mrf.mxu1 }
  0xc1   : > { %v856_v43 = vpop.f32.mrf.mxu3 }
  0xc8   : > { %v482_v48 = vpop.f32.mrf.mxu1  ;;  %v1078_v49 = vpop.f32.mrf.mxu0 }
  0xc9   : > { %v517_v52 = vadd.f32 %v482_v48, %v284_v6  ;;  %v858_v56 = vpop.f32.mrf.mxu3 }
  0xcb   : > { %1277 = vmatmul.bf16.gmra.mxu1 %v1198_v50  ;;  %1873 = vmatmul.bf16.gmra.mxu0 %v1794_v51 }
  0xce   : > { %1461 = vmatmul.bf16.gmra.mxu2 %v1382_v42 }
  0xd0   : > { %v484_v63 = vpop.f32.mrf.mxu1  ;;  %v1080_v0 = vpop.f32.mrf.mxu0 }
  0xd1   : > { %v667_v57 = vpop.f32.mrf.mxu2  ;;  %v518_v3 = vadd.f32 %v484_v63, %v286_v15  ;;  %v861_v6 = vpop.f32.mrf.mxu3 }
  0xd2   : > { %v702_v60 = vadd.f32 %v667_v57, %v517_v52 }
  0xd4   : > { %v886_v62 = vadd.f32 %v851_v22, %v702_v60 }
  0xd6   : > { %v3219_v4 = vadd.f32 %v1078_v49, %v886_v62 }
  0xd8   : > { %v487_v14 = vpop.f32.mrf.mxu1  ;;  %v1083_v17 = vpop.f32.mrf.mxu0 }
  0xd9   : > { %v669_v8 = vpop.f32.mrf.mxu2  ;;  %v519_v20 = vadd.f32 %v487_v14, %v289_v28  ;;  %v863_v21 = vpop.f32.mrf.mxu3 }
  0xda   : > { %v703_v11 = vadd.f32 %v669_v8, %v518_v3 }
  0xdb   : > { %1282 = vmatmul.bf16.gmra.mxu1 %v1200_v18  ;;  %1878 = vmatmul.bf16.gmra.mxu0 %v1796_v19 }
  0xdc   : > { %v887_v13 = vadd.f32 %v853_v34, %v703_v11 }
  0xde   : > { %1466 = vmatmul.bf16.gmra.mxu2 %v1384_v12  ;;  %v3224_v15 = vadd.f32 %v1080_v0, %v887_v13 }
  0xe0   : > { %v489_v25 = vpop.f32.mrf.mxu1  ;;  %v1085_v26 = vpop.f32.mrf.mxu0 }
  0xe1   : > { %v672_v22 = vpop.f32.mrf.mxu2  ;;  %v520_v27 = vadd.f32 %v489_v25, %v291_v37  ;;  %v866_v31 = vpop.f32.mrf.mxu3 }
  0xe2   : > { %v704_v23 = vadd.f32 %v672_v22, %v519_v20 }
  0xe4   : > { %v888_v24 = vadd.f32 %v856_v43, %v704_v23 }
  0xe6   : > { %v3226_v30 = vadd.f32 %v1083_v17, %v888_v24 }
  0xe8   : > { %v492_v36 = vpop.f32.mrf.mxu1  ;;  %v1088_v28 = vpop.f32.mrf.mxu0 }
  0xe9   : > { %v674_v32 = vpop.f32.mrf.mxu2  ;;  %v521_v39 = vadd.f32 %v492_v36, %v3188_v7  ;;  %v868_v46 = vpop.f32.mrf.mxu3 }
  0xea   : > { %v705_v34 = vadd.f32 %v674_v32, %v520_v27 }
  0xec   : > { %v889_v35 = vadd.f32 %v858_v56, %v705_v34 }
  0xee   : > { %v3229_v40 = vadd.f32 %v1085_v26, %v889_v35  ;;  %v3253_v35 = vld [vmem:[%s3289_s2] ss:$0 sm:$0xff] }
  0xf0   : > { %v494_v43 = vpop.f32.mrf.mxu1  ;;  %v1090_v47 = vpop.f32.mrf.mxu0 }
  0xf1   : > { %v677_v41 = vpop.f32.mrf.mxu2  ;;  %v522_v37 = vadd.f32 %v494_v43, %v3194_v16  ;;  %v871_v52 = vpop.f32.mrf.mxu3 }
  0xf2   : > { %v706_v45 = vadd.f32 %v677_v41, %v521_v39 }
  0xf4   : > { %v890_v42 = vadd.f32 %v861_v6, %v706_v45 }
  0xf6   : > { %v3232_v48 = vadd.f32 %v1088_v28, %v890_v42 }
  0xf8   : > { %v497_v53 = vpop.f32.mrf.mxu1  ;;  %v1093_v54 = vpop.f32.mrf.mxu0 }
  0xf9   : > { %v679_v49 = vpop.f32.mrf.mxu2  ;;  %v523_v7 = vadd.f32 %v497_v53, %v3199_v29  ;;  %v873_v16 = vpop.f32.mrf.mxu3 }
  0xfa   : > { %v707_v50 = vadd.f32 %v679_v49, %v522_v37 }
  0xfc   : > { %v891_v51 = vadd.f32 %v863_v21, %v707_v50 }
  0xfe   : > { %v3235_v55 = vadd.f32 %v1090_v47, %v891_v51 }
 0x100   : > { %v499_v59 = vpop.f32.mrf.mxu1  ;;  %v1095_v60 = vpop.f32.mrf.mxu0 }
 0x101   : > { %v682_v56 = vpop.f32.mrf.mxu2  ;;  %v524_v61 = vadd.f32 %v499_v59, %v3207_v38  ;;  %v1674_v6 = vpop.f32.mrf.mxu3 }
 0x102   : > { %v708_v57 = vadd.f32 %v682_v56, %v523_v7 }
 0x104   : > { %v892_v58 = vadd.f32 %v866_v31, %v708_v57 }
 0x106   : > { %v3238_v62 = vadd.f32 %v1093_v54, %v892_v58 }
 0x108   : > { %v502_v2 = vpop.f32.mrf.mxu1  ;;  %v1098_v3 = vpop.f32.mrf.mxu0 }
 0x109   : > { %v684_v63 = vpop.f32.mrf.mxu2  ;;  %v525_v5 = vadd.f32 %v502_v2, %v3203_v33  ;;  %v1676_v18 = vpop.f32.mrf.mxu3 }
 0x10a   : > { %v709_v0 = vadd.f32 %v684_v63, %v524_v61 }
 0x10c   : > { %v893_v1 = vadd.f32 %v868_v46, %v709_v0 }
 0x10e   : > { %v3241_v29 = vadd.f32 %v1095_v60, %v893_v1 }
 0x110   : > { %v504_v11 = vpop.f32.mrf.mxu1  ;;  %v1100_v12 = vpop.f32.mrf.mxu0 }
 0x111   : > { %v687_v8 = vpop.f32.mrf.mxu2  ;;  %v526_v38 = vadd.f32 %v504_v11, %v3211_v44  ;;  %v1679_v25 = vpop.f32.mrf.mxu3 }
 0x112   : > { %v710_v9 = vadd.f32 %v687_v8, %v525_v5 }
 0x114   : > { %v894_v10 = vadd.f32 %v871_v52, %v710_v9 }
 0x116   : > { %v3244_v13 = vadd.f32 %v1098_v3, %v894_v10 }
 0x118   : > { %v1263_v20 = vpop.f32.mrf.mxu1  ;;  %v1859_v21 = vpop.f32.mrf.mxu0 }
 0x119   : > { %v689_v14 = vpop.f32.mrf.mxu2  ;;  %v1298_v33 = vadd.f32 %v1263_v20, %v3219_v4  ;;  %v1681_v42 = vpop.f32.mrf.mxu3 }
 0x11a   : > { %v711_v17 = vadd.f32 %v689_v14, %v526_v38 }
 0x11c   : > { %v895_v19 = vadd.f32 %v873_v16, %v711_v17 }
 0x11e   : > { %v3247_v22 = vadd.f32 %v1100_v12, %v895_v19 }
 0x120   : > { %v1265_v26 = vpop.f32.mrf.mxu1  ;;  %v1861_v27 = vpop.f32.mrf.mxu0 }
 0x121   : > { %v1447_v23 = vpop.f32.mrf.mxu2  ;;  %v1299_v44 = vadd.f32 %v1265_v26, %v3224_v15  ;;  %v1684_v7 = vpop.f32.mrf.mxu3 }
 0x122   : > { %v1482_v24 = vadd.f32 %v1447_v23, %v1298_v33 }
 0x124   : > { %v1709_v31 = vadd.f32 %v1674_v6, %v1482_v24 }
 0x126   : > { %v1894_v34 = vadd.f32 %v1859_v21, %v1709_v31 }
 0x128   : > { %v1268_v28 = vpop.f32.mrf.mxu1  ;;  %v1864_v39 = vpop.f32.mrf.mxu0  ;;  %v1928_v41 = vadd.f32 %v3253_v35, %v1894_v34 }
 0x129   : > { %v1449_v32 = vpop.f32.mrf.mxu2  ;;  %v1300_v46 = vadd.f32 %v1268_v28, %v3226_v30 }
 0x12a   : > { %v1483_v36 = vadd.f32 %v1449_v32, %v1299_v44  ;;  %v1938_v47 = vmax.f32 %v1928_v41, 0.0 }
 0x12c   : > { %v1710_v4 = vadd.f32 %v1676_v18, %v1483_v36 }
 0x12e   : > { %v1895_v45 = vadd.f32 %v1861_v27, %v1710_v4 }
 0x130   : > { %v1929_v15 = vadd.f32 %v3253_v35, %v1895_v45  ;;  %v1270_v51 = vpop.f32.mrf.mxu1  ;;  %v1866_v52 = vpop.f32.mrf.mxu0 }
 0x131   : > { %v1452_v43 = vpop.f32.mrf.mxu2  ;;  %v1301_v30 = vadd.f32 %v1270_v51, %v3229_v40  ;;  %v1686_v40 = vpop.f32.mrf.mxu3 }
 0x132   : > { %v1939_v37 = vmax.f32 %v1929_v15, 0.0  ;;  %v1484_v49 = vadd.f32 %v1452_v43, %v1300_v46 }
 0x134   : > { %v2748_v50 = vpack.c.bf16 %v1939_v37, %v1938_v47  ;;  %v1711_v53 = vadd.f32 %v1679_v25, %v1484_v49 }
 0x136   : > { %2749 = vst [vmem:[%s3262_s21] sm:$0xff] %v2748_v50   ;;  %v1896_v56 = vadd.f32 %v1864_v39, %v1711_v53 }
 0x138   : > { %v1273_v59 = vpop.f32.mrf.mxu1  ;;  %v1869_v60 = vpop.f32.mrf.mxu0  ;;  %v1930_v61 = vadd.f32 %v3253_v35, %v1896_v56 }
 0x139   : > { %v1454_v54 = vpop.f32.mrf.mxu2  ;;  %v1302_v63 = vadd.f32 %v1273_v59, %v3232_v48  ;;  %v1689_v48 = vpop.f32.mrf.mxu3 }
 0x13a   : > { %v1485_v57 = vadd.f32 %v1454_v54, %v1301_v30  ;;  %v1940_v2 = vmax.f32 %v1930_v61, 0.0 }
 0x13c   : > { %v1712_v58 = vadd.f32 %v1681_v42, %v1485_v57 }
 0x13e   : > { %v1897_v16 = vadd.f32 %v1866_v52, %v1712_v58 }
 0x140   : > { %v1931_v0 = vadd.f32 %v3253_v35, %v1897_v16  ;;  %v1275_v8 = vpop.f32.mrf.mxu1  ;;  %v1871_v9 = vpop.f32.mrf.mxu0 }
 0x141   : > { %v1457_v1 = vpop.f32.mrf.mxu2  ;;  %v1303_v11 = vadd.f32 %v1275_v8, %v3235_v55  ;;  %v1691_v34 = vpop.f32.mrf.mxu3 }
 0x142   : > { %v1941_v3 = vmax.f32 %v1931_v0, 0.0  ;;  %v1486_v5 = vadd.f32 %v1457_v1, %v1302_v63 }
 0x144   : > { %v2753_v6 = vpack.c.bf16 %v1941_v3, %v1940_v2  ;;  %v1713_v10 = vadd.f32 %v1684_v7, %v1486_v5 }
 0x146   : > { %2770 = vst [vmem:[%s3262_s21 + $0x8] sm:$0xff] %v2753_v6   ;;  %v1898_v38 = vadd.f32 %v1869_v60, %v1713_v10 }
 0x148   : > { %v1278_v18 = vpop.f32.mrf.mxu1  ;;  %v1932_v19 = vadd.f32 %v3253_v35, %v1898_v38  ;;  %v1874_v33 = vpop.f32.mrf.mxu0 }
 0x149   : > { %v1459_v12 = vpop.f32.mrf.mxu2  ;;  %v1304_v21 = vadd.f32 %v1278_v18, %v3238_v62  ;;  %v1694_v43 = vpop.f32.mrf.mxu3 }
 0x14a   : > { %v1487_v14 = vadd.f32 %v1459_v12, %v1303_v11  ;;  %v1942_v25 = vmax.f32 %v1932_v19, 0.0 }
 0x14c   : > { %v1714_v17 = vadd.f32 %v1686_v40, %v1487_v14 }
 0x14e   : > { %v1899_v20 = vadd.f32 %v1871_v9, %v1714_v17 }
 0x150   : > { %v1933_v23 = vadd.f32 %v3253_v35, %v1899_v20  ;;  %v1280_v31 = vpop.f32.mrf.mxu1  ;;  %v1876_v36 = vpop.f32.mrf.mxu0 }
 0x151   : > { %v1462_v24 = vpop.f32.mrf.mxu2  ;;  %v1305_v32 = vadd.f32 %v1280_v31, %v3241_v29  ;;  %v1696_v57 = vpop.f32.mrf.mxu3 }
 0x152   : > { %v1943_v26 = vmax.f32 %v1933_v23, 0.0  ;;  %v1488_v27 = vadd.f32 %v1462_v24, %v1304_v21 }
 0x154   : > { %v2758_v55 = vpack.c.bf16 %v1943_v26, %v1942_v25  ;;  %v1715_v44 = vadd.f32 %v1689_v48, %v1488_v27 }
 0x156   : > { %2771 = vst [vmem:[%s3262_s21 + $0x10] sm:$0xff] %v2758_v55   ;;  %v1900_v28 = vadd.f32 %v1874_v33, %v1715_v44 }
 0x158   : > { %v1283_v41 = vpop.f32.mrf.mxu1  ;;  %v1934_v45 = vadd.f32 %v3253_v35, %v1900_v28  ;;  %v1879_v50 = vpop.f32.mrf.mxu0 }
 0x159   : > { %v1464_v4 = vpop.f32.mrf.mxu2  ;;  %v1306_v42 = vadd.f32 %v1283_v41, %v3244_v13 }
 0x15a   : > { %v1489_v39 = vadd.f32 %v1464_v4, %v1305_v32  ;;  %v1944_v37 = vmax.f32 %v1934_v45, 0.0 }
 0x15c   : > { %v1716_v62 = vadd.f32 %v1691_v34, %v1489_v39 }
 0x15e   : > { %v1901_v46 = vadd.f32 %v1876_v36, %v1716_v62 }
 0x160   : > { %v1935_v15 = vadd.f32 %v3253_v35, %v1901_v46  ;;  %v1285_v53 = vpop.f32.mrf.mxu1  ;;  %v1881_v59 = vpop.f32.mrf.mxu0 }
 0x161   : > { %v1467_v47 = vpop.f32.mrf.mxu2  ;;  %v1307_v54 = vadd.f32 %v1285_v53, %v3247_v22 }
 0x162   : > { %v1945_v49 = vmax.f32 %v1935_v15, 0.0  ;;  %v1490_v29 = vadd.f32 %v1467_v47, %v1306_v42 }
 0x164   : > { %v2763_v51 = vpack.c.bf16 %v1945_v49, %v1944_v37  ;;  %v1717_v52 = vadd.f32 %v1694_v43, %v1490_v29 }
 0x166   : > { %2772 = vst [vmem:[%s3262_s21 + $0x18] sm:$0xff] %v2763_v51   ;;  %v1902_v30 = vadd.f32 %v1879_v50, %v1717_v52 }
 0x168   : > { %v1936_v7 = vadd.f32 %v3253_v35, %v1902_v30 }
 0x169   : > { %v1469_v56 = vpop.f32.mrf.mxu2 }
 0x16a   : > { %v1491_v13 = vadd.f32 %v1469_v56, %v1307_v54  ;;  %v1946_v16 = vmax.f32 %v1936_v7, 0.0 }
 0x16c   : > { %v1718_v58 = vadd.f32 %v1696_v57, %v1491_v13 }
 0x16e   : > { %v1903_v60 = vadd.f32 %v1881_v59, %v1718_v58 }
 0x170   : > { %v1937_v61 = vadd.f32 %v3253_v35, %v1903_v60 }
 0x172   : > { %v1947_v63 = vmax.f32 %v1937_v61, 0.0 }
 0x174   : > { %v2768_v0 = vpack.c.bf16 %v1947_v63, %v1946_v16 }
 0x176   : > { %2773 = vst [vmem:[%s3262_s21 + $0x20] sm:$0xff] %v2768_v0  }
 0x177 PF: > { %s13_s12 = sadd.s32 1, %s2807_s12  }
 0x178   : > { %p10_p4 = scmp.ge.s32.totalorder %s13_s12, 4  }
 0x17a   :  { %12 = sbr.rel (!%p10_p4) target bundleno = 1 (0x1), region = 70 }

// kernel: le.26
= control target key start
LH: loop header
LB: loop body
LE: loop exit
PB: predicated region body
PF: predicated region fallthrough
CT: control target
= control target key end

     0   :  { %vm7_vm0 = vcmask 64512   ;;  %s39_s0 = inlined_call_operand.vmem [shape: f32[16], index: 0, kind: input, shape index: {}]   ;;  %s40_s1 = inlined_call_operand.vmem [shape: f32[2,8], index: 1, kind: output, shape index: {}]  }
   0x1   :  { %v4_v0 = vld [vmem:[%s39_s0] sm:$0x1]  ;;  %s22_s0 = smov 120  }
   0x2   :  { %5 = vst [vmem:[#allocation1] sm:$0x1] %v4_v0 }
   0x9   :  { %v9_v1 = vld [vmem:[#allocation1] sm:$0x1]  }
   0xa   :  { %v6_v2 = vld [vmem:[#allocation1] sm:$0x1]   ;;  %10 = vrot.lane.b32.xlu0 %v9_v1, %s22_s0 }
   0xb   :  { %8 = vst.msk [vmem:[#allocation0] sm:$0x1] %vm7_vm0, %v6_v2  }
  0x7c   :  { %v11_v3 = vpop.permute.xlu0 %10  }
  0x7d   :  { %14 = vst.msk [vmem:[#allocation0 + $0x1] sm:$0x1] %vm7_vm0, %v11_v3  }
  0x84   :  { %v17_v4 = vld [vmem:[#allocation0] sm:$0x3] }
  0x85   :  { %20 = vst [vmem:[%s40_s1] sm:$0x3] %v17_v4 }

// kernel: _forward_core.9
= control target key start
LH: loop header
LB: loop body
LE: loop exit
PB: predicated region body
PF: predicated region fallthrough
CT: control target
= control target key end

     0   :  { %s949_s27 = smov 0   ;;  %s1055_s0 = inlined_call_operand.vmem [shape: bf16[2,8,128], index: 0, kind: input, shape index: {}]   ;;  %s1056_s1 = inlined_call_operand.vmem [shape: bf16[2,128,128], index: 1, kind: input, shape index: {}]   ;;  %s1057_s2 = inlined_call_operand.vmem [shape: bf16[128,128], index: 2, kind: input, shape index: {}]   ;;  %s1058_s3 = inlined_call_operand.vmem [shape: f32[1,128], index: 3, kind: input, shape index: {}, may-alias: {3,5,7}]   ;;  %s1059_s4 = inlined_call_operand.vmem [shape: bf16[128,128], index: 4, kind: input, shape index: {}]   ;;  %s1060_s5 = inlined_call_operand.vmem [shape: f32[1,128], index: 5, kind: input, shape index: {}, may-alias: {3,5,7}]   ;;  %s1061_s6 = inlined_call_operand.vmem [shape: bf16[128,128], index: 6, kind: input, shape index: {}]   ;;  %s1062_s7 = inlined_call_operand.vmem [shape: f32[1,128], index: 7, kind: input, shape index: {}, may-alias: {3,5,7}]   ;;  %s1063_s8 = inlined_call_operand.vmem [shape: f32[2,8,128], index: 8, kind: output, shape index: {}]  }
   0x1 LB: > { %s713_s28 = sadd.s32 4294967295, %s902_s27   ;;  %p717_p0 = scmp.ge.s32.totalorder %s902_s27, 1  ;;  %s902_s27 = sphi %s949_s27, %s18_s27  }
   0x2   : > { %p271_p1 = scmp.lt.s32.totalorder %s902_s27, 3 }
   0x4   : > { %p272_p2 = pnand %p717_p0, %p271_p1 }
   0x5   : > { %p308_p3 = scmp.lt.s32.totalorder (!%p272_p2), %s713_s28, 1 }
   0x6   : > { %275 = sbr.rel (%p272_p2) target bundleno = 584 (0x248), region = 52 }
   0xb   : > { %s1065_s28 = smov (!%p308_p3, %s713_s28), 1  ;;  %v868_v2 = vld [vmem:[%s1057_s2 + $0x38] sm:$0xff]  ;;  %v867_v3 = vld [vmem:[%s1057_s2 + $0x30] sm:$0xff]  ;;  %v866_v5 = vld [vmem:[%s1057_s2 + $0x28] sm:$0xff] }
   0xc   : > { %s852_s29 = sshll.u32 %s1065_s28, 6  ;;  %468 = vmatpush.bf16.msra.mxu1 %v868_v2  ;;  %v865_v7 = vld [vmem:[%s1057_s2 + $0x20] sm:$0xff]  ;;  %v864_v9 = vld [vmem:[%s1057_s2 + $0x18] sm:$0xff]  ;;  %v863_v11 = vld [vmem:[%s1057_s2 + $0x10] sm:$0xff]  ;;  %s718_s23 = sshll.u32 %s1065_s28, 2 }
   0xd   : > { %s316_s10 = scalar_lea.vmem %s1056_s1, %s852_s29  ;;  %v862_v13 = vld [vmem:[%s1057_s2 + $0x8] sm:$0xff]  ;;  %s311_s30 = scalar_lea.vmem %s1055_s0, %s718_s23  ;;  %v861_v16 = vld [vmem:[%s1057_s2] sm:$0xff]  ;;  %v876_v17 = vld [vmem:[%s1059_s4 + $0x38] sm:$0xff] }
   0xe   : > { %v860_v0 = vld [vmem:[%s316_s10 + $0x38] sm:$0xff]  ;;  %v859_v1 = vld [vmem:[%s316_s10 + $0x30] sm:$0xff]  ;;  %v858_v4 = vld [vmem:[%s316_s10 + $0x28] sm:$0xff]  ;;  %551 = vmatpush.bf16.msra.mxu2 %v876_v17  ;;  %s721_s29 = sshll.u32 %s1065_s28, 3 }
   0xf   : > { %386 = vmatpush.bf16.msra.mxu0 %v860_v0  ;;  %v857_v6 = vld [vmem:[%s316_s10 + $0x20] sm:$0xff]  ;;  %v856_v8 = vld [vmem:[%s316_s10 + $0x18] sm:$0xff]  ;;  %v855_v10 = vld [vmem:[%s316_s10 + $0x10] sm:$0xff]  ;;  %s320_s13 = scalar_lea.vmem %s1063_s8, %s721_s29 }
  0x10   : > { %469 = vmatpush.bf16.msra.mxu1 %v867_v3  ;;  %v854_v12 = vld [vmem:[%s316_s10 + $0x8] sm:$0xff]  ;;  %v853_v14 = vld [vmem:[%s316_s10] sm:$0xff]  ;;  %v875_v18 = vld [vmem:[%s1059_s4 + $0x30] sm:$0xff] }
  0x11   : > { %v321_v15 = vld [vmem:[%s311_s30] sm:$0xf]  ;;  %v874_v19 = vld [vmem:[%s1059_s4 + $0x28] sm:$0xff]  ;;  %v872_v21 = vld [vmem:[%s1059_s4 + $0x18] sm:$0xff] }
  0x12   : > { %552 = vmatpush.bf16.msra.mxu2 %v875_v18  ;;  %v873_v20 = vld [vmem:[%s1059_s4 + $0x20] sm:$0xff]  ;;  %v871_v22 = vld [vmem:[%s1059_s4 + $0x10] sm:$0xff]  ;;  %v870_v26 = vld [vmem:[%s1059_s4 + $0x8] sm:$0xff] }
  0x13   : > { %387 = vmatpush.bf16.msra.mxu0 %v859_v1  ;;  %v869_v27 = vld [vmem:[%s1059_s4] sm:$0xff]  ;;  %v884_v28 = vld [vmem:[%s1061_s6 + $0x38] sm:$0xff]  ;;  %v883_v29 = vld [vmem:[%s1061_s6 + $0x30] sm:$0xff] }
  0x14   : > { %470 = vmatpush.bf16.msra.mxu1 %v866_v5  ;;  %634 = vmatpush.bf16.msra.mxu3 %v884_v28  ;;  %v882_v30 = vld [vmem:[%s1061_s6 + $0x28] sm:$0xff]  ;;  %v881_v31 = vld [vmem:[%s1061_s6 + $0x20] sm:$0xff]  ;;  %v880_v32 = vld [vmem:[%s1061_s6 + $0x18] sm:$0xff] }
  0x15   : > { %v879_v33 = vld [vmem:[%s1061_s6 + $0x10] sm:$0xff]  ;;  %v893_v34 = vld [vmem:[%s1058_s3] ss:$0 sm:$0xff]  ;;  %v878_v40 = vld [vmem:[%s1061_s6 + $0x8] sm:$0xff] }
  0x16   : > { %553 = vmatpush.bf16.msra.mxu2 %v874_v19  ;;  %v877_v41 = vld [vmem:[%s1061_s6] sm:$0xff] }
  0x17   : > { %388 = vmatpush.bf16.msra.mxu0 %v858_v4  ;;  %v894_v42 = vld [vmem:[%s1060_s5] ss:$0 sm:$0xff] }
  0x18   : > { %471 = vmatpush.bf16.msra.mxu1 %v865_v7  ;;  %635 = vmatpush.bf16.msra.mxu3 %v883_v29  ;;  %v895_v48 = vld [vmem:[%s1062_s7] ss:$0 sm:$0xff] }
  0x1a   : > { %554 = vmatpush.bf16.msra.mxu2 %v873_v20 }
  0x1b   : > { %389 = vmatpush.bf16.msra.mxu0 %v857_v6 }
  0x1c   : > { %472 = vmatpush.bf16.msra.mxu1 %v864_v9  ;;  %636 = vmatpush.bf16.msra.mxu3 %v882_v30 }
  0x1e   : > { %555 = vmatpush.bf16.msra.mxu2 %v872_v21 }
  0x1f   : > { %390 = vmatpush.bf16.msra.mxu0 %v856_v8 }
  0x20   : > { %473 = vmatpush.bf16.msra.mxu1 %v863_v11  ;;  %637 = vmatpush.bf16.msra.mxu3 %v881_v31 }
  0x22   : > { %556 = vmatpush.bf16.msra.mxu2 %v871_v22 }
  0x23   : > { %391 = vmatpush.bf16.msra.mxu0 %v855_v10 }
  0x24   : > { %474 = vmatpush.bf16.msra.mxu1 %v862_v13  ;;  %638 = vmatpush.bf16.msra.mxu3 %v880_v32 }
  0x26   : > { %557 = vmatpush.bf16.msra.mxu2 %v870_v26 }
  0x27   : > { %392 = vmatpush.bf16.msra.mxu0 %v854_v12 }
  0x28   : > { %475 = vmatpush.bf16.msra.mxu1 %v861_v16  ;;  %639 = vmatpush.bf16.msra.mxu3 %v879_v33 }
  0x2a   : > { %558 = vmatpush.bf16.msra.mxu2 %v869_v27 }
  0x2b   : > { %393 = vmatpush.bf16.msra.mxu0 %v853_v14 }
  0x2c   : > { %640 = vmatpush.bf16.msra.mxu3 %v878_v40 }
  0x2e   : > { %394 = vmatmul.bf16.vlgmr.msra.gmra.mxu0 %v321_v15 }
  0x30   : > { %641 = vmatpush.bf16.msra.mxu3 %v877_v41 }
  0xab   : > { %v395_v23 = vpop.f32.mrf.mxu0 }
  0xac   : > { %v399_v24 = vpack.c.bf16 %v395_v23, %v395_v23 }
  0xae   : > { %476 = vmatmul.bf16.vlgmr.msra.gmra.mxu1 %v399_v24 }
  0xb3   : > { %v397_v25 = vpop.f32.mrf.mxu0 }
 0x12b   : > { %v477_v35 = vpop.f32.mrf.mxu1 }
 0x12c   : > { %v478_v36 = vadd.f32 %v893_v34, %v477_v35 }
 0x12e   : > { %v481_v37 = vmax.f32 %v478_v36, 0.0 }
 0x130   : > { %v482_v38 = vpack.c.bf16 %v481_v37, %v481_v37 }
 0x132   : > { %559 = vmatmul.bf16.vlgmr.msra.gmra.mxu2 %v482_v38 }
 0x133   : > { %v479_v39 = vpop.f32.mrf.mxu1 }
 0x1b5   : > { %v560_v43 = vpop.f32.mrf.mxu2 }
 0x1b6   : > { %v561_v44 = vadd.f32 %v894_v42, %v560_v43 }
 0x1b8   : > { %v564_v45 = vmax.f32 %v561_v44, 0.0 }
 0x1ba   : > { %v565_v46 = vpack.c.bf16 %v564_v45, %v564_v45 }
 0x1bc   : > { %642 = vmatmul.bf16.vlgmr.msra.gmra.mxu3 %v565_v46 }
 0x1bd   : > { %v562_v47 = vpop.f32.mrf.mxu2 }
 0x23f   : > { %v643_v49 = vpop.f32.mrf.mxu3 }
 0x240   : > { %v644_v50 = vadd.f32 %v895_v48, %v643_v49 }
 0x242   : > { %647 = vst [vmem:[%s320_s13] sm:$0xff] %v644_v50 }
 0x247   : > { %v645_v51 = vpop.f32.mrf.mxu3 }
 0x248 PF: > { %s18_s27 = sadd.s32 1, %s902_s27  }
 0x249   : > { %p15_p4 = scmp.ge.s32.totalorder %s18_s27, 4  }
 0x24b   :  { %17 = sbr.rel (!%p15_p4) target bundleno = 1 (0x1), region = 85 }

</bundles_post_ra>
